<compile_context>
chip_gen: v7x
topology: tpu7x:2x2x1
jax: 0.10.0
libtpu: 0.0.40
codegen_flags: <defaults>
</compile_context>

<pallas_src>
import functools
import math

import jax
import jax.numpy as jnp
from jax import lax
from jax.experimental import pallas as pl
from jax.experimental.pallas import tpu as pltpu


_PARAM_ORDER = (
    "sa_wq", "sa_bq", "sa_wk", "sa_bk", "sa_wv", "sa_bv", "sa_wo", "sa_bo",
    "ln1_g", "ln1_b",
    "ca_wq", "ca_bq", "ca_wk", "ca_bk", "ca_wv", "ca_bv", "ca_wo", "ca_bo",
    "ln2_g", "ln2_b",
    "ff_w1", "ff_b1", "ff_w2", "ff_b2", "ln3_g", "ln3_b",
)
_N_PER_LAYER = len(_PARAM_ORDER)


# ----------------------------- in-kernel helpers -----------------------------
def _linear_pt(x, w, b):
    """x: (M, Ein); w: (Eout, Ein) (PyTorch layout); b: (1, Eout) -> (M, Eout)."""
    y = lax.dot_general(x, w, (((1,), (1,)), ((), ())),
                        preferred_element_type=jnp.float32)
    return y + b


def _layer_norm(x, gamma, beta, eps):
    mean = jnp.mean(x, axis=-1, keepdims=True)
    c = x - mean
    var = jnp.mean(c * c, axis=-1, keepdims=True)
    return c * lax.rsqrt(var + eps) * gamma + beta


def _mha_block(x_q, x_kv, mask_add, wq, bq, wk, bk, wv, bv, wo, bo, nhead):
    """Multi-head attention for one batch element, everything kept in VMEM.

    x_q: (Sq, E), x_kv: (Sk, E), mask_add: (Sq, Sk) additive (0 / -1e9).
    Returns (Sq, E) = concat_h(softmax(Qh Kh^T/sqrt(Dh) + mask) Vh) @ Wo^T + bo,
    with the output projection accumulated per head (no lane concat needed).
    """
    _, E = x_q.shape
    Dh = E // nhead
    scale = 1.0 / math.sqrt(Dh)

    Q = _linear_pt(x_q, wq, bq)    # (Sq, E)  all heads at once
    K = _linear_pt(x_kv, wk, bk)   # (Sk, E)
    V = _linear_pt(x_kv, wv, bv)   # (Sk, E)

    out = None
    for h in range(nhead):          # static unroll over heads (lane slices, no transpose)
        lo = h * Dh
        qh = Q[:, lo:lo + Dh]
        kh = K[:, lo:lo + Dh]
        vh = V[:, lo:lo + Dh]
        # Qh Kh^T without materializing a transpose: contract the Dh dims.
        s = lax.dot_general(qh, kh, (((1,), (1,)), ((), ())),
                            preferred_element_type=jnp.float32) * scale
        s = s + mask_add
        s = s - jnp.max(s, axis=-1, keepdims=True)
        e = jnp.exp(s)
        inv = pl.reciprocal(jnp.sum(e, axis=-1, keepdims=True), approx=True)
        attn = e * inv
        ctx_h = jnp.dot(attn, vh, preferred_element_type=jnp.float32)   # (Sq, Dh)
        # Per-head slice of the output projection: ctx_h @ Wo[:, lo:lo+Dh]^T.
        contrib = lax.dot_general(ctx_h, wo[:, lo:lo + Dh],
                                  (((1,), (1,)), ((), ())),
                                  preferred_element_type=jnp.float32)
        out = contrib if out is None else out + contrib
    return out + bo


# --------------------------- fused whole-decoder kernel ---------------------------
def _decoder_kernel(*refs, num_layers, nhead, eps):
    tgt_ref, mem_ref, tmask_ref, mmask_ref = refs[:4]
    param_refs = refs[4:-1]
    out_ref = refs[-1]

    x = tgt_ref[0]        # (Sq, E)
    mem = mem_ref[0]      # (Sk, E)
    tmask = tmask_ref[0]  # (Sq, Sq) additive
    mmask = mmask_ref[0]  # (Sq, Sk) additive

    for li in range(num_layers):   # static unroll over layers; x stays in VMEM
        base = li * _N_PER_LAYER
        (sa_wq, sa_bq, sa_wk, sa_bk, sa_wv, sa_bv, sa_wo, sa_bo, ln1_g, ln1_b,
         ca_wq, ca_bq, ca_wk, ca_bk, ca_wv, ca_bv, ca_wo, ca_bo, ln2_g, ln2_b,
         ff_w1, ff_b1, ff_w2, ff_b2, ln3_g, ln3_b) = [
            param_refs[base + i][...] for i in range(_N_PER_LAYER)]

        # ---- self-attention + residual + LayerNorm (dropout p=0.0 -> identity) ----
        sa = _mha_block(x, x, tmask, sa_wq, sa_bq, sa_wk, sa_bk, sa_wv, sa_bv,
                        sa_wo, sa_bo, nhead)
        x = _layer_norm(x + sa, ln1_g, ln1_b, eps)

        # ---- cross-attention + residual + LayerNorm ----
        ca = _mha_block(x, mem, mmask, ca_wq, ca_bq, ca_wk, ca_bk, ca_wv, ca_bv,
                        ca_wo, ca_bo, nhead)
        x = _layer_norm(x + ca, ln2_g, ln2_b, eps)

        # ---- feed-forward + residual + LayerNorm ----
        ff = jnp.maximum(_linear_pt(x, ff_w1, ff_b1), 0.0)
        ff = _linear_pt(ff, ff_w2, ff_b2)
        x = _layer_norm(x + ff, ln3_g, ln3_b, eps)

    out_ref[0] = x


def decoder_forward(layer_params, tgt, memory, tgt_mask_bool, mem_mask_bool,
                    nhead, eps=1e-5):
    """Decoder.forward: one fused pallas_call over the whole layer stack.

    tgt: (B, Sq, E); memory: (B, Sk, E); masks are bool (B, Sq, Sk/ Sq) with
    True = masked.  dropout p=0.0 -> identity everywhere.
    """
    B, Sq, E = tgt.shape
    num_layers = len(layer_params)

    # Convert masks once to additive f32 (0 / -1e9); reused by every layer.
    tmask_add = jnp.where(tgt_mask_bool, -1e9, 0.0).astype(jnp.float32)
    mmask_add = jnp.where(mem_mask_bool, -1e9, 0.0).astype(jnp.float32)

    def batch_spec(arr):
        shp = arr.shape
        return pl.BlockSpec((1,) + shp[1:],
                            lambda b, _n=len(shp): (b,) + (0,) * (_n - 1))

    def full_spec(arr):
        shp = arr.shape
        return pl.BlockSpec(shp, lambda b, _n=len(shp): (0,) * _n)

    param_arrays = [p[name] for p in layer_params for name in _PARAM_ORDER]
    in_specs = ([batch_spec(tgt), batch_spec(memory),
                 batch_spec(tmask_add), batch_spec(mmask_add)]
                + [full_spec(a) for a in param_arrays])

    kernel = functools.partial(_decoder_kernel, num_layers=num_layers,
                               nhead=nhead, eps=eps)
    return pl.pallas_call(
        kernel,
        out_shape=jax.ShapeDtypeStruct((B, Sq, E), jnp.float32),
        grid=(B,),
        in_specs=in_specs,
        out_specs=pl.BlockSpec((1, Sq, E), lambda b: (b, 0, 0)),
        compiler_params=pltpu.CompilerParams(
            dimension_semantics=("parallel",)),
    )(tgt, memory, tmask_add, mmask_add, *param_arrays)


# ----------------------------------- reference ---------------------------------
def reference_decoder(layer_params, tgt, memory, tgt_mask, mem_mask, nhead):
    eps = 1e-5

    def linear(x, w, b):
        return x @ w.T + b

    def layer_norm(x, g, b):
        mean = jnp.mean(x, axis=-1, keepdims=True)
        var = jnp.mean((x - mean) ** 2, axis=-1, keepdims=True)
        return (x - mean) / jnp.sqrt(var + eps) * g + b

    def mha(xq, xkv, mask_bool, wq, bq, wk, bk, wv, bv, wo, bo):
        B, Sq, E = xq.shape
        Dh = E // nhead

        def proj(x, w, b):
            y = linear(x, w, b)
            bsz, s, _ = y.shape
            return y.reshape(bsz, s, nhead, Dh).transpose(0, 2, 1, 3)

        Q = proj(xq, wq, bq)
        K = proj(xkv, wk, bk)
        V = proj(xkv, wv, bv)
        scores = jnp.einsum("bhqd,bhkd->bhqk", Q, K) / math.sqrt(Dh)
        scores = jnp.where(mask_bool[:, None, :, :], -1e9, scores)
        attn = jax.nn.softmax(scores, axis=-1)
        ctx = jnp.einsum("bhqk,bhkd->bhqd", attn, V)
        ctx = ctx.transpose(0, 2, 1, 3).reshape(B, Sq, E)
        return linear(ctx, wo, bo)

    x = tgt
    for p in layer_params:
        sa = mha(x, x, tgt_mask, p["sa_wq"], p["sa_bq"], p["sa_wk"], p["sa_bk"],
                 p["sa_wv"], p["sa_bv"], p["sa_wo"], p["sa_bo"])
        x = layer_norm(x + sa, p["ln1_g"], p["ln1_b"])
        ca = mha(x, memory, mem_mask, p["ca_wq"], p["ca_bq"], p["ca_wk"], p["ca_bk"],
                 p["ca_wv"], p["ca_bv"], p["ca_wo"], p["ca_bo"])
        x = layer_norm(x + ca, p["ln2_g"], p["ln2_b"])
        ff = jnp.maximum(linear(x, p["ff_w1"], p["ff_b1"]), 0.0)
        ff = linear(ff, p["ff_w2"], p["ff_b2"])
        x = layer_norm(x + ff, p["ln3_g"], p["ln3_b"])
    return x


# ------------------------------------- init -------------------------------------
def init_layer_params(key, E, F):
    ks = jax.random.split(key, 20)

    def lin(kw, kb, out_dim, in_dim):
        bound = 1.0 / math.sqrt(in_dim)
        w = jax.random.uniform(kw, (out_dim, in_dim), jnp.float32, -bound, bound)
        b = jax.random.uniform(kb, (1, out_dim), jnp.float32, -bound, bound)
        return w, b

    p = {}
    p["sa_wq"], p["sa_bq"] = lin(ks[0], ks[1], E, E)
    p["sa_wk"], p["sa_bk"] = lin(ks[2], ks[3], E, E)
    p["sa_wv"], p["sa_bv"] = lin(ks[4], ks[5], E, E)
    p["sa_wo"], p["sa_bo"] = lin(ks[6], ks[7], E, E)
    p["ca_wq"], p["ca_bq"] = lin(ks[8], ks[9], E, E)
    p["ca_wk"], p["ca_bk"] = lin(ks[10], ks[11], E, E)
    p["ca_wv"], p["ca_bv"] = lin(ks[12], ks[13], E, E)
    p["ca_wo"], p["ca_bo"] = lin(ks[14], ks[15], E, E)
    p["ff_w1"], p["ff_b1"] = lin(ks[16], ks[17], F, E)
    p["ff_w2"], p["ff_b2"] = lin(ks[18], ks[19], E, F)
    for name in ("ln1", "ln2", "ln3"):
        p[name + "_g"] = jnp.ones((1, E), jnp.float32)
        p[name + "_b"] = jnp.zeros((1, E), jnp.float32)
    return p


# ------------------------------------- main -------------------------------------
if __name__ == "__main__":
    NUM_LAYERS, B, S_TGT, S_MEM, E, H, FF = 2, 2, 8, 8, 32, 4, 64

    root = jax.random.PRNGKey(0)
    keys = jax.random.split(root, NUM_LAYERS + 2)

    layer_params = [init_layer_params(keys[i], E, FF) for i in range(NUM_LAYERS)]

    tgt = jax.random.normal(keys[NUM_LAYERS], (B, S_TGT, E), jnp.float32)
    memory = jax.random.normal(keys[NUM_LAYERS + 1], (B, S_MEM, E), jnp.float32)

    # Causal self-attention mask (True = masked), shared across the batch.
    causal = jnp.triu(jnp.ones((S_TGT, S_TGT), dtype=bool), k=1)
    tgt_mask = jnp.broadcast_to(causal[None], (B, S_TGT, S_TGT))

    # Padding mask on memory keys (True = masked position).
    lengths = jnp.array([S_MEM, 5], dtype=jnp.int32)
    k_idx = jnp.arange(S_MEM)[None, None, :]
    mem_mask = jnp.broadcast_to(k_idx >= lengths[:, None, None], (B, S_TGT, S_MEM))

    fwd = jax.jit(functools.partial(decoder_forward, nhead=H))
    out = jax.block_until_ready(fwd(layer_params, tgt, memory, tgt_mask, mem_mask))

    ref = reference_decoder(layer_params, tgt, memory, tgt_mask, mem_mask, H)
    assert out.shape == (B, S_TGT, E)
    assert jnp.allclose(out, ref, atol=5e-3, rtol=5e-3), (
        f"decoder output mismatch, max abs diff = {jnp.max(jnp.abs(out - ref))}")

    print("KERNEL_OK")
</pallas_src>

<mosaic_0001>
module attributes {stable_mosaic.version = 11 : i64} {
  func.func @_decoder_kernel(%arg0: i32, %arg1: memref<1x8x32xf32, #tpu.memory_space<vmem>>, %arg2: memref<1x8x32xf32, #tpu.memory_space<vmem>>, %arg3: memref<1x8x8xf32, #tpu.memory_space<vmem>>, %arg4: memref<1x8x8xf32, #tpu.memory_space<vmem>>, %arg5: memref<32x32xf32, #tpu.memory_space<vmem>>, %arg6: memref<1x32xf32, #tpu.memory_space<vmem>>, %arg7: memref<32x32xf32, #tpu.memory_space<vmem>>, %arg8: memref<1x32xf32, #tpu.memory_space<vmem>>, %arg9: memref<32x32xf32, #tpu.memory_space<vmem>>, %arg10: memref<1x32xf32, #tpu.memory_space<vmem>>, %arg11: memref<32x32xf32, #tpu.memory_space<vmem>>, %arg12: memref<1x32xf32, #tpu.memory_space<vmem>>, %arg13: memref<1x32xf32, #tpu.memory_space<vmem>>, %arg14: memref<1x32xf32, #tpu.memory_space<vmem>>, %arg15: memref<32x32xf32, #tpu.memory_space<vmem>>, %arg16: memref<1x32xf32, #tpu.memory_space<vmem>>, %arg17: memref<32x32xf32, #tpu.memory_space<vmem>>, %arg18: memref<1x32xf32, #tpu.memory_space<vmem>>, %arg19: memref<32x32xf32, #tpu.memory_space<vmem>>, %arg20: memref<1x32xf32, #tpu.memory_space<vmem>>, %arg21: memref<32x32xf32, #tpu.memory_space<vmem>>, %arg22: memref<1x32xf32, #tpu.memory_space<vmem>>, %arg23: memref<1x32xf32, #tpu.memory_space<vmem>>, %arg24: memref<1x32xf32, #tpu.memory_space<vmem>>, %arg25: memref<64x32xf32, #tpu.memory_space<vmem>>, %arg26: memref<1x64xf32, #tpu.memory_space<vmem>>, %arg27: memref<32x64xf32, #tpu.memory_space<vmem>>, %arg28: memref<1x32xf32, #tpu.memory_space<vmem>>, %arg29: memref<1x32xf32, #tpu.memory_space<vmem>>, %arg30: memref<1x32xf32, #tpu.memory_space<vmem>>, %arg31: memref<32x32xf32, #tpu.memory_space<vmem>>, %arg32: memref<1x32xf32, #tpu.memory_space<vmem>>, %arg33: memref<32x32xf32, #tpu.memory_space<vmem>>, %arg34: memref<1x32xf32, #tpu.memory_space<vmem>>, %arg35: memref<32x32xf32, #tpu.memory_space<vmem>>, %arg36: memref<1x32xf32, #tpu.memory_space<vmem>>, %arg37: memref<32x32xf32, #tpu.memory_space<vmem>>, %arg38: memref<1x32xf32, #tpu.memory_space<vmem>>, %arg39: memref<1x32xf32, #tpu.memory_space<vmem>>, %arg40: memref<1x32xf32, #tpu.memory_space<vmem>>, %arg41: memref<32x32xf32, #tpu.memory_space<vmem>>, %arg42: memref<1x32xf32, #tpu.memory_space<vmem>>, %arg43: memref<32x32xf32, #tpu.memory_space<vmem>>, %arg44: memref<1x32xf32, #tpu.memory_space<vmem>>, %arg45: memref<32x32xf32, #tpu.memory_space<vmem>>, %arg46: memref<1x32xf32, #tpu.memory_space<vmem>>, %arg47: memref<32x32xf32, #tpu.memory_space<vmem>>, %arg48: memref<1x32xf32, #tpu.memory_space<vmem>>, %arg49: memref<1x32xf32, #tpu.memory_space<vmem>>, %arg50: memref<1x32xf32, #tpu.memory_space<vmem>>, %arg51: memref<64x32xf32, #tpu.memory_space<vmem>>, %arg52: memref<1x64xf32, #tpu.memory_space<vmem>>, %arg53: memref<32x64xf32, #tpu.memory_space<vmem>>, %arg54: memref<1x32xf32, #tpu.memory_space<vmem>>, %arg55: memref<1x32xf32, #tpu.memory_space<vmem>>, %arg56: memref<1x32xf32, #tpu.memory_space<vmem>>, %arg57: memref<1x8x32xf32, #tpu.memory_space<vmem>>) attributes {dimension_semantics = [#tpu.dimension_semantics<parallel>], iteration_bounds = array<i64: 2>, scalar_prefetch = 0 : i64, scratch_operands = 0 : i64, tpu.core_type = #tpu.core_type<tc>, window_params = [{transform_indices = @transform_0, window_bounds = array<i64: 1, 8, 32>}, {transform_indices = @transform_1, window_bounds = array<i64: 1, 8, 32>}, {transform_indices = @transform_2, window_bounds = array<i64: 1, 8, 8>}, {transform_indices = @transform_3, window_bounds = array<i64: 1, 8, 8>}, {pipeline_mode = #tpu.pipeline_mode<synchronous>, transform_indices = @transform_4, window_bounds = array<i64: 32, 32>}, {pipeline_mode = #tpu.pipeline_mode<synchronous>, transform_indices = @transform_5, window_bounds = array<i64: 1, 32>}, {pipeline_mode = #tpu.pipeline_mode<synchronous>, transform_indices = @transform_6, window_bounds = array<i64: 32, 32>}, {pipeline_mode = #tpu.pipeline_mode<synchronous>, transform_indices = @transform_7, window_bounds = array<i64: 1, 32>}, {pipeline_mode = #tpu.pipeline_mode<synchronous>, transform_indices = @transform_8, window_bounds = array<i64: 32, 32>}, {pipeline_mode = #tpu.pipeline_mode<synchronous>, transform_indices = @transform_9, window_bounds = array<i64: 1, 32>}, {pipeline_mode = #tpu.pipeline_mode<synchronous>, transform_indices = @transform_10, window_bounds = array<i64: 32, 32>}, {pipeline_mode = #tpu.pipeline_mode<synchronous>, transform_indices = @transform_11, window_bounds = array<i64: 1, 32>}, {pipeline_mode = #tpu.pipeline_mode<synchronous>, transform_indices = @transform_12, window_bounds = array<i64: 1, 32>}, {pipeline_mode = #tpu.pipeline_mode<synchronous>, transform_indices = @transform_13, window_bounds = array<i64: 1, 32>}, {pipeline_mode = #tpu.pipeline_mode<synchronous>, transform_indices = @transform_14, window_bounds = array<i64: 32, 32>}, {pipeline_mode = #tpu.pipeline_mode<synchronous>, transform_indices = @transform_15, window_bounds = array<i64: 1, 32>}, {pipeline_mode = #tpu.pipeline_mode<synchronous>, transform_indices = @transform_16, window_bounds = array<i64: 32, 32>}, {pipeline_mode = #tpu.pipeline_mode<synchronous>, transform_indices = @transform_17, window_bounds = array<i64: 1, 32>}, {pipeline_mode = #tpu.pipeline_mode<synchronous>, transform_indices = @transform_18, window_bounds = array<i64: 32, 32>}, {pipeline_mode = #tpu.pipeline_mode<synchronous>, transform_indices = @transform_19, window_bounds = array<i64: 1, 32>}, {pipeline_mode = #tpu.pipeline_mode<synchronous>, transform_indices = @transform_20, window_bounds = array<i64: 32, 32>}, {pipeline_mode = #tpu.pipeline_mode<synchronous>, transform_indices = @transform_21, window_bounds = array<i64: 1, 32>}, {pipeline_mode = #tpu.pipeline_mode<synchronous>, transform_indices = @transform_22, window_bounds = array<i64: 1, 32>}, {pipeline_mode = #tpu.pipeline_mode<synchronous>, transform_indices = @transform_23, window_bounds = array<i64: 1, 32>}, {pipeline_mode = #tpu.pipeline_mode<synchronous>, transform_indices = @transform_24, window_bounds = array<i64: 64, 32>}, {pipeline_mode = #tpu.pipeline_mode<synchronous>, transform_indices = @transform_25, window_bounds = array<i64: 1, 64>}, {pipeline_mode = #tpu.pipeline_mode<synchronous>, transform_indices = @transform_26, window_bounds = array<i64: 32, 64>}, {pipeline_mode = #tpu.pipeline_mode<synchronous>, transform_indices = @transform_27, window_bounds = array<i64: 1, 32>}, {pipeline_mode = #tpu.pipeline_mode<synchronous>, transform_indices = @transform_28, window_bounds = array<i64: 1, 32>}, {pipeline_mode = #tpu.pipeline_mode<synchronous>, transform_indices = @transform_29, window_bounds = array<i64: 1, 32>}, {pipeline_mode = #tpu.pipeline_mode<synchronous>, transform_indices = @transform_30, window_bounds = array<i64: 32, 32>}, {pipeline_mode = #tpu.pipeline_mode<synchronous>, transform_indices = @transform_31, window_bounds = array<i64: 1, 32>}, {pipeline_mode = #tpu.pipeline_mode<synchronous>, transform_indices = @transform_32, window_bounds = array<i64: 32, 32>}, {pipeline_mode = #tpu.pipeline_mode<synchronous>, transform_indices = @transform_33, window_bounds = array<i64: 1, 32>}, {pipeline_mode = #tpu.pipeline_mode<synchronous>, transform_indices = @transform_34, window_bounds = array<i64: 32, 32>}, {pipeline_mode = #tpu.pipeline_mode<synchronous>, transform_indices = @transform_35, window_bounds = array<i64: 1, 32>}, {pipeline_mode = #tpu.pipeline_mode<synchronous>, transform_indices = @transform_36, window_bounds = array<i64: 32, 32>}, {pipeline_mode = #tpu.pipeline_mode<synchronous>, transform_indices = @transform_37, window_bounds = array<i64: 1, 32>}, {pipeline_mode = #tpu.pipeline_mode<synchronous>, transform_indices = @transform_38, window_bounds = array<i64: 1, 32>}, {pipeline_mode = #tpu.pipeline_mode<synchronous>, transform_indices = @transform_39, window_bounds = array<i64: 1, 32>}, {pipeline_mode = #tpu.pipeline_mode<synchronous>, transform_indices = @transform_40, window_bounds = array<i64: 32, 32>}, {pipeline_mode = #tpu.pipeline_mode<synchronous>, transform_indices = @transform_41, window_bounds = array<i64: 1, 32>}, {pipeline_mode = #tpu.pipeline_mode<synchronous>, transform_indices = @transform_42, window_bounds = array<i64: 32, 32>}, {pipeline_mode = #tpu.pipeline_mode<synchronous>, transform_indices = @transform_43, window_bounds = array<i64: 1, 32>}, {pipeline_mode = #tpu.pipeline_mode<synchronous>, transform_indices = @transform_44, window_bounds = array<i64: 32, 32>}, {pipeline_mode = #tpu.pipeline_mode<synchronous>, transform_indices = @transform_45, window_bounds = array<i64: 1, 32>}, {pipeline_mode = #tpu.pipeline_mode<synchronous>, transform_indices = @transform_46, window_bounds = array<i64: 32, 32>}, {pipeline_mode = #tpu.pipeline_mode<synchronous>, transform_indices = @transform_47, window_bounds = array<i64: 1, 32>}, {pipeline_mode = #tpu.pipeline_mode<synchronous>, transform_indices = @transform_48, window_bounds = array<i64: 1, 32>}, {pipeline_mode = #tpu.pipeline_mode<synchronous>, transform_indices = @transform_49, window_bounds = array<i64: 1, 32>}, {pipeline_mode = #tpu.pipeline_mode<synchronous>, transform_indices = @transform_50, window_bounds = array<i64: 64, 32>}, {pipeline_mode = #tpu.pipeline_mode<synchronous>, transform_indices = @transform_51, window_bounds = array<i64: 1, 64>}, {pipeline_mode = #tpu.pipeline_mode<synchronous>, transform_indices = @transform_52, window_bounds = array<i64: 32, 64>}, {pipeline_mode = #tpu.pipeline_mode<synchronous>, transform_indices = @transform_53, window_bounds = array<i64: 1, 32>}, {pipeline_mode = #tpu.pipeline_mode<synchronous>, transform_indices = @transform_54, window_bounds = array<i64: 1, 32>}, {pipeline_mode = #tpu.pipeline_mode<synchronous>, transform_indices = @transform_55, window_bounds = array<i64: 1, 32>}, {transform_indices = @transform_56, window_bounds = array<i64: 1, 8, 32>}]} {
    %c0 = arith.constant 0 : index
    %c0_0 = arith.constant 0 : index
    %c0_1 = arith.constant 0 : index
    %0 = vector.load %arg1[%c0, %c0_0, %c0_1] : memref<1x8x32xf32, #tpu.memory_space<vmem>>, vector<1x8x32xf32>
    %1 = vector.shape_cast %0 : vector<1x8x32xf32> to vector<8x32xf32>
    %c0_2 = arith.constant 0 : index
    %c0_3 = arith.constant 0 : index
    %c0_4 = arith.constant 0 : index
    %2 = vector.load %arg2[%c0_2, %c0_3, %c0_4] : memref<1x8x32xf32, #tpu.memory_space<vmem>>, vector<1x8x32xf32>
    %3 = vector.shape_cast %2 : vector<1x8x32xf32> to vector<8x32xf32>
    %c0_5 = arith.constant 0 : index
    %c0_6 = arith.constant 0 : index
    %c0_7 = arith.constant 0 : index
    %4 = vector.load %arg3[%c0_5, %c0_6, %c0_7] : memref<1x8x8xf32, #tpu.memory_space<vmem>>, vector<1x8x8xf32>
    %5 = vector.shape_cast %4 : vector<1x8x8xf32> to vector<8x8xf32>
    %c0_8 = arith.constant 0 : index
    %c0_9 = arith.constant 0 : index
    %c0_10 = arith.constant 0 : index
    %6 = vector.load %arg4[%c0_8, %c0_9, %c0_10] : memref<1x8x8xf32, #tpu.memory_space<vmem>>, vector<1x8x8xf32>
    %7 = vector.shape_cast %6 : vector<1x8x8xf32> to vector<8x8xf32>
    %c0_11 = arith.constant 0 : index
    %c0_12 = arith.constant 0 : index
    %8 = vector.load %arg5[%c0_11, %c0_12] : memref<32x32xf32, #tpu.memory_space<vmem>>, vector<32x32xf32>
    %c0_13 = arith.constant 0 : index
    %c0_14 = arith.constant 0 : index
    %9 = vector.load %arg6[%c0_13, %c0_14] : memref<1x32xf32, #tpu.memory_space<vmem>>, vector<1x32xf32>
    %c0_15 = arith.constant 0 : index
    %c0_16 = arith.constant 0 : index
    %10 = vector.load %arg7[%c0_15, %c0_16] : memref<32x32xf32, #tpu.memory_space<vmem>>, vector<32x32xf32>
    %c0_17 = arith.constant 0 : index
    %c0_18 = arith.constant 0 : index
    %11 = vector.load %arg8[%c0_17, %c0_18] : memref<1x32xf32, #tpu.memory_space<vmem>>, vector<1x32xf32>
    %c0_19 = arith.constant 0 : index
    %c0_20 = arith.constant 0 : index
    %12 = vector.load %arg9[%c0_19, %c0_20] : memref<32x32xf32, #tpu.memory_space<vmem>>, vector<32x32xf32>
    %c0_21 = arith.constant 0 : index
    %c0_22 = arith.constant 0 : index
    %13 = vector.load %arg10[%c0_21, %c0_22] : memref<1x32xf32, #tpu.memory_space<vmem>>, vector<1x32xf32>
    %c0_23 = arith.constant 0 : index
    %c0_24 = arith.constant 0 : index
    %14 = vector.load %arg11[%c0_23, %c0_24] : memref<32x32xf32, #tpu.memory_space<vmem>>, vector<32x32xf32>
    %c0_25 = arith.constant 0 : index
    %c0_26 = arith.constant 0 : index
    %15 = vector.load %arg12[%c0_25, %c0_26] : memref<1x32xf32, #tpu.memory_space<vmem>>, vector<1x32xf32>
    %c0_27 = arith.constant 0 : index
    %c0_28 = arith.constant 0 : index
    %16 = vector.load %arg13[%c0_27, %c0_28] : memref<1x32xf32, #tpu.memory_space<vmem>>, vector<1x32xf32>
    %c0_29 = arith.constant 0 : index
    %c0_30 = arith.constant 0 : index
    %17 = vector.load %arg14[%c0_29, %c0_30] : memref<1x32xf32, #tpu.memory_space<vmem>>, vector<1x32xf32>
    %c0_31 = arith.constant 0 : index
    %c0_32 = arith.constant 0 : index
    %18 = vector.load %arg15[%c0_31, %c0_32] : memref<32x32xf32, #tpu.memory_space<vmem>>, vector<32x32xf32>
    %c0_33 = arith.constant 0 : index
    %c0_34 = arith.constant 0 : index
    %19 = vector.load %arg16[%c0_33, %c0_34] : memref<1x32xf32, #tpu.memory_space<vmem>>, vector<1x32xf32>
    %c0_35 = arith.constant 0 : index
    %c0_36 = arith.constant 0 : index
    %20 = vector.load %arg17[%c0_35, %c0_36] : memref<32x32xf32, #tpu.memory_space<vmem>>, vector<32x32xf32>
    %c0_37 = arith.constant 0 : index
    %c0_38 = arith.constant 0 : index
    %21 = vector.load %arg18[%c0_37, %c0_38] : memref<1x32xf32, #tpu.memory_space<vmem>>, vector<1x32xf32>
    %c0_39 = arith.constant 0 : index
    %c0_40 = arith.constant 0 : index
    %22 = vector.load %arg19[%c0_39, %c0_40] : memref<32x32xf32, #tpu.memory_space<vmem>>, vector<32x32xf32>
    %c0_41 = arith.constant 0 : index
    %c0_42 = arith.constant 0 : index
    %23 = vector.load %arg20[%c0_41, %c0_42] : memref<1x32xf32, #tpu.memory_space<vmem>>, vector<1x32xf32>
    %c0_43 = arith.constant 0 : index
    %c0_44 = arith.constant 0 : index
    %24 = vector.load %arg21[%c0_43, %c0_44] : memref<32x32xf32, #tpu.memory_space<vmem>>, vector<32x32xf32>
    %c0_45 = arith.constant 0 : index
    %c0_46 = arith.constant 0 : index
    %25 = vector.load %arg22[%c0_45, %c0_46] : memref<1x32xf32, #tpu.memory_space<vmem>>, vector<1x32xf32>
    %c0_47 = arith.constant 0 : index
    %c0_48 = arith.constant 0 : index
    %26 = vector.load %arg23[%c0_47, %c0_48] : memref<1x32xf32, #tpu.memory_space<vmem>>, vector<1x32xf32>
    %c0_49 = arith.constant 0 : index
    %c0_50 = arith.constant 0 : index
    %27 = vector.load %arg24[%c0_49, %c0_50] : memref<1x32xf32, #tpu.memory_space<vmem>>, vector<1x32xf32>
    %c0_51 = arith.constant 0 : index
    %c0_52 = arith.constant 0 : index
    %28 = vector.load %arg25[%c0_51, %c0_52] : memref<64x32xf32, #tpu.memory_space<vmem>>, vector<64x32xf32>
    %c0_53 = arith.constant 0 : index
    %c0_54 = arith.constant 0 : index
    %29 = vector.load %arg26[%c0_53, %c0_54] : memref<1x64xf32, #tpu.memory_space<vmem>>, vector<1x64xf32>
    %c0_55 = arith.constant 0 : index
    %c0_56 = arith.constant 0 : index
    %30 = vector.load %arg27[%c0_55, %c0_56] : memref<32x64xf32, #tpu.memory_space<vmem>>, vector<32x64xf32>
    %c0_57 = arith.constant 0 : index
    %c0_58 = arith.constant 0 : index
    %31 = vector.load %arg28[%c0_57, %c0_58] : memref<1x32xf32, #tpu.memory_space<vmem>>, vector<1x32xf32>
    %c0_59 = arith.constant 0 : index
    %c0_60 = arith.constant 0 : index
    %32 = vector.load %arg29[%c0_59, %c0_60] : memref<1x32xf32, #tpu.memory_space<vmem>>, vector<1x32xf32>
    %c0_61 = arith.constant 0 : index
    %c0_62 = arith.constant 0 : index
    %33 = vector.load %arg30[%c0_61, %c0_62] : memref<1x32xf32, #tpu.memory_space<vmem>>, vector<1x32xf32>
    %cst = arith.constant dense<0.000000e+00> : vector<8x32xf32>
    %34 = tpu.matmul %1, %8, %cst {dimension_numbers = #tpu.dot_dimension_numbers<[1], [1], [0], [0], [0, 0, 1, 0], [], []>} : vector<8x32xf32>, vector<32x32xf32>, vector<8x32xf32> -> vector<8x32xf32>
    %35 = vector.broadcast %9 : vector<1x32xf32> to vector<8x32xf32>
    %36 = arith.addf %34, %35 : vector<8x32xf32>
    %cst_63 = arith.constant dense<0.000000e+00> : vector<8x32xf32>
    %37 = tpu.matmul %1, %10, %cst_63 {dimension_numbers = #tpu.dot_dimension_numbers<[1], [1], [0], [0], [0, 0, 1, 0], [], []>} : vector<8x32xf32>, vector<32x32xf32>, vector<8x32xf32> -> vector<8x32xf32>
    %38 = vector.broadcast %11 : vector<1x32xf32> to vector<8x32xf32>
    %39 = arith.addf %37, %38 : vector<8x32xf32>
    %cst_64 = arith.constant dense<0.000000e+00> : vector<8x32xf32>
    %40 = tpu.matmul %1, %12, %cst_64 {dimension_numbers = #tpu.dot_dimension_numbers<[1], [1], [0], [0], [0, 0, 1, 0], [], []>} : vector<8x32xf32>, vector<32x32xf32>, vector<8x32xf32> -> vector<8x32xf32>
    %41 = vector.broadcast %13 : vector<1x32xf32> to vector<8x32xf32>
    %42 = arith.addf %40, %41 : vector<8x32xf32>
    %43 = vector.extract_strided_slice %36 {offsets = [0, 0], sizes = [8, 8], strides = [1, 1]} : vector<8x32xf32> to vector<8x8xf32>
    %44 = vector.extract_strided_slice %39 {offsets = [0, 0], sizes = [8, 8], strides = [1, 1]} : vector<8x32xf32> to vector<8x8xf32>
    %45 = vector.extract_strided_slice %42 {offsets = [0, 0], sizes = [8, 8], strides = [1, 1]} : vector<8x32xf32> to vector<8x8xf32>
    %cst_65 = arith.constant dense<0.000000e+00> : vector<8x8xf32>
    %46 = tpu.matmul %43, %44, %cst_65 {dimension_numbers = #tpu.dot_dimension_numbers<[1], [1], [0], [0], [0, 0, 1, 0], [], []>} : vector<8x8xf32>, vector<8x8xf32>, vector<8x8xf32> -> vector<8x8xf32>
    %cst_66 = arith.constant 0.353553385 : f32
    %47 = vector.broadcast %cst_66 : f32 to vector<8x8xf32>
    %48 = arith.mulf %46, %47 : vector<8x8xf32>
    %49 = arith.addf %48, %5 : vector<8x8xf32>
    %cst_67 = arith.constant dense<0xFF800000> : vector<8xf32>
    %50 = vector.multi_reduction <maximumf>, %49, %cst_67 [1] : vector<8x8xf32> to vector<8xf32>
    %51 = vector.shape_cast %50 : vector<8xf32> to vector<8x1xf32>
    %52 = vector.broadcast %51 : vector<8x1xf32> to vector<8x8xf32>
    %53 = arith.subf %49, %52 : vector<8x8xf32>
    %54 = math.exp %53 : vector<8x8xf32>
    %cst_68 = arith.constant dense<0.000000e+00> : vector<8xf32>
    %55 = vector.multi_reduction <add>, %54, %cst_68 [1] : vector<8x8xf32> to vector<8xf32>
    %56 = vector.shape_cast %55 : vector<8xf32> to vector<8x1xf32>
    %57 = tpu.reciprocal %56 {approx = true} : vector<8x1xf32> -> vector<8x1xf32>
    %58 = vector.broadcast %57 : vector<8x1xf32> to vector<8x8xf32>
    %59 = arith.mulf %54, %58 : vector<8x8xf32>
    %cst_69 = arith.constant dense<0.000000e+00> : vector<8x8xf32>
    %60 = tpu.matmul %59, %45, %cst_69 {dimension_numbers = #tpu.dot_dimension_numbers<[1], [0], [0], [1], [0, 0, 1, 1], [], []>} : vector<8x8xf32>, vector<8x8xf32>, vector<8x8xf32> -> vector<8x8xf32>
    %61 = vector.extract_strided_slice %14 {offsets = [0, 0], sizes = [32, 8], strides = [1, 1]} : vector<32x32xf32> to vector<32x8xf32>
    %cst_70 = arith.constant dense<0.000000e+00> : vector<8x32xf32>
    %62 = tpu.matmul %60, %61, %cst_70 {dimension_numbers = #tpu.dot_dimension_numbers<[1], [1], [0], [0], [0, 0, 1, 0], [], []>} : vector<8x8xf32>, vector<32x8xf32>, vector<8x32xf32> -> vector<8x32xf32>
    %63 = vector.extract_strided_slice %36 {offsets = [0, 8], sizes = [8, 8], strides = [1, 1]} : vector<8x32xf32> to vector<8x8xf32>
    %64 = vector.extract_strided_slice %39 {offsets = [0, 8], sizes = [8, 8], strides = [1, 1]} : vector<8x32xf32> to vector<8x8xf32>
    %65 = vector.extract_strided_slice %42 {offsets = [0, 8], sizes = [8, 8], strides = [1, 1]} : vector<8x32xf32> to vector<8x8xf32>
    %cst_71 = arith.constant dense<0.000000e+00> : vector<8x8xf32>
    %66 = tpu.matmul %63, %64, %cst_71 {dimension_numbers = #tpu.dot_dimension_numbers<[1], [1], [0], [0], [0, 0, 1, 0], [], []>} : vector<8x8xf32>, vector<8x8xf32>, vector<8x8xf32> -> vector<8x8xf32>
    %cst_72 = arith.constant 0.353553385 : f32
    %67 = vector.broadcast %cst_72 : f32 to vector<8x8xf32>
    %68 = arith.mulf %66, %67 : vector<8x8xf32>
    %69 = arith.addf %68, %5 : vector<8x8xf32>
    %cst_73 = arith.constant dense<0xFF800000> : vector<8xf32>
    %70 = vector.multi_reduction <maximumf>, %69, %cst_73 [1] : vector<8x8xf32> to vector<8xf32>
    %71 = vector.shape_cast %70 : vector<8xf32> to vector<8x1xf32>
    %72 = vector.broadcast %71 : vector<8x1xf32> to vector<8x8xf32>
    %73 = arith.subf %69, %72 : vector<8x8xf32>
    %74 = math.exp %73 : vector<8x8xf32>
    %cst_74 = arith.constant dense<0.000000e+00> : vector<8xf32>
    %75 = vector.multi_reduction <add>, %74, %cst_74 [1] : vector<8x8xf32> to vector<8xf32>
    %76 = vector.shape_cast %75 : vector<8xf32> to vector<8x1xf32>
    %77 = tpu.reciprocal %76 {approx = true} : vector<8x1xf32> -> vector<8x1xf32>
    %78 = vector.broadcast %77 : vector<8x1xf32> to vector<8x8xf32>
    %79 = arith.mulf %74, %78 : vector<8x8xf32>
    %cst_75 = arith.constant dense<0.000000e+00> : vector<8x8xf32>
    %80 = tpu.matmul %79, %65, %cst_75 {dimension_numbers = #tpu.dot_dimension_numbers<[1], [0], [0], [1], [0, 0, 1, 1], [], []>} : vector<8x8xf32>, vector<8x8xf32>, vector<8x8xf32> -> vector<8x8xf32>
    %81 = vector.extract_strided_slice %14 {offsets = [0, 8], sizes = [32, 8], strides = [1, 1]} : vector<32x32xf32> to vector<32x8xf32>
    %cst_76 = arith.constant dense<0.000000e+00> : vector<8x32xf32>
    %82 = tpu.matmul %80, %81, %cst_76 {dimension_numbers = #tpu.dot_dimension_numbers<[1], [1], [0], [0], [0, 0, 1, 0], [], []>} : vector<8x8xf32>, vector<32x8xf32>, vector<8x32xf32> -> vector<8x32xf32>
    %83 = arith.addf %62, %82 : vector<8x32xf32>
    %84 = vector.extract_strided_slice %36 {offsets = [0, 16], sizes = [8, 8], strides = [1, 1]} : vector<8x32xf32> to vector<8x8xf32>
    %85 = vector.extract_strided_slice %39 {offsets = [0, 16], sizes = [8, 8], strides = [1, 1]} : vector<8x32xf32> to vector<8x8xf32>
    %86 = vector.extract_strided_slice %42 {offsets = [0, 16], sizes = [8, 8], strides = [1, 1]} : vector<8x32xf32> to vector<8x8xf32>
    %cst_77 = arith.constant dense<0.000000e+00> : vector<8x8xf32>
    %87 = tpu.matmul %84, %85, %cst_77 {dimension_numbers = #tpu.dot_dimension_numbers<[1], [1], [0], [0], [0, 0, 1, 0], [], []>} : vector<8x8xf32>, vector<8x8xf32>, vector<8x8xf32> -> vector<8x8xf32>
    %cst_78 = arith.constant 0.353553385 : f32
    %88 = vector.broadcast %cst_78 : f32 to vector<8x8xf32>
    %89 = arith.mulf %87, %88 : vector<8x8xf32>
    %90 = arith.addf %89, %5 : vector<8x8xf32>
    %cst_79 = arith.constant dense<0xFF800000> : vector<8xf32>
    %91 = vector.multi_reduction <maximumf>, %90, %cst_79 [1] : vector<8x8xf32> to vector<8xf32>
    %92 = vector.shape_cast %91 : vector<8xf32> to vector<8x1xf32>
    %93 = vector.broadcast %92 : vector<8x1xf32> to vector<8x8xf32>
    %94 = arith.subf %90, %93 : vector<8x8xf32>
    %95 = math.exp %94 : vector<8x8xf32>
    %cst_80 = arith.constant dense<0.000000e+00> : vector<8xf32>
    %96 = vector.multi_reduction <add>, %95, %cst_80 [1] : vector<8x8xf32> to vector<8xf32>
    %97 = vector.shape_cast %96 : vector<8xf32> to vector<8x1xf32>
    %98 = tpu.reciprocal %97 {approx = true} : vector<8x1xf32> -> vector<8x1xf32>
    %99 = vector.broadcast %98 : vector<8x1xf32> to vector<8x8xf32>
    %100 = arith.mulf %95, %99 : vector<8x8xf32>
    %cst_81 = arith.constant dense<0.000000e+00> : vector<8x8xf32>
    %101 = tpu.matmul %100, %86, %cst_81 {dimension_numbers = #tpu.dot_dimension_numbers<[1], [0], [0], [1], [0, 0, 1, 1], [], []>} : vector<8x8xf32>, vector<8x8xf32>, vector<8x8xf32> -> vector<8x8xf32>
    %102 = vector.extract_strided_slice %14 {offsets = [0, 16], sizes = [32, 8], strides = [1, 1]} : vector<32x32xf32> to vector<32x8xf32>
    %cst_82 = arith.constant dense<0.000000e+00> : vector<8x32xf32>
    %103 = tpu.matmul %101, %102, %cst_82 {dimension_numbers = #tpu.dot_dimension_numbers<[1], [1], [0], [0], [0, 0, 1, 0], [], []>} : vector<8x8xf32>, vector<32x8xf32>, vector<8x32xf32> -> vector<8x32xf32>
    %104 = arith.addf %83, %103 : vector<8x32xf32>
    %105 = vector.extract_strided_slice %36 {offsets = [0, 24], sizes = [8, 8], strides = [1, 1]} : vector<8x32xf32> to vector<8x8xf32>
    %106 = vector.extract_strided_slice %39 {offsets = [0, 24], sizes = [8, 8], strides = [1, 1]} : vector<8x32xf32> to vector<8x8xf32>
    %107 = vector.extract_strided_slice %42 {offsets = [0, 24], sizes = [8, 8], strides = [1, 1]} : vector<8x32xf32> to vector<8x8xf32>
    %cst_83 = arith.constant dense<0.000000e+00> : vector<8x8xf32>
    %108 = tpu.matmul %105, %106, %cst_83 {dimension_numbers = #tpu.dot_dimension_numbers<[1], [1], [0], [0], [0, 0, 1, 0], [], []>} : vector<8x8xf32>, vector<8x8xf32>, vector<8x8xf32> -> vector<8x8xf32>
    %cst_84 = arith.constant 0.353553385 : f32
    %109 = vector.broadcast %cst_84 : f32 to vector<8x8xf32>
    %110 = arith.mulf %108, %109 : vector<8x8xf32>
    %111 = arith.addf %110, %5 : vector<8x8xf32>
    %cst_85 = arith.constant dense<0xFF800000> : vector<8xf32>
    %112 = vector.multi_reduction <maximumf>, %111, %cst_85 [1] : vector<8x8xf32> to vector<8xf32>
    %113 = vector.shape_cast %112 : vector<8xf32> to vector<8x1xf32>
    %114 = vector.broadcast %113 : vector<8x1xf32> to vector<8x8xf32>
    %115 = arith.subf %111, %114 : vector<8x8xf32>
    %116 = math.exp %115 : vector<8x8xf32>
    %cst_86 = arith.constant dense<0.000000e+00> : vector<8xf32>
    %117 = vector.multi_reduction <add>, %116, %cst_86 [1] : vector<8x8xf32> to vector<8xf32>
    %118 = vector.shape_cast %117 : vector<8xf32> to vector<8x1xf32>
    %119 = tpu.reciprocal %118 {approx = true} : vector<8x1xf32> -> vector<8x1xf32>
    %120 = vector.broadcast %119 : vector<8x1xf32> to vector<8x8xf32>
    %121 = arith.mulf %116, %120 : vector<8x8xf32>
    %cst_87 = arith.constant dense<0.000000e+00> : vector<8x8xf32>
    %122 = tpu.matmul %121, %107, %cst_87 {dimension_numbers = #tpu.dot_dimension_numbers<[1], [0], [0], [1], [0, 0, 1, 1], [], []>} : vector<8x8xf32>, vector<8x8xf32>, vector<8x8xf32> -> vector<8x8xf32>
    %123 = vector.extract_strided_slice %14 {offsets = [0, 24], sizes = [32, 8], strides = [1, 1]} : vector<32x32xf32> to vector<32x8xf32>
    %cst_88 = arith.constant dense<0.000000e+00> : vector<8x32xf32>
    %124 = tpu.matmul %122, %123, %cst_88 {dimension_numbers = #tpu.dot_dimension_numbers<[1], [1], [0], [0], [0, 0, 1, 0], [], []>} : vector<8x8xf32>, vector<32x8xf32>, vector<8x32xf32> -> vector<8x32xf32>
    %125 = arith.addf %104, %124 : vector<8x32xf32>
    %126 = vector.broadcast %15 : vector<1x32xf32> to vector<8x32xf32>
    %127 = arith.addf %125, %126 : vector<8x32xf32>
    %128 = arith.addf %1, %127 : vector<8x32xf32>
    %cst_89 = arith.constant dense<0.000000e+00> : vector<8xf32>
    %129 = vector.multi_reduction <add>, %128, %cst_89 [1] : vector<8x32xf32> to vector<8xf32>
    %130 = vector.shape_cast %129 : vector<8xf32> to vector<8x1xf32>
    %cst_90 = arith.constant 3.200000e+01 : f32
    %131 = vector.broadcast %cst_90 : f32 to vector<8x1xf32>
    %132 = arith.divf %130, %131 : vector<8x1xf32>
    %133 = vector.broadcast %132 : vector<8x1xf32> to vector<8x32xf32>
    %134 = arith.subf %128, %133 : vector<8x32xf32>
    %135 = arith.mulf %134, %134 : vector<8x32xf32>
    %cst_91 = arith.constant dense<0.000000e+00> : vector<8xf32>
    %136 = vector.multi_reduction <add>, %135, %cst_91 [1] : vector<8x32xf32> to vector<8xf32>
    %137 = vector.shape_cast %136 : vector<8xf32> to vector<8x1xf32>
    %cst_92 = arith.constant 3.200000e+01 : f32
    %138 = vector.broadcast %cst_92 : f32 to vector<8x1xf32>
    %139 = arith.divf %137, %138 : vector<8x1xf32>
    %cst_93 = arith.constant 9.99999974E-6 : f32
    %140 = vector.broadcast %cst_93 : f32 to vector<8x1xf32>
    %141 = arith.addf %139, %140 : vector<8x1xf32>
    %142 = math.rsqrt %141 : vector<8x1xf32>
    %143 = vector.broadcast %142 : vector<8x1xf32> to vector<8x32xf32>
    %144 = arith.mulf %134, %143 : vector<8x32xf32>
    %145 = vector.broadcast %16 : vector<1x32xf32> to vector<8x32xf32>
    %146 = arith.mulf %144, %145 : vector<8x32xf32>
    %147 = vector.broadcast %17 : vector<1x32xf32> to vector<8x32xf32>
    %148 = arith.addf %146, %147 : vector<8x32xf32>
    %cst_94 = arith.constant dense<0.000000e+00> : vector<8x32xf32>
    %149 = tpu.matmul %148, %18, %cst_94 {dimension_numbers = #tpu.dot_dimension_numbers<[1], [1], [0], [0], [0, 0, 1, 0], [], []>} : vector<8x32xf32>, vector<32x32xf32>, vector<8x32xf32> -> vector<8x32xf32>
    %150 = vector.broadcast %19 : vector<1x32xf32> to vector<8x32xf32>
    %151 = arith.addf %149, %150 : vector<8x32xf32>
    %cst_95 = arith.constant dense<0.000000e+00> : vector<8x32xf32>
    %152 = tpu.matmul %3, %20, %cst_95 {dimension_numbers = #tpu.dot_dimension_numbers<[1], [1], [0], [0], [0, 0, 1, 0], [], []>} : vector<8x32xf32>, vector<32x32xf32>, vector<8x32xf32> -> vector<8x32xf32>
    %153 = vector.broadcast %21 : vector<1x32xf32> to vector<8x32xf32>
    %154 = arith.addf %152, %153 : vector<8x32xf32>
    %cst_96 = arith.constant dense<0.000000e+00> : vector<8x32xf32>
    %155 = tpu.matmul %3, %22, %cst_96 {dimension_numbers = #tpu.dot_dimension_numbers<[1], [1], [0], [0], [0, 0, 1, 0], [], []>} : vector<8x32xf32>, vector<32x32xf32>, vector<8x32xf32> -> vector<8x32xf32>
    %156 = vector.broadcast %23 : vector<1x32xf32> to vector<8x32xf32>
    %157 = arith.addf %155, %156 : vector<8x32xf32>
    %158 = vector.extract_strided_slice %151 {offsets = [0, 0], sizes = [8, 8], strides = [1, 1]} : vector<8x32xf32> to vector<8x8xf32>
    %159 = vector.extract_strided_slice %154 {offsets = [0, 0], sizes = [8, 8], strides = [1, 1]} : vector<8x32xf32> to vector<8x8xf32>
    %160 = vector.extract_strided_slice %157 {offsets = [0, 0], sizes = [8, 8], strides = [1, 1]} : vector<8x32xf32> to vector<8x8xf32>
    %cst_97 = arith.constant dense<0.000000e+00> : vector<8x8xf32>
    %161 = tpu.matmul %158, %159, %cst_97 {dimension_numbers = #tpu.dot_dimension_numbers<[1], [1], [0], [0], [0, 0, 1, 0], [], []>} : vector<8x8xf32>, vector<8x8xf32>, vector<8x8xf32> -> vector<8x8xf32>
    %cst_98 = arith.constant 0.353553385 : f32
    %162 = vector.broadcast %cst_98 : f32 to vector<8x8xf32>
    %163 = arith.mulf %161, %162 : vector<8x8xf32>
    %164 = arith.addf %163, %7 : vector<8x8xf32>
    %cst_99 = arith.constant dense<0xFF800000> : vector<8xf32>
    %165 = vector.multi_reduction <maximumf>, %164, %cst_99 [1] : vector<8x8xf32> to vector<8xf32>
    %166 = vector.shape_cast %165 : vector<8xf32> to vector<8x1xf32>
    %167 = vector.broadcast %166 : vector<8x1xf32> to vector<8x8xf32>
    %168 = arith.subf %164, %167 : vector<8x8xf32>
    %169 = math.exp %168 : vector<8x8xf32>
    %cst_100 = arith.constant dense<0.000000e+00> : vector<8xf32>
    %170 = vector.multi_reduction <add>, %169, %cst_100 [1] : vector<8x8xf32> to vector<8xf32>
    %171 = vector.shape_cast %170 : vector<8xf32> to vector<8x1xf32>
    %172 = tpu.reciprocal %171 {approx = true} : vector<8x1xf32> -> vector<8x1xf32>
    %173 = vector.broadcast %172 : vector<8x1xf32> to vector<8x8xf32>
    %174 = arith.mulf %169, %173 : vector<8x8xf32>
    %cst_101 = arith.constant dense<0.000000e+00> : vector<8x8xf32>
    %175 = tpu.matmul %174, %160, %cst_101 {dimension_numbers = #tpu.dot_dimension_numbers<[1], [0], [0], [1], [0, 0, 1, 1], [], []>} : vector<8x8xf32>, vector<8x8xf32>, vector<8x8xf32> -> vector<8x8xf32>
    %176 = vector.extract_strided_slice %24 {offsets = [0, 0], sizes = [32, 8], strides = [1, 1]} : vector<32x32xf32> to vector<32x8xf32>
    %cst_102 = arith.constant dense<0.000000e+00> : vector<8x32xf32>
    %177 = tpu.matmul %175, %176, %cst_102 {dimension_numbers = #tpu.dot_dimension_numbers<[1], [1], [0], [0], [0, 0, 1, 0], [], []>} : vector<8x8xf32>, vector<32x8xf32>, vector<8x32xf32> -> vector<8x32xf32>
    %178 = vector.extract_strided_slice %151 {offsets = [0, 8], sizes = [8, 8], strides = [1, 1]} : vector<8x32xf32> to vector<8x8xf32>
    %179 = vector.extract_strided_slice %154 {offsets = [0, 8], sizes = [8, 8], strides = [1, 1]} : vector<8x32xf32> to vector<8x8xf32>
    %180 = vector.extract_strided_slice %157 {offsets = [0, 8], sizes = [8, 8], strides = [1, 1]} : vector<8x32xf32> to vector<8x8xf32>
    %cst_103 = arith.constant dense<0.000000e+00> : vector<8x8xf32>
    %181 = tpu.matmul %178, %179, %cst_103 {dimension_numbers = #tpu.dot_dimension_numbers<[1], [1], [0], [0], [0, 0, 1, 0], [], []>} : vector<8x8xf32>, vector<8x8xf32>, vector<8x8xf32> -> vector<8x8xf32>
    %cst_104 = arith.constant 0.353553385 : f32
    %182 = vector.broadcast %cst_104 : f32 to vector<8x8xf32>
    %183 = arith.mulf %181, %182 : vector<8x8xf32>
    %184 = arith.addf %183, %7 : vector<8x8xf32>
    %cst_105 = arith.constant dense<0xFF800000> : vector<8xf32>
    %185 = vector.multi_reduction <maximumf>, %184, %cst_105 [1] : vector<8x8xf32> to vector<8xf32>
    %186 = vector.shape_cast %185 : vector<8xf32> to vector<8x1xf32>
    %187 = vector.broadcast %186 : vector<8x1xf32> to vector<8x8xf32>
    %188 = arith.subf %184, %187 : vector<8x8xf32>
    %189 = math.exp %188 : vector<8x8xf32>
    %cst_106 = arith.constant dense<0.000000e+00> : vector<8xf32>
    %190 = vector.multi_reduction <add>, %189, %cst_106 [1] : vector<8x8xf32> to vector<8xf32>
    %191 = vector.shape_cast %190 : vector<8xf32> to vector<8x1xf32>
    %192 = tpu.reciprocal %191 {approx = true} : vector<8x1xf32> -> vector<8x1xf32>
    %193 = vector.broadcast %192 : vector<8x1xf32> to vector<8x8xf32>
    %194 = arith.mulf %189, %193 : vector<8x8xf32>
    %cst_107 = arith.constant dense<0.000000e+00> : vector<8x8xf32>
    %195 = tpu.matmul %194, %180, %cst_107 {dimension_numbers = #tpu.dot_dimension_numbers<[1], [0], [0], [1], [0, 0, 1, 1], [], []>} : vector<8x8xf32>, vector<8x8xf32>, vector<8x8xf32> -> vector<8x8xf32>
    %196 = vector.extract_strided_slice %24 {offsets = [0, 8], sizes = [32, 8], strides = [1, 1]} : vector<32x32xf32> to vector<32x8xf32>
    %cst_108 = arith.constant dense<0.000000e+00> : vector<8x32xf32>
    %197 = tpu.matmul %195, %196, %cst_108 {dimension_numbers = #tpu.dot_dimension_numbers<[1], [1], [0], [0], [0, 0, 1, 0], [], []>} : vector<8x8xf32>, vector<32x8xf32>, vector<8x32xf32> -> vector<8x32xf32>
    %198 = arith.addf %177, %197 : vector<8x32xf32>
    %199 = vector.extract_strided_slice %151 {offsets = [0, 16], sizes = [8, 8], strides = [1, 1]} : vector<8x32xf32> to vector<8x8xf32>
    %200 = vector.extract_strided_slice %154 {offsets = [0, 16], sizes = [8, 8], strides = [1, 1]} : vector<8x32xf32> to vector<8x8xf32>
    %201 = vector.extract_strided_slice %157 {offsets = [0, 16], sizes = [8, 8], strides = [1, 1]} : vector<8x32xf32> to vector<8x8xf32>
    %cst_109 = arith.constant dense<0.000000e+00> : vector<8x8xf32>
    %202 = tpu.matmul %199, %200, %cst_109 {dimension_numbers = #tpu.dot_dimension_numbers<[1], [1], [0], [0], [0, 0, 1, 0], [], []>} : vector<8x8xf32>, vector<8x8xf32>, vector<8x8xf32> -> vector<8x8xf32>
    %cst_110 = arith.constant 0.353553385 : f32
    %203 = vector.broadcast %cst_110 : f32 to vector<8x8xf32>
    %204 = arith.mulf %202, %203 : vector<8x8xf32>
    %205 = arith.addf %204, %7 : vector<8x8xf32>
    %cst_111 = arith.constant dense<0xFF800000> : vector<8xf32>
    %206 = vector.multi_reduction <maximumf>, %205, %cst_111 [1] : vector<8x8xf32> to vector<8xf32>
    %207 = vector.shape_cast %206 : vector<8xf32> to vector<8x1xf32>
    %208 = vector.broadcast %207 : vector<8x1xf32> to vector<8x8xf32>
    %209 = arith.subf %205, %208 : vector<8x8xf32>
    %210 = math.exp %209 : vector<8x8xf32>
    %cst_112 = arith.constant dense<0.000000e+00> : vector<8xf32>
    %211 = vector.multi_reduction <add>, %210, %cst_112 [1] : vector<8x8xf32> to vector<8xf32>
    %212 = vector.shape_cast %211 : vector<8xf32> to vector<8x1xf32>
    %213 = tpu.reciprocal %212 {approx = true} : vector<8x1xf32> -> vector<8x1xf32>
    %214 = vector.broadcast %213 : vector<8x1xf32> to vector<8x8xf32>
    %215 = arith.mulf %210, %214 : vector<8x8xf32>
    %cst_113 = arith.constant dense<0.000000e+00> : vector<8x8xf32>
    %216 = tpu.matmul %215, %201, %cst_113 {dimension_numbers = #tpu.dot_dimension_numbers<[1], [0], [0], [1], [0, 0, 1, 1], [], []>} : vector<8x8xf32>, vector<8x8xf32>, vector<8x8xf32> -> vector<8x8xf32>
    %217 = vector.extract_strided_slice %24 {offsets = [0, 16], sizes = [32, 8], strides = [1, 1]} : vector<32x32xf32> to vector<32x8xf32>
    %cst_114 = arith.constant dense<0.000000e+00> : vector<8x32xf32>
    %218 = tpu.matmul %216, %217, %cst_114 {dimension_numbers = #tpu.dot_dimension_numbers<[1], [1], [0], [0], [0, 0, 1, 0], [], []>} : vector<8x8xf32>, vector<32x8xf32>, vector<8x32xf32> -> vector<8x32xf32>
    %219 = arith.addf %198, %218 : vector<8x32xf32>
    %220 = vector.extract_strided_slice %151 {offsets = [0, 24], sizes = [8, 8], strides = [1, 1]} : vector<8x32xf32> to vector<8x8xf32>
    %221 = vector.extract_strided_slice %154 {offsets = [0, 24], sizes = [8, 8], strides = [1, 1]} : vector<8x32xf32> to vector<8x8xf32>
    %222 = vector.extract_strided_slice %157 {offsets = [0, 24], sizes = [8, 8], strides = [1, 1]} : vector<8x32xf32> to vector<8x8xf32>
    %cst_115 = arith.constant dense<0.000000e+00> : vector<8x8xf32>
    %223 = tpu.matmul %220, %221, %cst_115 {dimension_numbers = #tpu.dot_dimension_numbers<[1], [1], [0], [0], [0, 0, 1, 0], [], []>} : vector<8x8xf32>, vector<8x8xf32>, vector<8x8xf32> -> vector<8x8xf32>
    %cst_116 = arith.constant 0.353553385 : f32
    %224 = vector.broadcast %cst_116 : f32 to vector<8x8xf32>
    %225 = arith.mulf %223, %224 : vector<8x8xf32>
    %226 = arith.addf %225, %7 : vector<8x8xf32>
    %cst_117 = arith.constant dense<0xFF800000> : vector<8xf32>
    %227 = vector.multi_reduction <maximumf>, %226, %cst_117 [1] : vector<8x8xf32> to vector<8xf32>
    %228 = vector.shape_cast %227 : vector<8xf32> to vector<8x1xf32>
    %229 = vector.broadcast %228 : vector<8x1xf32> to vector<8x8xf32>
    %230 = arith.subf %226, %229 : vector<8x8xf32>
    %231 = math.exp %230 : vector<8x8xf32>
    %cst_118 = arith.constant dense<0.000000e+00> : vector<8xf32>
    %232 = vector.multi_reduction <add>, %231, %cst_118 [1] : vector<8x8xf32> to vector<8xf32>
    %233 = vector.shape_cast %232 : vector<8xf32> to vector<8x1xf32>
    %234 = tpu.reciprocal %233 {approx = true} : vector<8x1xf32> -> vector<8x1xf32>
    %235 = vector.broadcast %234 : vector<8x1xf32> to vector<8x8xf32>
    %236 = arith.mulf %231, %235 : vector<8x8xf32>
    %cst_119 = arith.constant dense<0.000000e+00> : vector<8x8xf32>
    %237 = tpu.matmul %236, %222, %cst_119 {dimension_numbers = #tpu.dot_dimension_numbers<[1], [0], [0], [1], [0, 0, 1, 1], [], []>} : vector<8x8xf32>, vector<8x8xf32>, vector<8x8xf32> -> vector<8x8xf32>
    %238 = vector.extract_strided_slice %24 {offsets = [0, 24], sizes = [32, 8], strides = [1, 1]} : vector<32x32xf32> to vector<32x8xf32>
    %cst_120 = arith.constant dense<0.000000e+00> : vector<8x32xf32>
    %239 = tpu.matmul %237, %238, %cst_120 {dimension_numbers = #tpu.dot_dimension_numbers<[1], [1], [0], [0], [0, 0, 1, 0], [], []>} : vector<8x8xf32>, vector<32x8xf32>, vector<8x32xf32> -> vector<8x32xf32>
    %240 = arith.addf %219, %239 : vector<8x32xf32>
    %241 = vector.broadcast %25 : vector<1x32xf32> to vector<8x32xf32>
    %242 = arith.addf %240, %241 : vector<8x32xf32>
    %243 = arith.addf %148, %242 : vector<8x32xf32>
    %cst_121 = arith.constant dense<0.000000e+00> : vector<8xf32>
    %244 = vector.multi_reduction <add>, %243, %cst_121 [1] : vector<8x32xf32> to vector<8xf32>
    %245 = vector.shape_cast %244 : vector<8xf32> to vector<8x1xf32>
    %cst_122 = arith.constant 3.200000e+01 : f32
    %246 = vector.broadcast %cst_122 : f32 to vector<8x1xf32>
    %247 = arith.divf %245, %246 : vector<8x1xf32>
    %248 = vector.broadcast %247 : vector<8x1xf32> to vector<8x32xf32>
    %249 = arith.subf %243, %248 : vector<8x32xf32>
    %250 = arith.mulf %249, %249 : vector<8x32xf32>
    %cst_123 = arith.constant dense<0.000000e+00> : vector<8xf32>
    %251 = vector.multi_reduction <add>, %250, %cst_123 [1] : vector<8x32xf32> to vector<8xf32>
    %252 = vector.shape_cast %251 : vector<8xf32> to vector<8x1xf32>
    %cst_124 = arith.constant 3.200000e+01 : f32
    %253 = vector.broadcast %cst_124 : f32 to vector<8x1xf32>
    %254 = arith.divf %252, %253 : vector<8x1xf32>
    %cst_125 = arith.constant 9.99999974E-6 : f32
    %255 = vector.broadcast %cst_125 : f32 to vector<8x1xf32>
    %256 = arith.addf %254, %255 : vector<8x1xf32>
    %257 = math.rsqrt %256 : vector<8x1xf32>
    %258 = vector.broadcast %257 : vector<8x1xf32> to vector<8x32xf32>
    %259 = arith.mulf %249, %258 : vector<8x32xf32>
    %260 = vector.broadcast %26 : vector<1x32xf32> to vector<8x32xf32>
    %261 = arith.mulf %259, %260 : vector<8x32xf32>
    %262 = vector.broadcast %27 : vector<1x32xf32> to vector<8x32xf32>
    %263 = arith.addf %261, %262 : vector<8x32xf32>
    %cst_126 = arith.constant dense<0.000000e+00> : vector<8x64xf32>
    %264 = tpu.matmul %263, %28, %cst_126 {dimension_numbers = #tpu.dot_dimension_numbers<[1], [1], [0], [0], [0, 0, 1, 0], [], []>} : vector<8x32xf32>, vector<64x32xf32>, vector<8x64xf32> -> vector<8x64xf32>
    %265 = vector.broadcast %29 : vector<1x64xf32> to vector<8x64xf32>
    %266 = arith.addf %264, %265 : vector<8x64xf32>
    %cst_127 = arith.constant 0.000000e+00 : f32
    %267 = vector.broadcast %cst_127 : f32 to vector<8x64xf32>
    %268 = arith.maximumf %266, %267 : vector<8x64xf32>
    %cst_128 = arith.constant dense<0.000000e+00> : vector<8x32xf32>
    %269 = tpu.matmul %268, %30, %cst_128 {dimension_numbers = #tpu.dot_dimension_numbers<[1], [1], [0], [0], [0, 0, 1, 0], [], []>} : vector<8x64xf32>, vector<32x64xf32>, vector<8x32xf32> -> vector<8x32xf32>
    %270 = vector.broadcast %31 : vector<1x32xf32> to vector<8x32xf32>
    %271 = arith.addf %269, %270 : vector<8x32xf32>
    %272 = arith.addf %263, %271 : vector<8x32xf32>
    %cst_129 = arith.constant dense<0.000000e+00> : vector<8xf32>
    %273 = vector.multi_reduction <add>, %272, %cst_129 [1] : vector<8x32xf32> to vector<8xf32>
    %274 = vector.shape_cast %273 : vector<8xf32> to vector<8x1xf32>
    %cst_130 = arith.constant 3.200000e+01 : f32
    %275 = vector.broadcast %cst_130 : f32 to vector<8x1xf32>
    %276 = arith.divf %274, %275 : vector<8x1xf32>
    %277 = vector.broadcast %276 : vector<8x1xf32> to vector<8x32xf32>
    %278 = arith.subf %272, %277 : vector<8x32xf32>
    %279 = arith.mulf %278, %278 : vector<8x32xf32>
    %cst_131 = arith.constant dense<0.000000e+00> : vector<8xf32>
    %280 = vector.multi_reduction <add>, %279, %cst_131 [1] : vector<8x32xf32> to vector<8xf32>
    %281 = vector.shape_cast %280 : vector<8xf32> to vector<8x1xf32>
    %cst_132 = arith.constant 3.200000e+01 : f32
    %282 = vector.broadcast %cst_132 : f32 to vector<8x1xf32>
    %283 = arith.divf %281, %282 : vector<8x1xf32>
    %cst_133 = arith.constant 9.99999974E-6 : f32
    %284 = vector.broadcast %cst_133 : f32 to vector<8x1xf32>
    %285 = arith.addf %283, %284 : vector<8x1xf32>
    %286 = math.rsqrt %285 : vector<8x1xf32>
    %287 = vector.broadcast %286 : vector<8x1xf32> to vector<8x32xf32>
    %288 = arith.mulf %278, %287 : vector<8x32xf32>
    %289 = vector.broadcast %32 : vector<1x32xf32> to vector<8x32xf32>
    %290 = arith.mulf %288, %289 : vector<8x32xf32>
    %291 = vector.broadcast %33 : vector<1x32xf32> to vector<8x32xf32>
    %292 = arith.addf %290, %291 : vector<8x32xf32>
    %c0_134 = arith.constant 0 : index
    %c0_135 = arith.constant 0 : index
    %293 = vector.load %arg31[%c0_134, %c0_135] : memref<32x32xf32, #tpu.memory_space<vmem>>, vector<32x32xf32>
    %c0_136 = arith.constant 0 : index
    %c0_137 = arith.constant 0 : index
    %294 = vector.load %arg32[%c0_136, %c0_137] : memref<1x32xf32, #tpu.memory_space<vmem>>, vector<1x32xf32>
    %c0_138 = arith.constant 0 : index
    %c0_139 = arith.constant 0 : index
    %295 = vector.load %arg33[%c0_138, %c0_139] : memref<32x32xf32, #tpu.memory_space<vmem>>, vector<32x32xf32>
    %c0_140 = arith.constant 0 : index
    %c0_141 = arith.constant 0 : index
    %296 = vector.load %arg34[%c0_140, %c0_141] : memref<1x32xf32, #tpu.memory_space<vmem>>, vector<1x32xf32>
    %c0_142 = arith.constant 0 : index
    %c0_143 = arith.constant 0 : index
    %297 = vector.load %arg35[%c0_142, %c0_143] : memref<32x32xf32, #tpu.memory_space<vmem>>, vector<32x32xf32>
    %c0_144 = arith.constant 0 : index
    %c0_145 = arith.constant 0 : index
    %298 = vector.load %arg36[%c0_144, %c0_145] : memref<1x32xf32, #tpu.memory_space<vmem>>, vector<1x32xf32>
    %c0_146 = arith.constant 0 : index
    %c0_147 = arith.constant 0 : index
    %299 = vector.load %arg37[%c0_146, %c0_147] : memref<32x32xf32, #tpu.memory_space<vmem>>, vector<32x32xf32>
    %c0_148 = arith.constant 0 : index
    %c0_149 = arith.constant 0 : index
    %300 = vector.load %arg38[%c0_148, %c0_149] : memref<1x32xf32, #tpu.memory_space<vmem>>, vector<1x32xf32>
    %c0_150 = arith.constant 0 : index
    %c0_151 = arith.constant 0 : index
    %301 = vector.load %arg39[%c0_150, %c0_151] : memref<1x32xf32, #tpu.memory_space<vmem>>, vector<1x32xf32>
    %c0_152 = arith.constant 0 : index
    %c0_153 = arith.constant 0 : index
    %302 = vector.load %arg40[%c0_152, %c0_153] : memref<1x32xf32, #tpu.memory_space<vmem>>, vector<1x32xf32>
    %c0_154 = arith.constant 0 : index
    %c0_155 = arith.constant 0 : index
    %303 = vector.load %arg41[%c0_154, %c0_155] : memref<32x32xf32, #tpu.memory_space<vmem>>, vector<32x32xf32>
    %c0_156 = arith.constant 0 : index
    %c0_157 = arith.constant 0 : index
    %304 = vector.load %arg42[%c0_156, %c0_157] : memref<1x32xf32, #tpu.memory_space<vmem>>, vector<1x32xf32>
    %c0_158 = arith.constant 0 : index
    %c0_159 = arith.constant 0 : index
    %305 = vector.load %arg43[%c0_158, %c0_159] : memref<32x32xf32, #tpu.memory_space<vmem>>, vector<32x32xf32>
    %c0_160 = arith.constant 0 : index
    %c0_161 = arith.constant 0 : index
    %306 = vector.load %arg44[%c0_160, %c0_161] : memref<1x32xf32, #tpu.memory_space<vmem>>, vector<1x32xf32>
    %c0_162 = arith.constant 0 : index
    %c0_163 = arith.constant 0 : index
    %307 = vector.load %arg45[%c0_162, %c0_163] : memref<32x32xf32, #tpu.memory_space<vmem>>, vector<32x32xf32>
    %c0_164 = arith.constant 0 : index
    %c0_165 = arith.constant 0 : index
    %308 = vector.load %arg46[%c0_164, %c0_165] : memref<1x32xf32, #tpu.memory_space<vmem>>, vector<1x32xf32>
    %c0_166 = arith.constant 0 : index
    %c0_167 = arith.constant 0 : index
    %309 = vector.load %arg47[%c0_166, %c0_167] : memref<32x32xf32, #tpu.memory_space<vmem>>, vector<32x32xf32>
    %c0_168 = arith.constant 0 : index
    %c0_169 = arith.constant 0 : index
    %310 = vector.load %arg48[%c0_168, %c0_169] : memref<1x32xf32, #tpu.memory_space<vmem>>, vector<1x32xf32>
    %c0_170 = arith.constant 0 : index
    %c0_171 = arith.constant 0 : index
    %311 = vector.load %arg49[%c0_170, %c0_171] : memref<1x32xf32, #tpu.memory_space<vmem>>, vector<1x32xf32>
    %c0_172 = arith.constant 0 : index
    %c0_173 = arith.constant 0 : index
    %312 = vector.load %arg50[%c0_172, %c0_173] : memref<1x32xf32, #tpu.memory_space<vmem>>, vector<1x32xf32>
    %c0_174 = arith.constant 0 : index
    %c0_175 = arith.constant 0 : index
    %313 = vector.load %arg51[%c0_174, %c0_175] : memref<64x32xf32, #tpu.memory_space<vmem>>, vector<64x32xf32>
    %c0_176 = arith.constant 0 : index
    %c0_177 = arith.constant 0 : index
    %314 = vector.load %arg52[%c0_176, %c0_177] : memref<1x64xf32, #tpu.memory_space<vmem>>, vector<1x64xf32>
    %c0_178 = arith.constant 0 : index
    %c0_179 = arith.constant 0 : index
    %315 = vector.load %arg53[%c0_178, %c0_179] : memref<32x64xf32, #tpu.memory_space<vmem>>, vector<32x64xf32>
    %c0_180 = arith.constant 0 : index
    %c0_181 = arith.constant 0 : index
    %316 = vector.load %arg54[%c0_180, %c0_181] : memref<1x32xf32, #tpu.memory_space<vmem>>, vector<1x32xf32>
    %c0_182 = arith.constant 0 : index
    %c0_183 = arith.constant 0 : index
    %317 = vector.load %arg55[%c0_182, %c0_183] : memref<1x32xf32, #tpu.memory_space<vmem>>, vector<1x32xf32>
    %c0_184 = arith.constant 0 : index
    %c0_185 = arith.constant 0 : index
    %318 = vector.load %arg56[%c0_184, %c0_185] : memref<1x32xf32, #tpu.memory_space<vmem>>, vector<1x32xf32>
    %cst_186 = arith.constant dense<0.000000e+00> : vector<8x32xf32>
    %319 = tpu.matmul %292, %293, %cst_186 {dimension_numbers = #tpu.dot_dimension_numbers<[1], [1], [0], [0], [0, 0, 1, 0], [], []>} : vector<8x32xf32>, vector<32x32xf32>, vector<8x32xf32> -> vector<8x32xf32>
    %320 = vector.broadcast %294 : vector<1x32xf32> to vector<8x32xf32>
    %321 = arith.addf %319, %320 : vector<8x32xf32>
    %cst_187 = arith.constant dense<0.000000e+00> : vector<8x32xf32>
    %322 = tpu.matmul %292, %295, %cst_187 {dimension_numbers = #tpu.dot_dimension_numbers<[1], [1], [0], [0], [0, 0, 1, 0], [], []>} : vector<8x32xf32>, vector<32x32xf32>, vector<8x32xf32> -> vector<8x32xf32>
    %323 = vector.broadcast %296 : vector<1x32xf32> to vector<8x32xf32>
    %324 = arith.addf %322, %323 : vector<8x32xf32>
    %cst_188 = arith.constant dense<0.000000e+00> : vector<8x32xf32>
    %325 = tpu.matmul %292, %297, %cst_188 {dimension_numbers = #tpu.dot_dimension_numbers<[1], [1], [0], [0], [0, 0, 1, 0], [], []>} : vector<8x32xf32>, vector<32x32xf32>, vector<8x32xf32> -> vector<8x32xf32>
    %326 = vector.broadcast %298 : vector<1x32xf32> to vector<8x32xf32>
    %327 = arith.addf %325, %326 : vector<8x32xf32>
    %328 = vector.extract_strided_slice %321 {offsets = [0, 0], sizes = [8, 8], strides = [1, 1]} : vector<8x32xf32> to vector<8x8xf32>
    %329 = vector.extract_strided_slice %324 {offsets = [0, 0], sizes = [8, 8], strides = [1, 1]} : vector<8x32xf32> to vector<8x8xf32>
    %330 = vector.extract_strided_slice %327 {offsets = [0, 0], sizes = [8, 8], strides = [1, 1]} : vector<8x32xf32> to vector<8x8xf32>
    %cst_189 = arith.constant dense<0.000000e+00> : vector<8x8xf32>
    %331 = tpu.matmul %328, %329, %cst_189 {dimension_numbers = #tpu.dot_dimension_numbers<[1], [1], [0], [0], [0, 0, 1, 0], [], []>} : vector<8x8xf32>, vector<8x8xf32>, vector<8x8xf32> -> vector<8x8xf32>
    %cst_190 = arith.constant 0.353553385 : f32
    %332 = vector.broadcast %cst_190 : f32 to vector<8x8xf32>
    %333 = arith.mulf %331, %332 : vector<8x8xf32>
    %334 = arith.addf %333, %5 : vector<8x8xf32>
    %cst_191 = arith.constant dense<0xFF800000> : vector<8xf32>
    %335 = vector.multi_reduction <maximumf>, %334, %cst_191 [1] : vector<8x8xf32> to vector<8xf32>
    %336 = vector.shape_cast %335 : vector<8xf32> to vector<8x1xf32>
    %337 = vector.broadcast %336 : vector<8x1xf32> to vector<8x8xf32>
    %338 = arith.subf %334, %337 : vector<8x8xf32>
    %339 = math.exp %338 : vector<8x8xf32>
    %cst_192 = arith.constant dense<0.000000e+00> : vector<8xf32>
    %340 = vector.multi_reduction <add>, %339, %cst_192 [1] : vector<8x8xf32> to vector<8xf32>
    %341 = vector.shape_cast %340 : vector<8xf32> to vector<8x1xf32>
    %342 = tpu.reciprocal %341 {approx = true} : vector<8x1xf32> -> vector<8x1xf32>
    %343 = vector.broadcast %342 : vector<8x1xf32> to vector<8x8xf32>
    %344 = arith.mulf %339, %343 : vector<8x8xf32>
    %cst_193 = arith.constant dense<0.000000e+00> : vector<8x8xf32>
    %345 = tpu.matmul %344, %330, %cst_193 {dimension_numbers = #tpu.dot_dimension_numbers<[1], [0], [0], [1], [0, 0, 1, 1], [], []>} : vector<8x8xf32>, vector<8x8xf32>, vector<8x8xf32> -> vector<8x8xf32>
    %346 = vector.extract_strided_slice %299 {offsets = [0, 0], sizes = [32, 8], strides = [1, 1]} : vector<32x32xf32> to vector<32x8xf32>
    %cst_194 = arith.constant dense<0.000000e+00> : vector<8x32xf32>
    %347 = tpu.matmul %345, %346, %cst_194 {dimension_numbers = #tpu.dot_dimension_numbers<[1], [1], [0], [0], [0, 0, 1, 0], [], []>} : vector<8x8xf32>, vector<32x8xf32>, vector<8x32xf32> -> vector<8x32xf32>
    %348 = vector.extract_strided_slice %321 {offsets = [0, 8], sizes = [8, 8], strides = [1, 1]} : vector<8x32xf32> to vector<8x8xf32>
    %349 = vector.extract_strided_slice %324 {offsets = [0, 8], sizes = [8, 8], strides = [1, 1]} : vector<8x32xf32> to vector<8x8xf32>
    %350 = vector.extract_strided_slice %327 {offsets = [0, 8], sizes = [8, 8], strides = [1, 1]} : vector<8x32xf32> to vector<8x8xf32>
    %cst_195 = arith.constant dense<0.000000e+00> : vector<8x8xf32>
    %351 = tpu.matmul %348, %349, %cst_195 {dimension_numbers = #tpu.dot_dimension_numbers<[1], [1], [0], [0], [0, 0, 1, 0], [], []>} : vector<8x8xf32>, vector<8x8xf32>, vector<8x8xf32> -> vector<8x8xf32>
    %cst_196 = arith.constant 0.353553385 : f32
    %352 = vector.broadcast %cst_196 : f32 to vector<8x8xf32>
    %353 = arith.mulf %351, %352 : vector<8x8xf32>
    %354 = arith.addf %353, %5 : vector<8x8xf32>
    %cst_197 = arith.constant dense<0xFF800000> : vector<8xf32>
    %355 = vector.multi_reduction <maximumf>, %354, %cst_197 [1] : vector<8x8xf32> to vector<8xf32>
    %356 = vector.shape_cast %355 : vector<8xf32> to vector<8x1xf32>
    %357 = vector.broadcast %356 : vector<8x1xf32> to vector<8x8xf32>
    %358 = arith.subf %354, %357 : vector<8x8xf32>
    %359 = math.exp %358 : vector<8x8xf32>
    %cst_198 = arith.constant dense<0.000000e+00> : vector<8xf32>
    %360 = vector.multi_reduction <add>, %359, %cst_198 [1] : vector<8x8xf32> to vector<8xf32>
    %361 = vector.shape_cast %360 : vector<8xf32> to vector<8x1xf32>
    %362 = tpu.reciprocal %361 {approx = true} : vector<8x1xf32> -> vector<8x1xf32>
    %363 = vector.broadcast %362 : vector<8x1xf32> to vector<8x8xf32>
    %364 = arith.mulf %359, %363 : vector<8x8xf32>
    %cst_199 = arith.constant dense<0.000000e+00> : vector<8x8xf32>
    %365 = tpu.matmul %364, %350, %cst_199 {dimension_numbers = #tpu.dot_dimension_numbers<[1], [0], [0], [1], [0, 0, 1, 1], [], []>} : vector<8x8xf32>, vector<8x8xf32>, vector<8x8xf32> -> vector<8x8xf32>
    %366 = vector.extract_strided_slice %299 {offsets = [0, 8], sizes = [32, 8], strides = [1, 1]} : vector<32x32xf32> to vector<32x8xf32>
    %cst_200 = arith.constant dense<0.000000e+00> : vector<8x32xf32>
    %367 = tpu.matmul %365, %366, %cst_200 {dimension_numbers = #tpu.dot_dimension_numbers<[1], [1], [0], [0], [0, 0, 1, 0], [], []>} : vector<8x8xf32>, vector<32x8xf32>, vector<8x32xf32> -> vector<8x32xf32>
    %368 = arith.addf %347, %367 : vector<8x32xf32>
    %369 = vector.extract_strided_slice %321 {offsets = [0, 16], sizes = [8, 8], strides = [1, 1]} : vector<8x32xf32> to vector<8x8xf32>
    %370 = vector.extract_strided_slice %324 {offsets = [0, 16], sizes = [8, 8], strides = [1, 1]} : vector<8x32xf32> to vector<8x8xf32>
    %371 = vector.extract_strided_slice %327 {offsets = [0, 16], sizes = [8, 8], strides = [1, 1]} : vector<8x32xf32> to vector<8x8xf32>
    %cst_201 = arith.constant dense<0.000000e+00> : vector<8x8xf32>
    %372 = tpu.matmul %369, %370, %cst_201 {dimension_numbers = #tpu.dot_dimension_numbers<[1], [1], [0], [0], [0, 0, 1, 0], [], []>} : vector<8x8xf32>, vector<8x8xf32>, vector<8x8xf32> -> vector<8x8xf32>
    %cst_202 = arith.constant 0.353553385 : f32
    %373 = vector.broadcast %cst_202 : f32 to vector<8x8xf32>
    %374 = arith.mulf %372, %373 : vector<8x8xf32>
    %375 = arith.addf %374, %5 : vector<8x8xf32>
    %cst_203 = arith.constant dense<0xFF800000> : vector<8xf32>
    %376 = vector.multi_reduction <maximumf>, %375, %cst_203 [1] : vector<8x8xf32> to vector<8xf32>
    %377 = vector.shape_cast %376 : vector<8xf32> to vector<8x1xf32>
    %378 = vector.broadcast %377 : vector<8x1xf32> to vector<8x8xf32>
    %379 = arith.subf %375, %378 : vector<8x8xf32>
    %380 = math.exp %379 : vector<8x8xf32>
    %cst_204 = arith.constant dense<0.000000e+00> : vector<8xf32>
    %381 = vector.multi_reduction <add>, %380, %cst_204 [1] : vector<8x8xf32> to vector<8xf32>
    %382 = vector.shape_cast %381 : vector<8xf32> to vector<8x1xf32>
    %383 = tpu.reciprocal %382 {approx = true} : vector<8x1xf32> -> vector<8x1xf32>
    %384 = vector.broadcast %383 : vector<8x1xf32> to vector<8x8xf32>
    %385 = arith.mulf %380, %384 : vector<8x8xf32>
    %cst_205 = arith.constant dense<0.000000e+00> : vector<8x8xf32>
    %386 = tpu.matmul %385, %371, %cst_205 {dimension_numbers = #tpu.dot_dimension_numbers<[1], [0], [0], [1], [0, 0, 1, 1], [], []>} : vector<8x8xf32>, vector<8x8xf32>, vector<8x8xf32> -> vector<8x8xf32>
    %387 = vector.extract_strided_slice %299 {offsets = [0, 16], sizes = [32, 8], strides = [1, 1]} : vector<32x32xf32> to vector<32x8xf32>
    %cst_206 = arith.constant dense<0.000000e+00> : vector<8x32xf32>
    %388 = tpu.matmul %386, %387, %cst_206 {dimension_numbers = #tpu.dot_dimension_numbers<[1], [1], [0], [0], [0, 0, 1, 0], [], []>} : vector<8x8xf32>, vector<32x8xf32>, vector<8x32xf32> -> vector<8x32xf32>
    %389 = arith.addf %368, %388 : vector<8x32xf32>
    %390 = vector.extract_strided_slice %321 {offsets = [0, 24], sizes = [8, 8], strides = [1, 1]} : vector<8x32xf32> to vector<8x8xf32>
    %391 = vector.extract_strided_slice %324 {offsets = [0, 24], sizes = [8, 8], strides = [1, 1]} : vector<8x32xf32> to vector<8x8xf32>
    %392 = vector.extract_strided_slice %327 {offsets = [0, 24], sizes = [8, 8], strides = [1, 1]} : vector<8x32xf32> to vector<8x8xf32>
    %cst_207 = arith.constant dense<0.000000e+00> : vector<8x8xf32>
    %393 = tpu.matmul %390, %391, %cst_207 {dimension_numbers = #tpu.dot_dimension_numbers<[1], [1], [0], [0], [0, 0, 1, 0], [], []>} : vector<8x8xf32>, vector<8x8xf32>, vector<8x8xf32> -> vector<8x8xf32>
    %cst_208 = arith.constant 0.353553385 : f32
    %394 = vector.broadcast %cst_208 : f32 to vector<8x8xf32>
    %395 = arith.mulf %393, %394 : vector<8x8xf32>
    %396 = arith.addf %395, %5 : vector<8x8xf32>
    %cst_209 = arith.constant dense<0xFF800000> : vector<8xf32>
    %397 = vector.multi_reduction <maximumf>, %396, %cst_209 [1] : vector<8x8xf32> to vector<8xf32>
    %398 = vector.shape_cast %397 : vector<8xf32> to vector<8x1xf32>
    %399 = vector.broadcast %398 : vector<8x1xf32> to vector<8x8xf32>
    %400 = arith.subf %396, %399 : vector<8x8xf32>
    %401 = math.exp %400 : vector<8x8xf32>
    %cst_210 = arith.constant dense<0.000000e+00> : vector<8xf32>
    %402 = vector.multi_reduction <add>, %401, %cst_210 [1] : vector<8x8xf32> to vector<8xf32>
    %403 = vector.shape_cast %402 : vector<8xf32> to vector<8x1xf32>
    %404 = tpu.reciprocal %403 {approx = true} : vector<8x1xf32> -> vector<8x1xf32>
    %405 = vector.broadcast %404 : vector<8x1xf32> to vector<8x8xf32>
    %406 = arith.mulf %401, %405 : vector<8x8xf32>
    %cst_211 = arith.constant dense<0.000000e+00> : vector<8x8xf32>
    %407 = tpu.matmul %406, %392, %cst_211 {dimension_numbers = #tpu.dot_dimension_numbers<[1], [0], [0], [1], [0, 0, 1, 1], [], []>} : vector<8x8xf32>, vector<8x8xf32>, vector<8x8xf32> -> vector<8x8xf32>
    %408 = vector.extract_strided_slice %299 {offsets = [0, 24], sizes = [32, 8], strides = [1, 1]} : vector<32x32xf32> to vector<32x8xf32>
    %cst_212 = arith.constant dense<0.000000e+00> : vector<8x32xf32>
    %409 = tpu.matmul %407, %408, %cst_212 {dimension_numbers = #tpu.dot_dimension_numbers<[1], [1], [0], [0], [0, 0, 1, 0], [], []>} : vector<8x8xf32>, vector<32x8xf32>, vector<8x32xf32> -> vector<8x32xf32>
    %410 = arith.addf %389, %409 : vector<8x32xf32>
    %411 = vector.broadcast %300 : vector<1x32xf32> to vector<8x32xf32>
    %412 = arith.addf %410, %411 : vector<8x32xf32>
    %413 = arith.addf %292, %412 : vector<8x32xf32>
    %cst_213 = arith.constant dense<0.000000e+00> : vector<8xf32>
    %414 = vector.multi_reduction <add>, %413, %cst_213 [1] : vector<8x32xf32> to vector<8xf32>
    %415 = vector.shape_cast %414 : vector<8xf32> to vector<8x1xf32>
    %cst_214 = arith.constant 3.200000e+01 : f32
    %416 = vector.broadcast %cst_214 : f32 to vector<8x1xf32>
    %417 = arith.divf %415, %416 : vector<8x1xf32>
    %418 = vector.broadcast %417 : vector<8x1xf32> to vector<8x32xf32>
    %419 = arith.subf %413, %418 : vector<8x32xf32>
    %420 = arith.mulf %419, %419 : vector<8x32xf32>
    %cst_215 = arith.constant dense<0.000000e+00> : vector<8xf32>
    %421 = vector.multi_reduction <add>, %420, %cst_215 [1] : vector<8x32xf32> to vector<8xf32>
    %422 = vector.shape_cast %421 : vector<8xf32> to vector<8x1xf32>
    %cst_216 = arith.constant 3.200000e+01 : f32
    %423 = vector.broadcast %cst_216 : f32 to vector<8x1xf32>
    %424 = arith.divf %422, %423 : vector<8x1xf32>
    %cst_217 = arith.constant 9.99999974E-6 : f32
    %425 = vector.broadcast %cst_217 : f32 to vector<8x1xf32>
    %426 = arith.addf %424, %425 : vector<8x1xf32>
    %427 = math.rsqrt %426 : vector<8x1xf32>
    %428 = vector.broadcast %427 : vector<8x1xf32> to vector<8x32xf32>
    %429 = arith.mulf %419, %428 : vector<8x32xf32>
    %430 = vector.broadcast %301 : vector<1x32xf32> to vector<8x32xf32>
    %431 = arith.mulf %429, %430 : vector<8x32xf32>
    %432 = vector.broadcast %302 : vector<1x32xf32> to vector<8x32xf32>
    %433 = arith.addf %431, %432 : vector<8x32xf32>
    %cst_218 = arith.constant dense<0.000000e+00> : vector<8x32xf32>
    %434 = tpu.matmul %433, %303, %cst_218 {dimension_numbers = #tpu.dot_dimension_numbers<[1], [1], [0], [0], [0, 0, 1, 0], [], []>} : vector<8x32xf32>, vector<32x32xf32>, vector<8x32xf32> -> vector<8x32xf32>
    %435 = vector.broadcast %304 : vector<1x32xf32> to vector<8x32xf32>
    %436 = arith.addf %434, %435 : vector<8x32xf32>
    %cst_219 = arith.constant dense<0.000000e+00> : vector<8x32xf32>
    %437 = tpu.matmul %3, %305, %cst_219 {dimension_numbers = #tpu.dot_dimension_numbers<[1], [1], [0], [0], [0, 0, 1, 0], [], []>} : vector<8x32xf32>, vector<32x32xf32>, vector<8x32xf32> -> vector<8x32xf32>
    %438 = vector.broadcast %306 : vector<1x32xf32> to vector<8x32xf32>
    %439 = arith.addf %437, %438 : vector<8x32xf32>
    %cst_220 = arith.constant dense<0.000000e+00> : vector<8x32xf32>
    %440 = tpu.matmul %3, %307, %cst_220 {dimension_numbers = #tpu.dot_dimension_numbers<[1], [1], [0], [0], [0, 0, 1, 0], [], []>} : vector<8x32xf32>, vector<32x32xf32>, vector<8x32xf32> -> vector<8x32xf32>
    %441 = vector.broadcast %308 : vector<1x32xf32> to vector<8x32xf32>
    %442 = arith.addf %440, %441 : vector<8x32xf32>
    %443 = vector.extract_strided_slice %436 {offsets = [0, 0], sizes = [8, 8], strides = [1, 1]} : vector<8x32xf32> to vector<8x8xf32>
    %444 = vector.extract_strided_slice %439 {offsets = [0, 0], sizes = [8, 8], strides = [1, 1]} : vector<8x32xf32> to vector<8x8xf32>
    %445 = vector.extract_strided_slice %442 {offsets = [0, 0], sizes = [8, 8], strides = [1, 1]} : vector<8x32xf32> to vector<8x8xf32>
    %cst_221 = arith.constant dense<0.000000e+00> : vector<8x8xf32>
    %446 = tpu.matmul %443, %444, %cst_221 {dimension_numbers = #tpu.dot_dimension_numbers<[1], [1], [0], [0], [0, 0, 1, 0], [], []>} : vector<8x8xf32>, vector<8x8xf32>, vector<8x8xf32> -> vector<8x8xf32>
    %cst_222 = arith.constant 0.353553385 : f32
    %447 = vector.broadcast %cst_222 : f32 to vector<8x8xf32>
    %448 = arith.mulf %446, %447 : vector<8x8xf32>
    %449 = arith.addf %448, %7 : vector<8x8xf32>
    %cst_223 = arith.constant dense<0xFF800000> : vector<8xf32>
    %450 = vector.multi_reduction <maximumf>, %449, %cst_223 [1] : vector<8x8xf32> to vector<8xf32>
    %451 = vector.shape_cast %450 : vector<8xf32> to vector<8x1xf32>
    %452 = vector.broadcast %451 : vector<8x1xf32> to vector<8x8xf32>
    %453 = arith.subf %449, %452 : vector<8x8xf32>
    %454 = math.exp %453 : vector<8x8xf32>
    %cst_224 = arith.constant dense<0.000000e+00> : vector<8xf32>
    %455 = vector.multi_reduction <add>, %454, %cst_224 [1] : vector<8x8xf32> to vector<8xf32>
    %456 = vector.shape_cast %455 : vector<8xf32> to vector<8x1xf32>
    %457 = tpu.reciprocal %456 {approx = true} : vector<8x1xf32> -> vector<8x1xf32>
    %458 = vector.broadcast %457 : vector<8x1xf32> to vector<8x8xf32>
    %459 = arith.mulf %454, %458 : vector<8x8xf32>
    %cst_225 = arith.constant dense<0.000000e+00> : vector<8x8xf32>
    %460 = tpu.matmul %459, %445, %cst_225 {dimension_numbers = #tpu.dot_dimension_numbers<[1], [0], [0], [1], [0, 0, 1, 1], [], []>} : vector<8x8xf32>, vector<8x8xf32>, vector<8x8xf32> -> vector<8x8xf32>
    %461 = vector.extract_strided_slice %309 {offsets = [0, 0], sizes = [32, 8], strides = [1, 1]} : vector<32x32xf32> to vector<32x8xf32>
    %cst_226 = arith.constant dense<0.000000e+00> : vector<8x32xf32>
    %462 = tpu.matmul %460, %461, %cst_226 {dimension_numbers = #tpu.dot_dimension_numbers<[1], [1], [0], [0], [0, 0, 1, 0], [], []>} : vector<8x8xf32>, vector<32x8xf32>, vector<8x32xf32> -> vector<8x32xf32>
    %463 = vector.extract_strided_slice %436 {offsets = [0, 8], sizes = [8, 8], strides = [1, 1]} : vector<8x32xf32> to vector<8x8xf32>
    %464 = vector.extract_strided_slice %439 {offsets = [0, 8], sizes = [8, 8], strides = [1, 1]} : vector<8x32xf32> to vector<8x8xf32>
    %465 = vector.extract_strided_slice %442 {offsets = [0, 8], sizes = [8, 8], strides = [1, 1]} : vector<8x32xf32> to vector<8x8xf32>
    %cst_227 = arith.constant dense<0.000000e+00> : vector<8x8xf32>
    %466 = tpu.matmul %463, %464, %cst_227 {dimension_numbers = #tpu.dot_dimension_numbers<[1], [1], [0], [0], [0, 0, 1, 0], [], []>} : vector<8x8xf32>, vector<8x8xf32>, vector<8x8xf32> -> vector<8x8xf32>
    %cst_228 = arith.constant 0.353553385 : f32
    %467 = vector.broadcast %cst_228 : f32 to vector<8x8xf32>
    %468 = arith.mulf %466, %467 : vector<8x8xf32>
    %469 = arith.addf %468, %7 : vector<8x8xf32>
    %cst_229 = arith.constant dense<0xFF800000> : vector<8xf32>
    %470 = vector.multi_reduction <maximumf>, %469, %cst_229 [1] : vector<8x8xf32> to vector<8xf32>
    %471 = vector.shape_cast %470 : vector<8xf32> to vector<8x1xf32>
    %472 = vector.broadcast %471 : vector<8x1xf32> to vector<8x8xf32>
    %473 = arith.subf %469, %472 : vector<8x8xf32>
    %474 = math.exp %473 : vector<8x8xf32>
    %cst_230 = arith.constant dense<0.000000e+00> : vector<8xf32>
    %475 = vector.multi_reduction <add>, %474, %cst_230 [1] : vector<8x8xf32> to vector<8xf32>
    %476 = vector.shape_cast %475 : vector<8xf32> to vector<8x1xf32>
    %477 = tpu.reciprocal %476 {approx = true} : vector<8x1xf32> -> vector<8x1xf32>
    %478 = vector.broadcast %477 : vector<8x1xf32> to vector<8x8xf32>
    %479 = arith.mulf %474, %478 : vector<8x8xf32>
    %cst_231 = arith.constant dense<0.000000e+00> : vector<8x8xf32>
    %480 = tpu.matmul %479, %465, %cst_231 {dimension_numbers = #tpu.dot_dimension_numbers<[1], [0], [0], [1], [0, 0, 1, 1], [], []>} : vector<8x8xf32>, vector<8x8xf32>, vector<8x8xf32> -> vector<8x8xf32>
    %481 = vector.extract_strided_slice %309 {offsets = [0, 8], sizes = [32, 8], strides = [1, 1]} : vector<32x32xf32> to vector<32x8xf32>
    %cst_232 = arith.constant dense<0.000000e+00> : vector<8x32xf32>
    %482 = tpu.matmul %480, %481, %cst_232 {dimension_numbers = #tpu.dot_dimension_numbers<[1], [1], [0], [0], [0, 0, 1, 0], [], []>} : vector<8x8xf32>, vector<32x8xf32>, vector<8x32xf32> -> vector<8x32xf32>
    %483 = arith.addf %462, %482 : vector<8x32xf32>
    %484 = vector.extract_strided_slice %436 {offsets = [0, 16], sizes = [8, 8], strides = [1, 1]} : vector<8x32xf32> to vector<8x8xf32>
    %485 = vector.extract_strided_slice %439 {offsets = [0, 16], sizes = [8, 8], strides = [1, 1]} : vector<8x32xf32> to vector<8x8xf32>
    %486 = vector.extract_strided_slice %442 {offsets = [0, 16], sizes = [8, 8], strides = [1, 1]} : vector<8x32xf32> to vector<8x8xf32>
    %cst_233 = arith.constant dense<0.000000e+00> : vector<8x8xf32>
    %487 = tpu.matmul %484, %485, %cst_233 {dimension_numbers = #tpu.dot_dimension_numbers<[1], [1], [0], [0], [0, 0, 1, 0], [], []>} : vector<8x8xf32>, vector<8x8xf32>, vector<8x8xf32> -> vector<8x8xf32>
    %cst_234 = arith.constant 0.353553385 : f32
    %488 = vector.broadcast %cst_234 : f32 to vector<8x8xf32>
    %489 = arith.mulf %487, %488 : vector<8x8xf32>
    %490 = arith.addf %489, %7 : vector<8x8xf32>
    %cst_235 = arith.constant dense<0xFF800000> : vector<8xf32>
    %491 = vector.multi_reduction <maximumf>, %490, %cst_235 [1] : vector<8x8xf32> to vector<8xf32>
    %492 = vector.shape_cast %491 : vector<8xf32> to vector<8x1xf32>
    %493 = vector.broadcast %492 : vector<8x1xf32> to vector<8x8xf32>
    %494 = arith.subf %490, %493 : vector<8x8xf32>
    %495 = math.exp %494 : vector<8x8xf32>
    %cst_236 = arith.constant dense<0.000000e+00> : vector<8xf32>
    %496 = vector.multi_reduction <add>, %495, %cst_236 [1] : vector<8x8xf32> to vector<8xf32>
    %497 = vector.shape_cast %496 : vector<8xf32> to vector<8x1xf32>
    %498 = tpu.reciprocal %497 {approx = true} : vector<8x1xf32> -> vector<8x1xf32>
    %499 = vector.broadcast %498 : vector<8x1xf32> to vector<8x8xf32>
    %500 = arith.mulf %495, %499 : vector<8x8xf32>
    %cst_237 = arith.constant dense<0.000000e+00> : vector<8x8xf32>
    %501 = tpu.matmul %500, %486, %cst_237 {dimension_numbers = #tpu.dot_dimension_numbers<[1], [0], [0], [1], [0, 0, 1, 1], [], []>} : vector<8x8xf32>, vector<8x8xf32>, vector<8x8xf32> -> vector<8x8xf32>
    %502 = vector.extract_strided_slice %309 {offsets = [0, 16], sizes = [32, 8], strides = [1, 1]} : vector<32x32xf32> to vector<32x8xf32>
    %cst_238 = arith.constant dense<0.000000e+00> : vector<8x32xf32>
    %503 = tpu.matmul %501, %502, %cst_238 {dimension_numbers = #tpu.dot_dimension_numbers<[1], [1], [0], [0], [0, 0, 1, 0], [], []>} : vector<8x8xf32>, vector<32x8xf32>, vector<8x32xf32> -> vector<8x32xf32>
    %504 = arith.addf %483, %503 : vector<8x32xf32>
    %505 = vector.extract_strided_slice %436 {offsets = [0, 24], sizes = [8, 8], strides = [1, 1]} : vector<8x32xf32> to vector<8x8xf32>
    %506 = vector.extract_strided_slice %439 {offsets = [0, 24], sizes = [8, 8], strides = [1, 1]} : vector<8x32xf32> to vector<8x8xf32>
    %507 = vector.extract_strided_slice %442 {offsets = [0, 24], sizes = [8, 8], strides = [1, 1]} : vector<8x32xf32> to vector<8x8xf32>
    %cst_239 = arith.constant dense<0.000000e+00> : vector<8x8xf32>
    %508 = tpu.matmul %505, %506, %cst_239 {dimension_numbers = #tpu.dot_dimension_numbers<[1], [1], [0], [0], [0, 0, 1, 0], [], []>} : vector<8x8xf32>, vector<8x8xf32>, vector<8x8xf32> -> vector<8x8xf32>
    %cst_240 = arith.constant 0.353553385 : f32
    %509 = vector.broadcast %cst_240 : f32 to vector<8x8xf32>
    %510 = arith.mulf %508, %509 : vector<8x8xf32>
    %511 = arith.addf %510, %7 : vector<8x8xf32>
    %cst_241 = arith.constant dense<0xFF800000> : vector<8xf32>
    %512 = vector.multi_reduction <maximumf>, %511, %cst_241 [1] : vector<8x8xf32> to vector<8xf32>
    %513 = vector.shape_cast %512 : vector<8xf32> to vector<8x1xf32>
    %514 = vector.broadcast %513 : vector<8x1xf32> to vector<8x8xf32>
    %515 = arith.subf %511, %514 : vector<8x8xf32>
    %516 = math.exp %515 : vector<8x8xf32>
    %cst_242 = arith.constant dense<0.000000e+00> : vector<8xf32>
    %517 = vector.multi_reduction <add>, %516, %cst_242 [1] : vector<8x8xf32> to vector<8xf32>
    %518 = vector.shape_cast %517 : vector<8xf32> to vector<8x1xf32>
    %519 = tpu.reciprocal %518 {approx = true} : vector<8x1xf32> -> vector<8x1xf32>
    %520 = vector.broadcast %519 : vector<8x1xf32> to vector<8x8xf32>
    %521 = arith.mulf %516, %520 : vector<8x8xf32>
    %cst_243 = arith.constant dense<0.000000e+00> : vector<8x8xf32>
    %522 = tpu.matmul %521, %507, %cst_243 {dimension_numbers = #tpu.dot_dimension_numbers<[1], [0], [0], [1], [0, 0, 1, 1], [], []>} : vector<8x8xf32>, vector<8x8xf32>, vector<8x8xf32> -> vector<8x8xf32>
    %523 = vector.extract_strided_slice %309 {offsets = [0, 24], sizes = [32, 8], strides = [1, 1]} : vector<32x32xf32> to vector<32x8xf32>
    %cst_244 = arith.constant dense<0.000000e+00> : vector<8x32xf32>
    %524 = tpu.matmul %522, %523, %cst_244 {dimension_numbers = #tpu.dot_dimension_numbers<[1], [1], [0], [0], [0, 0, 1, 0], [], []>} : vector<8x8xf32>, vector<32x8xf32>, vector<8x32xf32> -> vector<8x32xf32>
    %525 = arith.addf %504, %524 : vector<8x32xf32>
    %526 = vector.broadcast %310 : vector<1x32xf32> to vector<8x32xf32>
    %527 = arith.addf %525, %526 : vector<8x32xf32>
    %528 = arith.addf %433, %527 : vector<8x32xf32>
    %cst_245 = arith.constant dense<0.000000e+00> : vector<8xf32>
    %529 = vector.multi_reduction <add>, %528, %cst_245 [1] : vector<8x32xf32> to vector<8xf32>
    %530 = vector.shape_cast %529 : vector<8xf32> to vector<8x1xf32>
    %cst_246 = arith.constant 3.200000e+01 : f32
    %531 = vector.broadcast %cst_246 : f32 to vector<8x1xf32>
    %532 = arith.divf %530, %531 : vector<8x1xf32>
    %533 = vector.broadcast %532 : vector<8x1xf32> to vector<8x32xf32>
    %534 = arith.subf %528, %533 : vector<8x32xf32>
    %535 = arith.mulf %534, %534 : vector<8x32xf32>
    %cst_247 = arith.constant dense<0.000000e+00> : vector<8xf32>
    %536 = vector.multi_reduction <add>, %535, %cst_247 [1] : vector<8x32xf32> to vector<8xf32>
    %537 = vector.shape_cast %536 : vector<8xf32> to vector<8x1xf32>
    %cst_248 = arith.constant 3.200000e+01 : f32
    %538 = vector.broadcast %cst_248 : f32 to vector<8x1xf32>
    %539 = arith.divf %537, %538 : vector<8x1xf32>
    %cst_249 = arith.constant 9.99999974E-6 : f32
    %540 = vector.broadcast %cst_249 : f32 to vector<8x1xf32>
    %541 = arith.addf %539, %540 : vector<8x1xf32>
    %542 = math.rsqrt %541 : vector<8x1xf32>
    %543 = vector.broadcast %542 : vector<8x1xf32> to vector<8x32xf32>
    %544 = arith.mulf %534, %543 : vector<8x32xf32>
    %545 = vector.broadcast %311 : vector<1x32xf32> to vector<8x32xf32>
    %546 = arith.mulf %544, %545 : vector<8x32xf32>
    %547 = vector.broadcast %312 : vector<1x32xf32> to vector<8x32xf32>
    %548 = arith.addf %546, %547 : vector<8x32xf32>
    %cst_250 = arith.constant dense<0.000000e+00> : vector<8x64xf32>
    %549 = tpu.matmul %548, %313, %cst_250 {dimension_numbers = #tpu.dot_dimension_numbers<[1], [1], [0], [0], [0, 0, 1, 0], [], []>} : vector<8x32xf32>, vector<64x32xf32>, vector<8x64xf32> -> vector<8x64xf32>
    %550 = vector.broadcast %314 : vector<1x64xf32> to vector<8x64xf32>
    %551 = arith.addf %549, %550 : vector<8x64xf32>
    %cst_251 = arith.constant 0.000000e+00 : f32
    %552 = vector.broadcast %cst_251 : f32 to vector<8x64xf32>
    %553 = arith.maximumf %551, %552 : vector<8x64xf32>
    %cst_252 = arith.constant dense<0.000000e+00> : vector<8x32xf32>
    %554 = tpu.matmul %553, %315, %cst_252 {dimension_numbers = #tpu.dot_dimension_numbers<[1], [1], [0], [0], [0, 0, 1, 0], [], []>} : vector<8x64xf32>, vector<32x64xf32>, vector<8x32xf32> -> vector<8x32xf32>
    %555 = vector.broadcast %316 : vector<1x32xf32> to vector<8x32xf32>
    %556 = arith.addf %554, %555 : vector<8x32xf32>
    %557 = arith.addf %548, %556 : vector<8x32xf32>
    %cst_253 = arith.constant dense<0.000000e+00> : vector<8xf32>
    %558 = vector.multi_reduction <add>, %557, %cst_253 [1] : vector<8x32xf32> to vector<8xf32>
    %559 = vector.shape_cast %558 : vector<8xf32> to vector<8x1xf32>
    %cst_254 = arith.constant 3.200000e+01 : f32
    %560 = vector.broadcast %cst_254 : f32 to vector<8x1xf32>
    %561 = arith.divf %559, %560 : vector<8x1xf32>
    %562 = vector.broadcast %561 : vector<8x1xf32> to vector<8x32xf32>
    %563 = arith.subf %557, %562 : vector<8x32xf32>
    %564 = arith.mulf %563, %563 : vector<8x32xf32>
    %cst_255 = arith.constant dense<0.000000e+00> : vector<8xf32>
    %565 = vector.multi_reduction <add>, %564, %cst_255 [1] : vector<8x32xf32> to vector<8xf32>
    %566 = vector.shape_cast %565 : vector<8xf32> to vector<8x1xf32>
    %cst_256 = arith.constant 3.200000e+01 : f32
    %567 = vector.broadcast %cst_256 : f32 to vector<8x1xf32>
    %568 = arith.divf %566, %567 : vector<8x1xf32>
    %cst_257 = arith.constant 9.99999974E-6 : f32
    %569 = vector.broadcast %cst_257 : f32 to vector<8x1xf32>
    %570 = arith.addf %568, %569 : vector<8x1xf32>
    %571 = math.rsqrt %570 : vector<8x1xf32>
    %572 = vector.broadcast %571 : vector<8x1xf32> to vector<8x32xf32>
    %573 = arith.mulf %563, %572 : vector<8x32xf32>
    %574 = vector.broadcast %317 : vector<1x32xf32> to vector<8x32xf32>
    %575 = arith.mulf %573, %574 : vector<8x32xf32>
    %576 = vector.broadcast %318 : vector<1x32xf32> to vector<8x32xf32>
    %577 = arith.addf %575, %576 : vector<8x32xf32>
    %c0_258 = arith.constant 0 : index
    %c0_259 = arith.constant 0 : index
    %c0_260 = arith.constant 0 : index
    %578 = vector.load %arg57[%c0_258, %c0_259, %c0_260] : memref<1x8x32xf32, #tpu.memory_space<vmem>>, vector<1x8x32xf32>
    %579 = vector.shape_cast %578 : vector<1x8x32xf32> to vector<8x32xf32>
    %580 = vector.shape_cast %577 : vector<8x32xf32> to vector<1x8x32xf32>
    tpu.vector_store %arg57[%c0_258, %c0_259, %c0_260], %580 {strides = array<i32>} : memref<1x8x32xf32, #tpu.memory_space<vmem>>, vector<1x8x32xf32>,
    return
  }
  func.func @transform_0(%arg0: i32) -> (i32, i32, i32) {
    %c0_i32 = arith.constant 0 : i32
    %c0_i32_0 = arith.constant 0 : i32
    %c0_i32_1 = arith.constant 0 : i32
    return %arg0, %c0_i32, %c0_i32_0 : i32, i32, i32
  }
  func.func @transform_1(%arg0: i32) -> (i32, i32, i32) {
    %c0_i32 = arith.constant 0 : i32
    %c0_i32_0 = arith.constant 0 : i32
    %c0_i32_1 = arith.constant 0 : i32
    return %arg0, %c0_i32, %c0_i32_0 : i32, i32, i32
  }
  func.func @transform_2(%arg0: i32) -> (i32, i32, i32) {
    %c0_i32 = arith.constant 0 : i32
    %c0_i32_0 = arith.constant 0 : i32
    %c0_i32_1 = arith.constant 0 : i32
    return %arg0, %c0_i32, %c0_i32_0 : i32, i32, i32
  }
  func.func @transform_3(%arg0: i32) -> (i32, i32, i32) {
    %c0_i32 = arith.constant 0 : i32
    %c0_i32_0 = arith.constant 0 : i32
    %c0_i32_1 = arith.constant 0 : i32
    return %arg0, %c0_i32, %c0_i32_0 : i32, i32, i32
  }
  func.func @transform_4(%arg0: i32) -> (i32, i32) {
    %c0_i32 = arith.constant 0 : i32
    %c0_i32_0 = arith.constant 0 : i32
    %c0_i32_1 = arith.constant 0 : i32
    return %c0_i32, %c0_i32_0 : i32, i32
  }
  func.func @transform_5(%arg0: i32) -> (i32, i32) {
    %c0_i32 = arith.constant 0 : i32
    %c0_i32_0 = arith.constant 0 : i32
    %c0_i32_1 = arith.constant 0 : i32
    return %c0_i32, %c0_i32_0 : i32, i32
  }
  func.func @transform_6(%arg0: i32) -> (i32, i32) {
    %c0_i32 = arith.constant 0 : i32
    %c0_i32_0 = arith.constant 0 : i32
    %c0_i32_1 = arith.constant 0 : i32
    return %c0_i32, %c0_i32_0 : i32, i32
  }
  func.func @transform_7(%arg0: i32) -> (i32, i32) {
    %c0_i32 = arith.constant 0 : i32
    %c0_i32_0 = arith.constant 0 : i32
    %c0_i32_1 = arith.constant 0 : i32
    return %c0_i32, %c0_i32_0 : i32, i32
  }
  func.func @transform_8(%arg0: i32) -> (i32, i32) {
    %c0_i32 = arith.constant 0 : i32
    %c0_i32_0 = arith.constant 0 : i32
    %c0_i32_1 = arith.constant 0 : i32
    return %c0_i32, %c0_i32_0 : i32, i32
  }
  func.func @transform_9(%arg0: i32) -> (i32, i32) {
    %c0_i32 = arith.constant 0 : i32
    %c0_i32_0 = arith.constant 0 : i32
    %c0_i32_1 = arith.constant 0 : i32
    return %c0_i32, %c0_i32_0 : i32, i32
  }
  func.func @transform_10(%arg0: i32) -> (i32, i32) {
    %c0_i32 = arith.constant 0 : i32
    %c0_i32_0 = arith.constant 0 : i32
    %c0_i32_1 = arith.constant 0 : i32
    return %c0_i32, %c0_i32_0 : i32, i32
  }
  func.func @transform_11(%arg0: i32) -> (i32, i32) {
    %c0_i32 = arith.constant 0 : i32
    %c0_i32_0 = arith.constant 0 : i32
    %c0_i32_1 = arith.constant 0 : i32
    return %c0_i32, %c0_i32_0 : i32, i32
  }
  func.func @transform_12(%arg0: i32) -> (i32, i32) {
    %c0_i32 = arith.constant 0 : i32
    %c0_i32_0 = arith.constant 0 : i32
    %c0_i32_1 = arith.constant 0 : i32
    return %c0_i32, %c0_i32_0 : i32, i32
  }
  func.func @transform_13(%arg0: i32) -> (i32, i32) {
    %c0_i32 = arith.constant 0 : i32
    %c0_i32_0 = arith.constant 0 : i32
    %c0_i32_1 = arith.constant 0 : i32
    return %c0_i32, %c0_i32_0 : i32, i32
  }
  func.func @transform_14(%arg0: i32) -> (i32, i32) {
    %c0_i32 = arith.constant 0 : i32
    %c0_i32_0 = arith.constant 0 : i32
    %c0_i32_1 = arith.constant 0 : i32
    return %c0_i32, %c0_i32_0 : i32, i32
  }
  func.func @transform_15(%arg0: i32) -> (i32, i32) {
    %c0_i32 = arith.constant 0 : i32
    %c0_i32_0 = arith.constant 0 : i32
    %c0_i32_1 = arith.constant 0 : i32
    return %c0_i32, %c0_i32_0 : i32, i32
  }
  func.func @transform_16(%arg0: i32) -> (i32, i32) {
    %c0_i32 = arith.constant 0 : i32
    %c0_i32_0 = arith.constant 0 : i32
    %c0_i32_1 = arith.constant 0 : i32
    return %c0_i32, %c0_i32_0 : i32, i32
  }
  func.func @transform_17(%arg0: i32) -> (i32, i32) {
    %c0_i32 = arith.constant 0 : i32
    %c0_i32_0 = arith.constant 0 : i32
    %c0_i32_1 = arith.constant 0 : i32
    return %c0_i32, %c0_i32_0 : i32, i32
  }
  func.func @transform_18(%arg0: i32) -> (i32, i32) {
    %c0_i32 = arith.constant 0 : i32
    %c0_i32_0 = arith.constant 0 : i32
    %c0_i32_1 = arith.constant 0 : i32
    return %c0_i32, %c0_i32_0 : i32, i32
  }
  func.func @transform_19(%arg0: i32) -> (i32, i32) {
    %c0_i32 = arith.constant 0 : i32
    %c0_i32_0 = arith.constant 0 : i32
    %c0_i32_1 = arith.constant 0 : i32
    return %c0_i32, %c0_i32_0 : i32, i32
  }
  func.func @transform_20(%arg0: i32) -> (i32, i32) {
    %c0_i32 = arith.constant 0 : i32
    %c0_i32_0 = arith.constant 0 : i32
    %c0_i32_1 = arith.constant 0 : i32
    return %c0_i32, %c0_i32_0 : i32, i32
  }
  func.func @transform_21(%arg0: i32) -> (i32, i32) {
    %c0_i32 = arith.constant 0 : i32
    %c0_i32_0 = arith.constant 0 : i32
    %c0_i32_1 = arith.constant 0 : i32
    return %c0_i32, %c0_i32_0 : i32, i32
  }
  func.func @transform_22(%arg0: i32) -> (i32, i32) {
    %c0_i32 = arith.constant 0 : i32
    %c0_i32_0 = arith.constant 0 : i32
    %c0_i32_1 = arith.constant 0 : i32
    return %c0_i32, %c0_i32_0 : i32, i32
  }
  func.func @transform_23(%arg0: i32) -> (i32, i32) {
    %c0_i32 = arith.constant 0 : i32
    %c0_i32_0 = arith.constant 0 : i32
    %c0_i32_1 = arith.constant 0 : i32
    return %c0_i32, %c0_i32_0 : i32, i32
  }
  func.func @transform_24(%arg0: i32) -> (i32, i32) {
    %c0_i32 = arith.constant 0 : i32
    %c0_i32_0 = arith.constant 0 : i32
    %c0_i32_1 = arith.constant 0 : i32
    return %c0_i32, %c0_i32_0 : i32, i32
  }
  func.func @transform_25(%arg0: i32) -> (i32, i32) {
    %c0_i32 = arith.constant 0 : i32
    %c0_i32_0 = arith.constant 0 : i32
    %c0_i32_1 = arith.constant 0 : i32
    return %c0_i32, %c0_i32_0 : i32, i32
  }
  func.func @transform_26(%arg0: i32) -> (i32, i32) {
    %c0_i32 = arith.constant 0 : i32
    %c0_i32_0 = arith.constant 0 : i32
    %c0_i32_1 = arith.constant 0 : i32
    return %c0_i32, %c0_i32_0 : i32, i32
  }
  func.func @transform_27(%arg0: i32) -> (i32, i32) {
    %c0_i32 = arith.constant 0 : i32
    %c0_i32_0 = arith.constant 0 : i32
    %c0_i32_1 = arith.constant 0 : i32
    return %c0_i32, %c0_i32_0 : i32, i32
  }
  func.func @transform_28(%arg0: i32) -> (i32, i32) {
    %c0_i32 = arith.constant 0 : i32
    %c0_i32_0 = arith.constant 0 : i32
    %c0_i32_1 = arith.constant 0 : i32
    return %c0_i32, %c0_i32_0 : i32, i32
  }
  func.func @transform_29(%arg0: i32) -> (i32, i32) {
    %c0_i32 = arith.constant 0 : i32
    %c0_i32_0 = arith.constant 0 : i32
    %c0_i32_1 = arith.constant 0 : i32
    return %c0_i32, %c0_i32_0 : i32, i32
  }
  func.func @transform_30(%arg0: i32) -> (i32, i32) {
    %c0_i32 = arith.constant 0 : i32
    %c0_i32_0 = arith.constant 0 : i32
    %c0_i32_1 = arith.constant 0 : i32
    return %c0_i32, %c0_i32_0 : i32, i32
  }
  func.func @transform_31(%arg0: i32) -> (i32, i32) {
    %c0_i32 = arith.constant 0 : i32
    %c0_i32_0 = arith.constant 0 : i32
    %c0_i32_1 = arith.constant 0 : i32
    return %c0_i32, %c0_i32_0 : i32, i32
  }
  func.func @transform_32(%arg0: i32) -> (i32, i32) {
    %c0_i32 = arith.constant 0 : i32
    %c0_i32_0 = arith.constant 0 : i32
    %c0_i32_1 = arith.constant 0 : i32
    return %c0_i32, %c0_i32_0 : i32, i32
  }
  func.func @transform_33(%arg0: i32) -> (i32, i32) {
    %c0_i32 = arith.constant 0 : i32
    %c0_i32_0 = arith.constant 0 : i32
    %c0_i32_1 = arith.constant 0 : i32
    return %c0_i32, %c0_i32_0 : i32, i32
  }
  func.func @transform_34(%arg0: i32) -> (i32, i32) {
    %c0_i32 = arith.constant 0 : i32
    %c0_i32_0 = arith.constant 0 : i32
    %c0_i32_1 = arith.constant 0 : i32
    return %c0_i32, %c0_i32_0 : i32, i32
  }
  func.func @transform_35(%arg0: i32) -> (i32, i32) {
    %c0_i32 = arith.constant 0 : i32
    %c0_i32_0 = arith.constant 0 : i32
    %c0_i32_1 = arith.constant 0 : i32
    return %c0_i32, %c0_i32_0 : i32, i32
  }
  func.func @transform_36(%arg0: i32) -> (i32, i32) {
    %c0_i32 = arith.constant 0 : i32
    %c0_i32_0 = arith.constant 0 : i32
    %c0_i32_1 = arith.constant 0 : i32
    return %c0_i32, %c0_i32_0 : i32, i32
  }
  func.func @transform_37(%arg0: i32) -> (i32, i32) {
    %c0_i32 = arith.constant 0 : i32
    %c0_i32_0 = arith.constant 0 : i32
    %c0_i32_1 = arith.constant 0 : i32
    return %c0_i32, %c0_i32_0 : i32, i32
  }
  func.func @transform_38(%arg0: i32) -> (i32, i32) {
    %c0_i32 = arith.constant 0 : i32
    %c0_i32_0 = arith.constant 0 : i32
    %c0_i32_1 = arith.constant 0 : i32
    return %c0_i32, %c0_i32_0 : i32, i32
  }
  func.func @transform_39(%arg0: i32) -> (i32, i32) {
    %c0_i32 = arith.constant 0 : i32
    %c0_i32_0 = arith.constant 0 : i32
    %c0_i32_1 = arith.constant 0 : i32
    return %c0_i32, %c0_i32_0 : i32, i32
  }
  func.func @transform_40(%arg0: i32) -> (i32, i32) {
    %c0_i32 = arith.constant 0 : i32
    %c0_i32_0 = arith.constant 0 : i32
    %c0_i32_1 = arith.constant 0 : i32
    return %c0_i32, %c0_i32_0 : i32, i32
  }
  func.func @transform_41(%arg0: i32) -> (i32, i32) {
    %c0_i32 = arith.constant 0 : i32
    %c0_i32_0 = arith.constant 0 : i32
    %c0_i32_1 = arith.constant 0 : i32
    return %c0_i32, %c0_i32_0 : i32, i32
  }
  func.func @transform_42(%arg0: i32) -> (i32, i32) {
    %c0_i32 = arith.constant 0 : i32
    %c0_i32_0 = arith.constant 0 : i32
    %c0_i32_1 = arith.constant 0 : i32
    return %c0_i32, %c0_i32_0 : i32, i32
  }
  func.func @transform_43(%arg0: i32) -> (i32, i32) {
    %c0_i32 = arith.constant 0 : i32
    %c0_i32_0 = arith.constant 0 : i32
    %c0_i32_1 = arith.constant 0 : i32
    return %c0_i32, %c0_i32_0 : i32, i32
  }
  func.func @transform_44(%arg0: i32) -> (i32, i32) {
    %c0_i32 = arith.constant 0 : i32
    %c0_i32_0 = arith.constant 0 : i32
    %c0_i32_1 = arith.constant 0 : i32
    return %c0_i32, %c0_i32_0 : i32, i32
  }
  func.func @transform_45(%arg0: i32) -> (i32, i32) {
    %c0_i32 = arith.constant 0 : i32
    %c0_i32_0 = arith.constant 0 : i32
    %c0_i32_1 = arith.constant 0 : i32
    return %c0_i32, %c0_i32_0 : i32, i32
  }
  func.func @transform_46(%arg0: i32) -> (i32, i32) {
    %c0_i32 = arith.constant 0 : i32
    %c0_i32_0 = arith.constant 0 : i32
    %c0_i32_1 = arith.constant 0 : i32
    return %c0_i32, %c0_i32_0 : i32, i32
  }
  func.func @transform_47(%arg0: i32) -> (i32, i32) {
    %c0_i32 = arith.constant 0 : i32
    %c0_i32_0 = arith.constant 0 : i32
    %c0_i32_1 = arith.constant 0 : i32
    return %c0_i32, %c0_i32_0 : i32, i32
  }
  func.func @transform_48(%arg0: i32) -> (i32, i32) {
    %c0_i32 = arith.constant 0 : i32
    %c0_i32_0 = arith.constant 0 : i32
    %c0_i32_1 = arith.constant 0 : i32
    return %c0_i32, %c0_i32_0 : i32, i32
  }
  func.func @transform_49(%arg0: i32) -> (i32, i32) {
    %c0_i32 = arith.constant 0 : i32
    %c0_i32_0 = arith.constant 0 : i32
    %c0_i32_1 = arith.constant 0 : i32
    return %c0_i32, %c0_i32_0 : i32, i32
  }
  func.func @transform_50(%arg0: i32) -> (i32, i32) {
    %c0_i32 = arith.constant 0 : i32
    %c0_i32_0 = arith.constant 0 : i32
    %c0_i32_1 = arith.constant 0 : i32
    return %c0_i32, %c0_i32_0 : i32, i32
  }
  func.func @transform_51(%arg0: i32) -> (i32, i32) {
    %c0_i32 = arith.constant 0 : i32
    %c0_i32_0 = arith.constant 0 : i32
    %c0_i32_1 = arith.constant 0 : i32
    return %c0_i32, %c0_i32_0 : i32, i32
  }
  func.func @transform_52(%arg0: i32) -> (i32, i32) {
    %c0_i32 = arith.constant 0 : i32
    %c0_i32_0 = arith.constant 0 : i32
    %c0_i32_1 = arith.constant 0 : i32
    return %c0_i32, %c0_i32_0 : i32, i32
  }
  func.func @transform_53(%arg0: i32) -> (i32, i32) {
    %c0_i32 = arith.constant 0 : i32
    %c0_i32_0 = arith.constant 0 : i32
    %c0_i32_1 = arith.constant 0 : i32
    return %c0_i32, %c0_i32_0 : i32, i32
  }
  func.func @transform_54(%arg0: i32) -> (i32, i32) {
    %c0_i32 = arith.constant 0 : i32
    %c0_i32_0 = arith.constant 0 : i32
    %c0_i32_1 = arith.constant 0 : i32
    return %c0_i32, %c0_i32_0 : i32, i32
  }
  func.func @transform_55(%arg0: i32) -> (i32, i32) {
    %c0_i32 = arith.constant 0 : i32
    %c0_i32_0 = arith.constant 0 : i32
    %c0_i32_1 = arith.constant 0 : i32
    return %c0_i32, %c0_i32_0 : i32, i32
  }
  func.func @transform_56(%arg0: i32) -> (i32, i32, i32) {
    %c0_i32 = arith.constant 0 : i32
    %c0_i32_0 = arith.constant 0 : i32
    %c0_i32_1 = arith.constant 0 : i32
    return %arg0, %c0_i32, %c0_i32_0 : i32, i32, i32
  }
}

</mosaic_0001>

<bundles_post_ra>
// kernel: decoder_forward.1
= control target key start
LH: loop header
LB: loop body
LE: loop exit
PB: predicated region body
PF: predicated region fallthrough
CT: control target
= control target key end

     0   :  { %s11709_s6 = smov 1   ;;  %s11710_s10 = smov 2   ;;  %s13517_s0 = inlined_call_operand.smem [shape: u32[57], index: -1, kind: input, shape index: {}] }
   0x1   :  { %s11821_s5 = sld [smem:[%s13517_s0]]   ;;  %s11711_s14 = smov 3  }
   0x2   :  { %s11826_s9 = sld [smem:[%s13517_s0 + %s11709_s6]]   ;;  %s11712_s18 = smov 4  }
   0x3   :  { %s11831_s13 = sld [smem:[%s13517_s0 + %s11710_s10]]   ;;  %s11713_s22 = smov 5  }
   0x4   :  { %s11836_s17 = sld [smem:[%s13517_s0 + %s11711_s14]]   ;;  %s11714_s26 = smov 6  }
   0x5   :  { %s11841_s21 = sld [smem:[%s13517_s0 + %s11712_s18]]   ;;  %s11715_s30 = smov 7  }
   0x6   :  { %s11846_s25 = sld [smem:[%s13517_s0 + %s11713_s22]]   ;;  %s11716_s4 = smov 8  }
   0x7   :  { %13602 = sst [smem:[#allocation84_spill]] %s11821_s5  ;;  %s11717_s10 = smov 9  }
   0x8   :  { %13603 = sst [smem:[#allocation85_spill]] %s11826_s9  ;;  %s11718_s15 = smov 10  }
   0x9   :  { %13604 = sst [smem:[#allocation86_spill]] %s11831_s13  ;;  %s11719_s20 = smov 11  }
   0xa   :  { %13605 = sst [smem:[#allocation87_spill]] %s11836_s17  ;;  %s11721_s1 = smov 13  }
   0xb   :  { %13606 = sst [smem:[#allocation88_spill]] %s11841_s21  ;;  %s11722_s7 = smov 14  }
   0xc   :  { %13607 = sst [smem:[#allocation89_spill]] %s11846_s25  ;;  %s11724_s22 = smov 16  }
   0xd   :  { %s11851_s29 = sld [smem:[%s13517_s0 + %s11714_s26]]   ;;  %s11720_s26 = smov 12  }
   0xe   :  { %s11856_s3 = sld [smem:[%s13517_s0 + %s11715_s30]]   ;;  %s11725_s28 = smov 17  }
   0xf   :  { %s11861_s8 = sld [smem:[%s13517_s0 + %s11716_s4]]  }
  0x10   :  { %s11866_s14 = sld [smem:[%s13517_s0 + %s11717_s10]]  }
  0x11   :  { %s11871_s19 = sld [smem:[%s13517_s0 + %s11718_s15]]   ;;  %s11723_s15 = smov 15  }
  0x12   :  { %s11876_s24 = sld [smem:[%s13517_s0 + %s11719_s20]]  }
  0x13   :  { %13608 = sst [smem:[#allocation90_spill]] %s11851_s29 }
  0x14   :  { %13609 = sst [smem:[#allocation91_spill]] %s11856_s3 }
  0x15   :  { %13610 = sst [smem:[#allocation92_spill]] %s11861_s8 }
  0x16   :  { %13611 = sst [smem:[#allocation93_spill]] %s11866_s14 }
  0x17   :  { %13612 = sst [smem:[#allocation94_spill]] %s11871_s19 }
  0x18   :  { %s11881_s30 = sld [smem:[%s13517_s0 + %s11720_s26]]  }
  0x19   :  { %s11886_s6 = sld [smem:[%s13517_s0 + %s11721_s1]]  }
  0x1a   :  { %s11891_s12 = sld [smem:[%s13517_s0 + %s11722_s7]]   ;;  %s11726_s7 = smov 18  }
  0x1b   :  { %s11896_s20 = sld [smem:[%s13517_s0 + %s11723_s15]]   ;;  %s11727_s15 = smov 19  }
  0x1c   :  { %s11901_s27 = sld [smem:[%s13517_s0 + %s11724_s22]]   ;;  %s11728_s22 = smov 20  }
  0x1d   :  { %s11906_s4 = sld [smem:[%s13517_s0 + %s11725_s28]]   ;;  %s11729_s28 = smov 21  }
  0x1e   :  { %13613 = sst [smem:[#allocation95_spill]] %s11881_s30 }
  0x1f   :  { %13614 = sst [smem:[#allocation96_spill]] %s11886_s6 }
  0x20   :  { %13615 = sst [smem:[#allocation97_spill]] %s11891_s12 }
  0x21   :  { %13616 = sst [smem:[#allocation98_spill]] %s11896_s20 }
  0x22   :  { %s11911_s17 = sld [smem:[%s13517_s0 + %s11726_s7]]   ;;  %s11730_s7 = smov 22  }
  0x23   :  { %13617 = sst [smem:[#allocation99_spill]] %s11906_s4 }
  0x24   :  { %s11916_s9 = sld [smem:[%s13517_s0 + %s11727_s15]]   ;;  %s11731_s15 = smov 23  }
  0x25   :  { %s11921_s12 = sld [smem:[%s13517_s0 + %s11728_s22]]   ;;  %s11732_s22 = smov 24  }
  0x26   :  { %s11926_s19 = sld [smem:[%s13517_s0 + %s11729_s28]]   ;;  %s11733_s28 = smov 25  }
  0x27   :  { %s11936_s13 = sld [smem:[%s13517_s0 + %s11731_s15]]   ;;  %s11735_s15 = smov 27  }
  0x28   :  { %13618 = sst [smem:[#allocation100_spill]] %s11911_s17 }
  0x29   :  { %s11931_s17 = sld [smem:[%s13517_s0 + %s11730_s7]]   ;;  %s11734_s7 = smov 26  }
  0x2a   :  { %13619 = sst [smem:[#allocation101_spill]] %s11916_s9 }
  0x2b   :  { %13620 = sst [smem:[#allocation102_spill]] %s11921_s12 }
  0x2c   :  { %s11941_s8 = sld [smem:[%s13517_s0 + %s11732_s22]]   ;;  %s11736_s22 = smov 28  }
  0x2d   :  { %13622 = sst [smem:[#allocation104_spill]] %s11936_s13 }
  0x2e   :  { %s11946_s5 = sld [smem:[%s13517_s0 + %s11733_s28]]   ;;  %s11737_s28 = smov 29  }
  0x2f   :  { %13621 = sst [smem:[#allocation103_spill]] %s11931_s17 }
  0x30   :  { %s11951_s21 = sld [smem:[%s13517_s0 + %s11734_s7]]   ;;  %s11738_s7 = smov 30  }
  0x31   :  { %s11956_s29 = sld [smem:[%s13517_s0 + %s11735_s15]]   ;;  %s11739_s15 = smov 31  }
  0x32   :  { %13623 = sst [smem:[#allocation105_spill]] %s11941_s8 }
  0x33   :  { %s11961_s8 = sld [smem:[%s13517_s0 + %s11736_s22]]   ;;  %s11740_s22 = smov 32  }
  0x34   :  { %13624 = sst [smem:[#allocation106_spill]] %s11946_s5 }
  0x35   :  { %s11966_s5 = sld [smem:[%s13517_s0 + %s11737_s28]]   ;;  %s11741_s28 = smov 33  }
  0x36   :  { %s11971_s17 = sld [smem:[%s13517_s0 + %s11738_s7]]   ;;  %s11742_s7 = smov 34  }
  0x37   :  { %13625 = sst [smem:[#allocation107_spill]] %s11956_s29 }
  0x38   :  { %s11976_s29 = sld [smem:[%s13517_s0 + %s11739_s15]]   ;;  %s11743_s15 = smov 35  }
  0x39   :  { %13626 = sst [smem:[#allocation108_spill]] %s11961_s8 }
  0x3a   :  { %s11981_s12 = sld [smem:[%s13517_s0 + %s11740_s22]]   ;;  %s11744_s22 = smov 36  }
  0x3b   :  { %13627 = sst [smem:[#allocation109_spill]] %s11966_s5 }
  0x3c   :  { %13628 = sst [smem:[#allocation110_spill]] %s11971_s17 }
  0x3d   :  { %s11986_s5 = sld [smem:[%s13517_s0 + %s11741_s28]]   ;;  %s11745_s28 = smov 37  }
  0x3e   :  { %13629 = sst [smem:[#allocation111_spill]] %s11976_s29 }
  0x3f   :  { %s11991_s17 = sld [smem:[%s13517_s0 + %s11742_s7]]   ;;  %s11746_s7 = smov 38  }
  0x40   :  { %13630 = sst [smem:[#allocation112_spill]] %s11981_s12 }
  0x41   :  { %s11996_s29 = sld [smem:[%s13517_s0 + %s11743_s15]]   ;;  %s11747_s15 = smov 39  }
  0x42   :  { %s12001_s12 = sld [smem:[%s13517_s0 + %s11744_s22]]   ;;  %s11748_s22 = smov 40  }
  0x43   :  { %13631 = sst [smem:[#allocation113_spill]] %s11986_s5 }
  0x44   :  { %s12006_s4 = sld [smem:[%s13517_s0 + %s11745_s28]]   ;;  %s11749_s28 = smov 41  }
  0x45   :  { %13632 = sst [smem:[#allocation114_spill]] %s11991_s17 }
  0x46   :  { %s12011_s17 = sld [smem:[%s13517_s0 + %s11746_s7]]   ;;  %s11750_s7 = smov 42  }
  0x47   :  { %13633 = sst [smem:[#allocation115_spill]] %s11996_s29 }
  0x48   :  { %13634 = sst [smem:[#allocation116_spill]] %s12001_s12 }
  0x49   :  { %s12016_s29 = sld [smem:[%s13517_s0 + %s11747_s15]]   ;;  %s11751_s15 = smov 43  }
  0x4a   :  { %13635 = sst [smem:[#allocation117_spill]] %s12006_s4 }
  0x4b   :  { %s12021_s12 = sld [smem:[%s13517_s0 + %s11748_s22]]   ;;  %s11752_s22 = smov 44  }
  0x4c   :  { %13636 = sst [smem:[#allocation118_spill]] %s12011_s17 }
  0x4d   :  { %s12026_s20 = sld [smem:[%s13517_s0 + %s11749_s28]]   ;;  %s11753_s28 = smov 45  }
  0x4e   :  { %s12031_s17 = sld [smem:[%s13517_s0 + %s11750_s7]]   ;;  %s11754_s7 = smov 46  }
  0x4f   :  { %s12036_s30 = sld [smem:[%s13517_s0 + %s11751_s15]]   ;;  %s11755_s15 = smov 47  }
  0x50   :  { %s12046_s14 = sld [smem:[%s13517_s0 + %s11753_s28]]   ;;  %s11757_s28 = smov 49  }
  0x51   :  { %13637 = sst [smem:[#allocation119_spill]] %s12021_s12 }
  0x52   :  { %s12041_s12 = sld [smem:[%s13517_s0 + %s11752_s22]]   ;;  %s11756_s22 = smov 48  }
  0x53   :  { %s12056_s25 = sld [smem:[%s13517_s0 + %s11755_s15]]   ;;  %s11759_s15 = smov 51  }
  0x54   :  { %13638 = sst [smem:[#allocation120_spill]] %s12031_s17 }
  0x55   :  { %s12051_s17 = sld [smem:[%s13517_s0 + %s11754_s7]]   ;;  %s11758_s7 = smov 50  }
  0x56   :  { %13640 = sst [smem:[#allocation122_spill]] %s12046_s14 }
  0x57   :  { %s12066_s14 = sld [smem:[%s13517_s0 + %s11757_s28]]   ;;  %s11761_s28 = smov 53  }
  0x58   :  { %13639 = sst [smem:[#allocation121_spill]] %s12041_s12 }
  0x59   :  { %13642 = sst [smem:[#allocation124_spill]] %s12056_s25 }
  0x5a   :  { %s12061_s12 = sld [smem:[%s13517_s0 + %s11756_s22]]   ;;  %s11760_s22 = smov 52  }
  0x5b   :  { %13641 = sst [smem:[#allocation123_spill]] %s12051_s17 }
  0x5c   :  { %s12071_s17 = sld [smem:[%s13517_s0 + %s11758_s7]]   ;;  %s11762_s7 = smov 54  }
  0x5d   :  { %13644 = sst [smem:[#allocation126_spill]] %s12066_s14 }
  0x5e   :  { %s12076_s25 = sld [smem:[%s13517_s0 + %s11759_s15]]   ;;  %s11763_s15 = smov 55  }
  0x5f   :  { %s12086_s14 = sld [smem:[%s13517_s0 + %s11761_s28]]  }
  0x60   :  { %13643 = sst [smem:[#allocation125_spill]] %s12061_s12 }
  0x61   :  { %s12081_s12 = sld [smem:[%s13517_s0 + %s11760_s22]]   ;;  %s11764_s22 = smov 56  }
  0x62   :  { %13645 = sst [smem:[#allocation127_spill]] %s12071_s17 }
  0x63   :  { %s12091_s17 = sld [smem:[%s13517_s0 + %s11762_s7]]  }
  0x64   :  { %13646 = sst [smem:[#allocation128_spill]] %s12076_s25 }
  0x65   :  { %s12096_s25 = sld [smem:[%s13517_s0 + %s11763_s15]]  }
  0x67   :  { %13647 = sst [smem:[#allocation129_spill]] %s12081_s12 }
  0x68   :  { %s12101_s12 = sld [smem:[%s13517_s0 + %s11764_s22]]  }
  0x69   :  { %13648 = sst [smem:[#allocation130_spill]] %s12091_s17 }
  0x6a   :  { %118 = vsyncpa [#allocation3], 0 }
  0x6b   :  { %119 = vsyncpa [#allocation6], 0 }
  0x6c   :  { %120 = vsyncpa [#allocation9], 0 }
  0x6d   :  { %121 = vsyncpa [#allocation12], 0 }
  0x6e   :  { %122 = vsyncpa [#allocation15], 0 }
  0x6f   :  { %123 = vsyncpa [#allocation18], 0 }
  0x70   :  { %124 = vsyncpa [#allocation21], 0 }
  0x71   :  { %125 = vsyncpa [#allocation24], 0 }
  0x72   :  { %126 = vsyncpa [#allocation27], 0 }
  0x73   :  { %127 = vsyncpa [#allocation30], 0 }
  0x74   :  { %128 = vsyncpa [#allocation33], 0 }
  0x75   :  { %129 = vsyncpa [#allocation36], 0 }
  0x76   :  { %130 = vsyncpa [#allocation39], 0 }
  0x77   :  { %131 = vsyncpa [#allocation42], 0 }
  0x78   :  { %132 = vsyncpa [#allocation45], 0 }
  0x79   :  { %133 = vsyncpa [#allocation48], 0 }
  0x7a   :  { %134 = vsyncpa [#allocation51], 0 }
  0x7b   :  { %135 = vsyncpa [#allocation54], 0 }
  0x7c   :  { %136 = vsyncpa [#allocation57], 0 }
  0x7d   :  { %137 = vsyncpa [#allocation60], 0 }
  0x7e   :  { %138 = vsyncpa [#allocation4], 0 }
  0x7f   :  { %140 = vsyncpa [#allocation4 + $0x1], 0  ;;  %s12103_s0 = smov 0   ;;  %s12105_s28 = smov 0  }
  0x80   :  { %s12107_s1 = smov 0   ;;  %s12109_s2 = smov 0  }
  0x81 LB: > { %s13649_s17 = sld [smem:[#allocation130_spill]]  ;;  %s13650_s13 = sld [smem:[#allocation104_spill]]  ;;  %s11707_s2 = sphi %s12109_s2, %s13720_s2   ;;  %s11703_s1 = sphi %s12107_s1, %s13722_s1   ;;  %s11699_s28 = sphi %s12105_s28, %s13724_s28   ;;  %s11695_s0 = sphi %s12103_s0, %s13723_s0  }
  0x82   : > { %s13651_s9 = sld [smem:[#allocation101_spill]]  ;;  %s13652_s8 = sld [smem:[#allocation108_spill]] }
  0x83   : > { %s13653_s5 = sld [smem:[#allocation113_spill]]  ;;  %s13654_s4 = sld [smem:[#allocation117_spill]] }
  0x84   : > { %s13655_s6 = sld [smem:[#allocation96_spill]]  ;;  %s13656_s3 = sld [smem:[#allocation91_spill]] }
  0x85   : > { %13657 = sst [smem:[#allocation131_spill]] %s11703_s1  ;;  %s12124_s7 = sadd.s32 4294967295, %s11707_s2  }
  0x86   : > { %s8605_s10 = sadd.s32 4294967294, %s11707_s2   ;;  %s12128_s11 = sadd.s32 1, %s11707_s2  }
  0x87   : > { %13658 = sst [smem:[#allocation132_spill]] %s12128_s11  ;;  %s1349_s15 = sadd.s32 1, %s11703_s1 }
  0x88   : > { %s1346_s16 = ssub.s32 %s11707_s2, %s12128_s11  ;;  %p1359_p0 = scmp.ne.s32.totalorder %s11703_s1, %s11699_s28 }
  0x89   : > { %p1347_p1 = scmp.eq.s32.totalorder %s1346_s16, 0  ;;  %p1360_p2 = scmp.eq.s32.totalorder %s12124_s7, 1 }
  0x8a   : > { %p1365_p3 = scmp.ne.s32.totalorder %s11699_s28, %s11695_s0  ;;  %p1366_p4 = scmp.eq.s32.totalorder %s8605_s10, 1 }
  0x8b   : > { %s12139_s18 = scalar_select %p1347_p1, %s11703_s1, %s1349_s15  }
  0x8c   : > { %p12141_p5 = por %p1360_p2, %p1359_p0  ;;  %p12145_p6 = por %p1366_p4, %p1365_p3 }
  0x8d   : > { %13659 = sst [smem:[#allocation133_spill]] %s12139_s18  ;;  %p8606_p7 = scmp.ge.s32.totalorder %s11707_s2, 1 }
  0x8e   : > { %s13660_s22 = scalar_select %p12141_p5, 1, 0 }
  0x8f   : > { %s13661_s23 = scalar_select %p12145_p6, 1, 0 }
  0x90   : > { %p1373_p8 = scmp.lt.s32.totalorder %s11707_s2, 3 }
  0x91   : > { %13662 = sst [smem:[#allocation134_spill]] %s13661_s23 }
  0x92   : > { %p12151_p9 = pnand %p8606_p7, %p1373_p8 }
  0x93   : > { %p10138_p10 = scmp.eq.s32.totalorder (!%p12151_p9), %s12124_s7, 0  ;;  %s11765_s10 = smov (!%p12151_p9), [#allocation5]  }
  0x94   : > { %1377 = sbr.rel (%p12151_p9) target bundleno = 1094 (0x446), region = 12  ;;  %s1403_s15 = sshll.u32 (!%p12151_p9), %s11765_s10, 4  ;;  %s1404_s15 = int_to_ptr.vmem [resolvable:$true] %s1403_s15 }
  0x95   : > { %s11766_s16 = smov (!%p12151_p9), [#allocation8]   ;;  %s10551_s1 = scalar_lea.hbm (!%p12151_p9), %s13656_s3, 16 }
  0x96   : > { %s1431_s18 = sshll.u32 (!%p12151_p9), %s11766_s16, 4  ;;  %p10552_p11 = scmp.ne.s32.totalorder (!%p12151_p9), %s13656_s3, %s10551_s1  ;;  %s1432_s18 = int_to_ptr.vmem [resolvable:$true] %s1431_s18 }
  0x97   : > { %p10557_p0 = scmp.lt.u32.totalorder (!%p12151_p9), %s10551_s1, %s13656_s3 }
  0x98   : > { %p10553_p12 = pnand (!%p12151_p9), %p10552_p11, %p10138_p10 }
  0x9a   : > { %p10554_p13 = pneg (!%p12151_p9), %p10553_p12 }
  0x9c   : > { %p10559_p1 = pnand %p10557_p0, %p10554_p13 }
  0x9e   : > { %10562 = shalt.err (!%p10559_p1)
}
  0x9f   : > { %s10563_s11 = scalar_lea.vmem %s1404_s15, 16  ;;  %s10569_s23 = scalar_lea.vmem %s1404_s15, 32 }
  0xa0   : > { %p10564_p2 = scmp.ne.s32.totalorder %s1404_s15, %s10563_s11  ;;  %p10570_p7 = scmp.lt.s32.totalorder %s1404_s15, %s1404_s15 }
  0xa1   : > { %p10571_p8 = scmp.lt.s32.totalorder %s10569_s23, %s10563_s11 }
  0xa2   : > { %p10565_p3 = pnand %p10564_p2, %p10138_p10 }
  0xa3   : > { %p10572_p6 = por %p10571_p8, %p10570_p7 }
  0xa4   : > { %p10566_p4 = pneg %p10565_p3 }
  0xa6   : > { %p10573_p5 = pnand %p10572_p6, %p10566_p4 }
  0xa8   : > { %10576 = shalt.err (!%p10573_p5)
}
  0xa9   : > { %9979 = dma.hbm_to_vmem [thread:$0]  (%p10138_p10), %s13656_s3, 16, %s1404_s15, [#allocation6]  }
  0xaa   : > { %s10577_s1 = scalar_lea.hbm %s11876_s24, 16 }
  0xab   : > { %p10578_p11 = scmp.ne.s32.totalorder %s11876_s24, %s10577_s1  ;;  %p10583_p0 = scmp.lt.u32.totalorder %s10577_s1, %s11876_s24 }
  0xad   : > { %p10579_p12 = pnand %p10578_p11, %p10138_p10 }
  0xaf   : > { %p10580_p13 = pneg %p10579_p12 }
  0xb1   : > { %p10585_p1 = pnand %p10583_p0, %p10580_p13 }
  0xb3   : > { %10588 = shalt.err (!%p10585_p1)
}
  0xb4   : > { %s10589_s11 = scalar_lea.vmem %s1432_s18, 16  ;;  %s10595_s23 = scalar_lea.vmem %s1432_s18, 32 }
  0xb5   : > { %p10590_p5 = scmp.ne.s32.totalorder %s1432_s18, %s10589_s11  ;;  %p10596_p3 = scmp.lt.s32.totalorder %s1432_s18, %s1432_s18 }
  0xb6   : > { %p10597_p4 = scmp.lt.s32.totalorder %s10595_s23, %s10589_s11 }
  0xb7   : > { %p10591_p6 = pnand %p10590_p5, %p10138_p10 }
  0xb8   : > { %p10598_p7 = por %p10597_p4, %p10596_p3 }
  0xb9   : > { %p10592_p2 = pneg %p10591_p6 }
  0xbb   : > { %p10599_p8 = pnand %p10598_p7, %p10592_p2 }
  0xbd   : > { %10602 = shalt.err (!%p10599_p8)
}
  0xbe   : > { %9983 = dma.hbm_to_vmem [thread:$0]  (%p10138_p10), %s11876_s24, 16, %s1432_s18, [#allocation9]  }
  0xbf   : > { %s11767_s10 = smov [#allocation11]   ;;  %s11768_s16 = smov [#allocation14]  }
  0xc0   : > { %s1453_s15 = sshll.u32 %s11767_s10, 4  ;;  %s1477_s1 = sshll.u32 %s11768_s16, 4  ;;  %s1454_s15 = int_to_ptr.vmem [resolvable:$true] %s1453_s15  ;;  %s1478_s1 = int_to_ptr.vmem [resolvable:$true] %s1477_s1 }
  0xc1   : > { %s10603_s3 = scalar_lea.hbm %s13655_s6, 16 }
  0xc2   : > { %p10604_p11 = scmp.ne.s32.totalorder %s13655_s6, %s10603_s3  ;;  %p10609_p0 = scmp.lt.u32.totalorder %s10603_s3, %s13655_s6 }
  0xc4   : > { %p10605_p12 = pnand %p10604_p11, %p10138_p10 }
  0xc6   : > { %p10606_p13 = pneg %p10605_p12 }
  0xc8   : > { %p10611_p1 = pnand %p10609_p0, %p10606_p13 }
  0xca   : > { %10614 = shalt.err (!%p10611_p1)
}
  0xcb   : > { %s10615_s11 = scalar_lea.vmem %s1454_s15, 16  ;;  %s10621_s18 = scalar_lea.vmem %s1454_s15, 32 }
  0xcc   : > { %p10616_p5 = scmp.ne.s32.totalorder %s1454_s15, %s10615_s11  ;;  %p10622_p3 = scmp.lt.s32.totalorder %s1454_s15, %s1454_s15 }
  0xcd   : > { %p10623_p4 = scmp.lt.s32.totalorder %s10621_s18, %s10615_s11 }
  0xce   : > { %p10617_p6 = pnand %p10616_p5, %p10138_p10 }
  0xcf   : > { %p10624_p7 = por %p10623_p4, %p10622_p3 }
  0xd0   : > { %p10618_p2 = pneg %p10617_p6 }
  0xd2   : > { %p10625_p8 = pnand %p10624_p7, %p10618_p2 }
  0xd4   : > { %10628 = shalt.err (!%p10625_p8)
}
  0xd5   : > { %9987 = dma.hbm_to_vmem [thread:$0]  (%p10138_p10), %s13655_s6, 16, %s1454_s15, [#allocation12]  }
  0xd6   : > { %s10629_s3 = scalar_lea.hbm %s11901_s27, 512 }
  0xd7   : > { %p10630_p11 = scmp.ne.s32.totalorder %s11901_s27, %s10629_s3  ;;  %p10635_p0 = scmp.lt.u32.totalorder %s10629_s3, %s11901_s27 }
  0xd9   : > { %p10631_p12 = pnand %p10630_p11, %p10138_p10 }
  0xdb   : > { %p10632_p13 = pneg %p10631_p12 }
  0xdd   : > { %p10637_p1 = pnand %p10635_p0, %p10632_p13 }
  0xdf   : > { %10640 = shalt.err (!%p10637_p1)
}
  0xe0   : > { %s10641_s23 = scalar_lea.vmem %s1478_s1, 512  ;;  %p10648_p3 = scmp.lt.s32.totalorder %s1478_s1, %s1478_s1 }
  0xe1   : > { %p10642_p5 = scmp.ne.s32.totalorder %s1478_s1, %s10641_s23  ;;  %p10649_p4 = scmp.lt.s32.totalorder %s10641_s23, %s10641_s23 }
  0xe3   : > { %p10643_p6 = pnand %p10642_p5, %p10138_p10  ;;  %p10650_p7 = por %p10649_p4, %p10648_p3 }
  0xe5   : > { %p10644_p2 = pneg %p10643_p6 }
  0xe7   : > { %p10651_p8 = pnand %p10650_p7, %p10644_p2 }
  0xe9   : > { %10654 = shalt.err (!%p10651_p8)
}
  0xea   : > { %s13559_s10 = smov 128   ;;  %s13561_s15 = smov 8  }
  0xeb   : > { %9991 = dma.hbm_to_vmem [thread:$0]  (%p10138_p10), %s11901_s27, 512, %s1478_s1, [#allocation15], %s13559_s10, %s13559_s10, %s13561_s15  }
  0xec   : > { %s11771_s16 = smov [#allocation17]   ;;  %s11772_s18 = smov [#allocation20]  }
  0xed   : > { %s1505_s11 = sshll.u32 %s11771_s16, 4  ;;  %s1529_s3 = sshll.u32 %s11772_s18, 4  ;;  %s1506_s11 = int_to_ptr.vmem [resolvable:$true] %s1505_s11  ;;  %s1530_s3 = int_to_ptr.vmem [resolvable:$true] %s1529_s3 }
  0xee   : > { %s10655_s23 = scalar_lea.hbm %s13651_s9, 16 }
  0xef   : > { %p10656_p11 = scmp.ne.s32.totalorder %s13651_s9, %s10655_s23  ;;  %p10661_p0 = scmp.lt.u32.totalorder %s10655_s23, %s13651_s9 }
  0xf1   : > { %p10657_p12 = pnand %p10656_p11, %p10138_p10 }
  0xf3   : > { %p10658_p13 = pneg %p10657_p12 }
  0xf5   : > { %p10663_p1 = pnand %p10661_p0, %p10658_p13 }
  0xf7   : > { %10666 = shalt.err (!%p10663_p1)
}
  0xf8   : > { %s10667_s6 = scalar_lea.vmem %s1506_s11, 16  ;;  %s10673_s1 = scalar_lea.vmem %s1506_s11, 32 }
  0xf9   : > { %p10668_p5 = scmp.ne.s32.totalorder %s1506_s11, %s10667_s6  ;;  %p10674_p3 = scmp.lt.s32.totalorder %s1506_s11, %s1506_s11 }
  0xfa   : > { %p10675_p4 = scmp.lt.s32.totalorder %s10673_s1, %s10667_s6 }
  0xfb   : > { %p10669_p6 = pnand %p10668_p5, %p10138_p10 }
  0xfc   : > { %p10676_p7 = por %p10675_p4, %p10674_p3 }
  0xfd   : > { %p10670_p2 = pneg %p10669_p6 }
  0xff   : > { %p10677_p8 = pnand %p10676_p7, %p10670_p2 }
 0x101   : > { %10680 = shalt.err (!%p10677_p8)
}
 0x102   : > { %9995 = dma.hbm_to_vmem [thread:$0]  (%p10138_p10), %s13651_s9, 16, %s1506_s11, [#allocation18]  }
 0x103   : > { %s10681_s16 = scalar_lea.hbm %s11926_s19, 16 }
 0x104   : > { %p10682_p11 = scmp.ne.s32.totalorder %s11926_s19, %s10681_s16  ;;  %p10687_p0 = scmp.lt.u32.totalorder %s10681_s16, %s11926_s19 }
 0x106   : > { %p10683_p12 = pnand %p10682_p11, %p10138_p10 }
 0x108   : > { %p10684_p13 = pneg %p10683_p12 }
 0x10a   : > { %p10689_p1 = pnand %p10687_p0, %p10684_p13 }
 0x10c   : > { %10692 = shalt.err (!%p10689_p1)
}
 0x10d   : > { %s10693_s6 = scalar_lea.vmem %s1530_s3, 16  ;;  %s10699_s18 = scalar_lea.vmem %s1530_s3, 32 }
 0x10e   : > { %p10694_p5 = scmp.ne.s32.totalorder %s1530_s3, %s10693_s6  ;;  %p10700_p3 = scmp.lt.s32.totalorder %s1530_s3, %s1530_s3 }
 0x10f   : > { %p10701_p4 = scmp.lt.s32.totalorder %s10699_s18, %s10693_s6 }
 0x110   : > { %p10695_p6 = pnand %p10694_p5, %p10138_p10 }
 0x111   : > { %p10702_p7 = por %p10701_p4, %p10700_p3 }
 0x112   : > { %p10696_p2 = pneg %p10695_p6 }
 0x114   : > { %p10703_p8 = pnand %p10702_p7, %p10696_p2 }
 0x116   : > { %10706 = shalt.err (!%p10703_p8)
}
 0x117   : > { %9999 = dma.hbm_to_vmem [thread:$0]  (%p10138_p10), %s11926_s19, 16, %s1530_s3, [#allocation21]  }
 0x118   : > { %s11773_s11 = smov [#allocation23]   ;;  %s11774_s1 = smov [#allocation26]  }
 0x119   : > { %s1551_s23 = sshll.u32 %s11773_s11, 4  ;;  %s1575_s16 = sshll.u32 %s11774_s1, 4  ;;  %s1552_s23 = int_to_ptr.vmem [resolvable:$true] %s1551_s23  ;;  %s1576_s16 = int_to_ptr.vmem [resolvable:$true] %s1575_s16 }
 0x11a   : > { %s10707_s10 = scalar_lea.hbm %s13650_s13, 16 }
 0x11b   : > { %p10708_p11 = scmp.ne.s32.totalorder %s13650_s13, %s10707_s10  ;;  %p10713_p0 = scmp.lt.u32.totalorder %s10707_s10, %s13650_s13 }
 0x11d   : > { %p10709_p12 = pnand %p10708_p11, %p10138_p10 }
 0x11f   : > { %p10710_p13 = pneg %p10709_p12 }
 0x121   : > { %p10715_p1 = pnand %p10713_p0, %p10710_p13 }
 0x123   : > { %10718 = shalt.err (!%p10715_p1)
}
 0x124   : > { %s10719_s6 = scalar_lea.vmem %s1552_s23, 16  ;;  %s10725_s3 = scalar_lea.vmem %s1552_s23, 32 }
 0x125   : > { %p10720_p5 = scmp.ne.s32.totalorder %s1552_s23, %s10719_s6  ;;  %p10726_p3 = scmp.lt.s32.totalorder %s1552_s23, %s1552_s23 }
 0x126   : > { %p10727_p4 = scmp.lt.s32.totalorder %s10725_s3, %s10719_s6 }
 0x127   : > { %p10721_p6 = pnand %p10720_p5, %p10138_p10 }
 0x128   : > { %p10728_p7 = por %p10727_p4, %p10726_p3 }
 0x129   : > { %p10722_p2 = pneg %p10721_p6 }
 0x12b   : > { %p10729_p8 = pnand %p10728_p7, %p10722_p2 }
 0x12d   : > { %10732 = shalt.err (!%p10729_p8)
}
 0x12e   : > { %10003 = dma.hbm_to_vmem [thread:$0]  (%p10138_p10), %s13650_s13, 16, %s1552_s23, [#allocation24]  }
 0x12f   : > { %s10733_s10 = scalar_lea.hbm %s11951_s21, 512 }
 0x130   : > { %p10734_p11 = scmp.ne.s32.totalorder %s11951_s21, %s10733_s10  ;;  %p10739_p0 = scmp.lt.u32.totalorder %s10733_s10, %s11951_s21 }
 0x132   : > { %p10735_p12 = pnand %p10734_p11, %p10138_p10 }
 0x134   : > { %p10736_p13 = pneg %p10735_p12 }
 0x136   : > { %p10741_p1 = pnand %p10739_p0, %p10736_p13 }
 0x138   : > { %10744 = shalt.err (!%p10741_p1)
}
 0x139   : > { %s10745_s18 = scalar_lea.vmem %s1576_s16, 512  ;;  %p10752_p3 = scmp.lt.s32.totalorder %s1576_s16, %s1576_s16 }
 0x13a   : > { %p10746_p5 = scmp.ne.s32.totalorder %s1576_s16, %s10745_s18  ;;  %p10753_p4 = scmp.lt.s32.totalorder %s10745_s18, %s10745_s18 }
 0x13c   : > { %p10747_p6 = pnand %p10746_p5, %p10138_p10  ;;  %p10754_p7 = por %p10753_p4, %p10752_p3 }
 0x13e   : > { %p10748_p2 = pneg %p10747_p6 }
 0x140   : > { %p10755_p8 = pnand %p10754_p7, %p10748_p2 }
 0x142   : > { %10758 = shalt.err (!%p10755_p8)
}
 0x143   : > { %s13664_s11 = smov 128   ;;  %s11775_s23 = smov [#allocation29]  }
 0x144   : > { %10007 = dma.hbm_to_vmem [thread:$0]  (%p10138_p10), %s11951_s21, 512, %s1576_s16, [#allocation27], %s13664_s11, %s13664_s11, %s13561_s15  }
 0x145   : > { %s1600_s1 = sshll.u32 %s11775_s23, 4  ;;  %s11776_s6 = smov [#allocation32]   ;;  %s1601_s1 = int_to_ptr.vmem [resolvable:$true] %s1600_s1 }
 0x146   : > { %s1631_s3 = sshll.u32 %s11776_s6, 4  ;;  %s10759_s10 = scalar_lea.hbm %s13652_s8, 16  ;;  %s1632_s3 = int_to_ptr.vmem [resolvable:$true] %s1631_s3 }
 0x147   : > { %p10760_p11 = scmp.ne.s32.totalorder %s13652_s8, %s10759_s10  ;;  %p10765_p0 = scmp.lt.u32.totalorder %s10759_s10, %s13652_s8 }
 0x149   : > { %p10761_p12 = pnand %p10760_p11, %p10138_p10 }
 0x14b   : > { %p10762_p13 = pneg %p10761_p12 }
 0x14d   : > { %p10767_p1 = pnand %p10765_p0, %p10762_p13 }
 0x14f   : > { %10770 = shalt.err (!%p10767_p1)
}
 0x150   : > { %s10771_s18 = scalar_lea.vmem %s1601_s1, 16  ;;  %s10777_s16 = scalar_lea.vmem %s1601_s1, 32 }
 0x151   : > { %p10772_p5 = scmp.ne.s32.totalorder %s1601_s1, %s10771_s18  ;;  %p10778_p3 = scmp.lt.s32.totalorder %s1601_s1, %s1601_s1 }
 0x152   : > { %p10779_p4 = scmp.lt.s32.totalorder %s10777_s16, %s10771_s18 }
 0x153   : > { %p10773_p6 = pnand %p10772_p5, %p10138_p10 }
 0x154   : > { %p10780_p7 = por %p10779_p4, %p10778_p3 }
 0x155   : > { %p10774_p2 = pneg %p10773_p6 }
 0x157   : > { %p10781_p8 = pnand %p10780_p7, %p10774_p2 }
 0x159   : > { %10784 = shalt.err (!%p10781_p8)
}
 0x15a   : > { %10011 = dma.hbm_to_vmem [thread:$0]  (%p10138_p10), %s13652_s8, 16, %s1601_s1, [#allocation30]  }
 0x15b   : > { %s10785_s23 = scalar_lea.hbm %s13653_s5, 16 }
 0x15c   : > { %p10786_p11 = scmp.ne.s32.totalorder %s13653_s5, %s10785_s23  ;;  %p10791_p0 = scmp.lt.u32.totalorder %s10785_s23, %s13653_s5 }
 0x15e   : > { %p10787_p12 = pnand %p10786_p11, %p10138_p10 }
 0x160   : > { %p10788_p13 = pneg %p10787_p12 }
 0x162   : > { %p10793_p1 = pnand %p10791_p0, %p10788_p13 }
 0x164   : > { %10796 = shalt.err (!%p10793_p1)
}
 0x165   : > { %s10797_s6 = scalar_lea.vmem %s1632_s3, 16  ;;  %s10803_s10 = scalar_lea.vmem %s1632_s3, 32 }
 0x166   : > { %p10798_p5 = scmp.ne.s32.totalorder %s1632_s3, %s10797_s6  ;;  %p10804_p3 = scmp.lt.s32.totalorder %s1632_s3, %s1632_s3 }
 0x167   : > { %p10805_p4 = scmp.lt.s32.totalorder %s10803_s10, %s10797_s6 }
 0x168   : > { %p10799_p6 = pnand %p10798_p5, %p10138_p10 }
 0x169   : > { %p10806_p7 = por %p10805_p4, %p10804_p3 }
 0x16a   : > { %p10800_p2 = pneg %p10799_p6 }
 0x16c   : > { %p10807_p8 = pnand %p10806_p7, %p10800_p2 }
 0x16e   : > { %10810 = shalt.err (!%p10807_p8)
}
 0x16f   : > { %10015 = dma.hbm_to_vmem [thread:$0]  (%p10138_p10), %s13653_s5, 16, %s1632_s3, [#allocation33]  }
 0x170   : > { %s11777_s1 = smov [#allocation35]   ;;  %s11778_s16 = smov [#allocation38]  }
 0x171   : > { %s1659_s18 = sshll.u32 %s11777_s1, 4  ;;  %s1681_s23 = sshll.u32 %s11778_s16, 4  ;;  %s1660_s18 = int_to_ptr.vmem [resolvable:$true] %s1659_s18  ;;  %s1682_s23 = int_to_ptr.vmem [resolvable:$true] %s1681_s23 }
 0x172   : > { %s10811_s15 = scalar_lea.hbm %s13654_s4, 16 }
 0x173   : > { %p10812_p11 = scmp.ne.s32.totalorder %s13654_s4, %s10811_s15  ;;  %p10817_p0 = scmp.lt.u32.totalorder %s10811_s15, %s13654_s4 }
 0x175   : > { %p10813_p12 = pnand %p10812_p11, %p10138_p10 }
 0x177   : > { %p10814_p13 = pneg %p10813_p12 }
 0x179   : > { %p10819_p1 = pnand %p10817_p0, %p10814_p13 }
 0x17b   : > { %10822 = shalt.err (!%p10819_p1)
}
 0x17c   : > { %s10823_s6 = scalar_lea.vmem %s1660_s18, 16  ;;  %s10829_s3 = scalar_lea.vmem %s1660_s18, 32 }
 0x17d   : > { %p10824_p5 = scmp.ne.s32.totalorder %s1660_s18, %s10823_s6  ;;  %p10830_p3 = scmp.lt.s32.totalorder %s1660_s18, %s1660_s18 }
 0x17e   : > { %p10831_p4 = scmp.lt.s32.totalorder %s10829_s3, %s10823_s6 }
 0x17f   : > { %p10825_p6 = pnand %p10824_p5, %p10138_p10 }
 0x180   : > { %p10832_p7 = por %p10831_p4, %p10830_p3 }
 0x181   : > { %p10826_p2 = pneg %p10825_p6 }
 0x183   : > { %p10833_p8 = pnand %p10832_p7, %p10826_p2 }
 0x185   : > { %10836 = shalt.err (!%p10833_p8)
}
 0x186   : > { %10019 = dma.hbm_to_vmem [thread:$0]  (%p10138_p10), %s13654_s4, 16, %s1660_s18, [#allocation36]  }
 0x187   : > { %s10837_s15 = scalar_lea.hbm %s12016_s29, 16 }
 0x188   : > { %p10838_p11 = scmp.ne.s32.totalorder %s12016_s29, %s10837_s15  ;;  %p10843_p0 = scmp.lt.u32.totalorder %s10837_s15, %s12016_s29 }
 0x18a   : > { %p10839_p12 = pnand %p10838_p11, %p10138_p10 }
 0x18c   : > { %p10840_p13 = pneg %p10839_p12 }
 0x18e   : > { %p10845_p1 = pnand %p10843_p0, %p10840_p13 }
 0x190   : > { %10848 = shalt.err (!%p10845_p1)
}
 0x191   : > { %s10849_s10 = scalar_lea.vmem %s1682_s23, 16  ;;  %s10855_s1 = scalar_lea.vmem %s1682_s23, 32 }
 0x192   : > { %p10850_p5 = scmp.ne.s32.totalorder %s1682_s23, %s10849_s10  ;;  %p10856_p3 = scmp.lt.s32.totalorder %s1682_s23, %s1682_s23 }
 0x193   : > { %p10857_p4 = scmp.lt.s32.totalorder %s10855_s1, %s10849_s10 }
 0x194   : > { %p10851_p6 = pnand %p10850_p5, %p10138_p10 }
 0x195   : > { %p10858_p7 = por %p10857_p4, %p10856_p3 }
 0x196   : > { %p10852_p2 = pneg %p10851_p6 }
 0x198   : > { %p10859_p8 = pnand %p10858_p7, %p10852_p2 }
 0x19a   : > { %10862 = shalt.err (!%p10859_p8)
}
 0x19b   : > { %10023 = dma.hbm_to_vmem [thread:$0]  (%p10138_p10), %s12016_s29, 16, %s1682_s23, [#allocation39]  }
 0x19c   : > { %s11779_s18 = smov [#allocation41]   ;;  %s11780_s6 = smov [#allocation44]  }
 0x19d   : > { %s1705_s16 = sshll.u32 %s11779_s18, 4  ;;  %s1729_s3 = sshll.u32 %s11780_s6, 4  ;;  %s1706_s16 = int_to_ptr.vmem [resolvable:$true] %s1705_s16  ;;  %s1730_s3 = int_to_ptr.vmem [resolvable:$true] %s1729_s3 }
 0x19e   : > { %s10863_s15 = scalar_lea.hbm %s12026_s20, 16 }
 0x19f   : > { %p10864_p11 = scmp.ne.s32.totalorder %s12026_s20, %s10863_s15  ;;  %p10869_p0 = scmp.lt.u32.totalorder %s10863_s15, %s12026_s20 }
 0x1a1   : > { %p10865_p12 = pnand %p10864_p11, %p10138_p10 }
 0x1a3   : > { %p10866_p13 = pneg %p10865_p12 }
 0x1a5   : > { %p10871_p1 = pnand %p10869_p0, %p10866_p13 }
 0x1a7   : > { %10874 = shalt.err (!%p10871_p1)
}
 0x1a8   : > { %s10875_s10 = scalar_lea.vmem %s1706_s16, 16  ;;  %s10881_s23 = scalar_lea.vmem %s1706_s16, 32 }
 0x1a9   : > { %p10876_p5 = scmp.ne.s32.totalorder %s1706_s16, %s10875_s10  ;;  %p10882_p3 = scmp.lt.s32.totalorder %s1706_s16, %s1706_s16 }
 0x1aa   : > { %p10883_p4 = scmp.lt.s32.totalorder %s10881_s23, %s10875_s10 }
 0x1ab   : > { %p10877_p6 = pnand %p10876_p5, %p10138_p10 }
 0x1ac   : > { %p10884_p7 = por %p10883_p4, %p10882_p3 }
 0x1ad   : > { %p10878_p2 = pneg %p10877_p6 }
 0x1af   : > { %p10885_p8 = pnand %p10884_p7, %p10878_p2 }
 0x1b1   : > { %10888 = shalt.err (!%p10885_p8)
}
 0x1b2   : > { %10027 = dma.hbm_to_vmem [thread:$0]  (%p10138_p10), %s12026_s20, 16, %s1706_s16, [#allocation42]  }
 0x1b3   : > { %s10889_s1 = scalar_lea.hbm %s12036_s30, 16 }
 0x1b4   : > { %p10890_p11 = scmp.ne.s32.totalorder %s12036_s30, %s10889_s1  ;;  %p10895_p0 = scmp.lt.u32.totalorder %s10889_s1, %s12036_s30 }
 0x1b6   : > { %p10891_p12 = pnand %p10890_p11, %p10138_p10 }
 0x1b8   : > { %p10892_p13 = pneg %p10891_p12 }
 0x1ba   : > { %p10897_p1 = pnand %p10895_p0, %p10892_p13 }
 0x1bc   : > { %10900 = shalt.err (!%p10897_p1)
}
 0x1bd   : > { %s10901_s18 = scalar_lea.vmem %s1730_s3, 16  ;;  %s10907_s6 = scalar_lea.vmem %s1730_s3, 32 }
 0x1be   : > { %p10902_p5 = scmp.ne.s32.totalorder %s1730_s3, %s10901_s18  ;;  %p10908_p3 = scmp.lt.s32.totalorder %s1730_s3, %s1730_s3 }
 0x1bf   : > { %p10909_p4 = scmp.lt.s32.totalorder %s10907_s6, %s10901_s18 }
 0x1c0   : > { %p10903_p6 = pnand %p10902_p5, %p10138_p10 }
 0x1c1   : > { %p10910_p7 = por %p10909_p4, %p10908_p3 }
 0x1c2   : > { %p10904_p2 = pneg %p10903_p6 }
 0x1c4   : > { %p10911_p8 = pnand %p10910_p7, %p10904_p2 }
 0x1c6   : > { %10914 = shalt.err (!%p10911_p8)
}
 0x1c7   : > { %s13665_s16 = sld [smem:[#allocation122_spill]]  ;;  %s11781_s15 = smov [#allocation47]  }
 0x1c8   : > { %10031 = dma.hbm_to_vmem [thread:$0]  (%p10138_p10), %s12036_s30, 16, %s1730_s3, [#allocation45]  }
 0x1c9   : > { %s1753_s10 = sshll.u32 %s11781_s15, 4  ;;  %s11782_s23 = smov [#allocation50]   ;;  %s1754_s10 = int_to_ptr.vmem [resolvable:$true] %s1753_s10 }
 0x1ca   : > { %s1777_s1 = sshll.u32 %s11782_s23, 4  ;;  %s1778_s1 = int_to_ptr.vmem [resolvable:$true] %s1777_s1 }
 0x1cd   : > { %s10915_s4 = scalar_lea.hbm %s13665_s16, 16 }
 0x1ce   : > { %p10916_p11 = scmp.ne.s32.totalorder %s13665_s16, %s10915_s4  ;;  %p10921_p0 = scmp.lt.u32.totalorder %s10915_s4, %s13665_s16 }
 0x1d0   : > { %p10917_p12 = pnand %p10916_p11, %p10138_p10 }
 0x1d2   : > { %p10918_p13 = pneg %p10917_p12 }
 0x1d4   : > { %p10923_p1 = pnand %p10921_p0, %p10918_p13 }
 0x1d6   : > { %10926 = shalt.err (!%p10923_p1)
}
 0x1d7   : > { %s10927_s18 = scalar_lea.vmem %s1754_s10, 16  ;;  %s10933_s3 = scalar_lea.vmem %s1754_s10, 32 }
 0x1d8   : > { %p10928_p5 = scmp.ne.s32.totalorder %s1754_s10, %s10927_s18  ;;  %p10934_p3 = scmp.lt.s32.totalorder %s1754_s10, %s1754_s10 }
 0x1d9   : > { %p10935_p4 = scmp.lt.s32.totalorder %s10933_s3, %s10927_s18 }
 0x1da   : > { %p10929_p6 = pnand %p10928_p5, %p10138_p10 }
 0x1db   : > { %p10936_p7 = por %p10935_p4, %p10934_p3 }
 0x1dc   : > { %p10930_p2 = pneg %p10929_p6 }
 0x1de   : > { %p10937_p8 = pnand %p10936_p7, %p10930_p2 }
 0x1e0   : > { %10940 = shalt.err (!%p10937_p8)
}
 0x1e1   : > { %s13666_s6 = sld [smem:[#allocation124_spill]] }
 0x1e2   : > { %10035 = dma.hbm_to_vmem [thread:$0]  (%p10138_p10), %s13665_s16, 16, %s1754_s10, [#allocation48]  }
 0x1e7   : > { %s10941_s4 = scalar_lea.hbm %s13666_s6, 16 }
 0x1e8   : > { %p10942_p11 = scmp.ne.s32.totalorder %s13666_s6, %s10941_s4  ;;  %p10947_p0 = scmp.lt.u32.totalorder %s10941_s4, %s13666_s6 }
 0x1ea   : > { %p10943_p12 = pnand %p10942_p11, %p10138_p10 }
 0x1ec   : > { %p10944_p13 = pneg %p10943_p12 }
 0x1ee   : > { %p10949_p1 = pnand %p10947_p0, %p10944_p13 }
 0x1f0   : > { %10952 = shalt.err (!%p10949_p1)
}
 0x1f1   : > { %s10953_s15 = scalar_lea.vmem %s1778_s1, 16  ;;  %s10959_s23 = scalar_lea.vmem %s1778_s1, 32 }
 0x1f2   : > { %p10954_p5 = scmp.ne.s32.totalorder %s1778_s1, %s10953_s15  ;;  %p10960_p3 = scmp.lt.s32.totalorder %s1778_s1, %s1778_s1 }
 0x1f3   : > { %p10961_p4 = scmp.lt.s32.totalorder %s10959_s23, %s10953_s15 }
 0x1f4   : > { %p10955_p6 = pnand %p10954_p5, %p10138_p10 }
 0x1f5   : > { %p10962_p7 = por %p10961_p4, %p10960_p3 }
 0x1f6   : > { %p10956_p2 = pneg %p10955_p6 }
 0x1f8   : > { %p10963_p8 = pnand %p10962_p7, %p10956_p2 }
 0x1fa   : > { %10966 = shalt.err (!%p10963_p8)
}
 0x1fb   : > { %s13667_s10 = sld [smem:[#allocation126_spill]]  ;;  %s11783_s18 = smov [#allocation53]  }
 0x1fc   : > { %10039 = dma.hbm_to_vmem [thread:$0]  (%p10138_p10), %s13666_s6, 16, %s1778_s1, [#allocation51]  }
 0x1fd   : > { %s1799_s3 = sshll.u32 %s11783_s18, 4  ;;  %s11784_s4 = smov [#allocation56]   ;;  %s1800_s3 = int_to_ptr.vmem [resolvable:$true] %s1799_s3 }
 0x1fe   : > { %s1823_s5 = sshll.u32 %s11784_s4, 4  ;;  %s1824_s5 = int_to_ptr.vmem [resolvable:$true] %s1823_s5 }
 0x201   : > { %s10967_s8 = scalar_lea.hbm %s13667_s10, 16 }
 0x202   : > { %p10968_p11 = scmp.ne.s32.totalorder %s13667_s10, %s10967_s8  ;;  %p10973_p0 = scmp.lt.u32.totalorder %s10967_s8, %s13667_s10 }
 0x204   : > { %p10969_p12 = pnand %p10968_p11, %p10138_p10 }
 0x206   : > { %p10970_p13 = pneg %p10969_p12 }
 0x208   : > { %p10975_p1 = pnand %p10973_p0, %p10970_p13 }
 0x20a   : > { %10978 = shalt.err (!%p10975_p1)
}
 0x20b   : > { %s10979_s15 = scalar_lea.vmem %s1800_s3, 16  ;;  %s10985_s1 = scalar_lea.vmem %s1800_s3, 32 }
 0x20c   : > { %p10980_p5 = scmp.ne.s32.totalorder %s1800_s3, %s10979_s15  ;;  %p10986_p3 = scmp.lt.s32.totalorder %s1800_s3, %s1800_s3 }
 0x20d   : > { %p10987_p4 = scmp.lt.s32.totalorder %s10985_s1, %s10979_s15 }
 0x20e   : > { %p10981_p6 = pnand %p10980_p5, %p10138_p10 }
 0x20f   : > { %p10988_p7 = por %p10987_p4, %p10986_p3 }
 0x210   : > { %p10982_p2 = pneg %p10981_p6 }
 0x212   : > { %p10989_p8 = pnand %p10988_p7, %p10982_p2 }
 0x214   : > { %10992 = shalt.err (!%p10989_p8)
}
 0x215   : > { %s13668_s23 = sld [smem:[#allocation129_spill]] }
 0x216   : > { %10043 = dma.hbm_to_vmem [thread:$0]  (%p10138_p10), %s13667_s10, 16, %s1800_s3, [#allocation54]  }
 0x21b   : > { %s10993_s8 = scalar_lea.hbm %s13668_s23, 512 }
 0x21c   : > { %p10994_p11 = scmp.ne.s32.totalorder %s13668_s23, %s10993_s8  ;;  %p10999_p0 = scmp.lt.u32.totalorder %s10993_s8, %s13668_s23 }
 0x21e   : > { %p10995_p12 = pnand %p10994_p11, %p10138_p10 }
 0x220   : > { %p10996_p13 = pneg %p10995_p12 }
 0x222   : > { %p11001_p1 = pnand %p10999_p0, %p10996_p13 }
 0x224   : > { %11004 = shalt.err (!%p11001_p1)
}
 0x225   : > { %s11005_s18 = scalar_lea.vmem %s1824_s5, 512  ;;  %p11012_p3 = scmp.lt.s32.totalorder %s1824_s5, %s1824_s5 }
 0x226   : > { %p11006_p5 = scmp.ne.s32.totalorder %s1824_s5, %s11005_s18  ;;  %p11013_p4 = scmp.lt.s32.totalorder %s11005_s18, %s11005_s18 }
 0x228   : > { %p11007_p6 = pnand %p11006_p5, %p10138_p10  ;;  %p11014_p7 = por %p11013_p4, %p11012_p3 }
 0x22a   : > { %p11008_p2 = pneg %p11007_p6 }
 0x22c   : > { %p11015_p8 = pnand %p11014_p7, %p11008_p2 }
 0x22e   : > { %11018 = shalt.err (!%p11015_p8)
}
 0x22f   : > { %s13669_s3 = smov 8   ;;  %s11785_s4 = smov [#allocation59]  }
 0x230   : > { %10047 = dma.hbm_to_vmem [thread:$0]  (%p10138_p10), %s13668_s23, 512, %s1824_s5, [#allocation57], %s13664_s11, %s13664_s11, %s13669_s3  }
 0x231   : > { %s1848_s15 = sshll.u32 %s11785_s4, 4  ;;  %s11019_s1 = scalar_lea.hbm %s13649_s17, 16  ;;  %s1849_s15 = int_to_ptr.vmem [resolvable:$true] %s1848_s15 }
 0x232   : > { %p11020_p11 = scmp.ne.s32.totalorder %s13649_s17, %s11019_s1  ;;  %p11025_p0 = scmp.lt.u32.totalorder %s11019_s1, %s13649_s17 }
 0x234   : > { %p11021_p12 = pnand %p11020_p11, %p10138_p10 }
 0x236   : > { %p11022_p13 = pneg %p11021_p12 }
 0x238   : > { %p11027_p1 = pnand %p11025_p0, %p11022_p13 }
 0x23a   : > { %11030 = shalt.err (!%p11027_p1)
}
 0x23b   : > { %s11031_s8 = scalar_lea.vmem %s1849_s15, 16  ;;  %s11037_s18 = scalar_lea.vmem %s1849_s15, 32 }
 0x23c   : > { %p11032_p5 = scmp.ne.s32.totalorder %s1849_s15, %s11031_s8  ;;  %p11038_p3 = scmp.lt.s32.totalorder %s1849_s15, %s1849_s15 }
 0x23d   : > { %p11039_p4 = scmp.lt.s32.totalorder %s11037_s18, %s11031_s8 }
 0x23e   : > { %p11033_p6 = pnand %p11032_p5, %p10138_p10 }
 0x23f   : > { %p11040_p7 = por %p11039_p4, %p11038_p3 }
 0x240   : > { %p11034_p2 = pneg %p11033_p6 }
 0x242   : > { %p11041_p8 = pnand %p11040_p7, %p11034_p2 }
 0x244   : > { %11044 = shalt.err (!%p11041_p8)
}
 0x245   : > { %s13670_s5 = sld [smem:[#allocation89_spill]]  ;;  %s11786_s4 = smov [#allocation2]  }
 0x246   : > { %10051 = dma.hbm_to_vmem [thread:$0]  (%p10138_p10), %s13649_s17, 16, %s1849_s15, [#allocation60]  }
 0x247   : > { %s1389_s1 = sshll.u32 %s11786_s4, 4  ;;  %s11787_s6 = smov [#allocation7]   ;;  %s1390_s1 = int_to_ptr.vmem [resolvable:$true] %s1389_s1 }
 0x248   : > { %s1417_s9 = sshll.u32 %s11787_s6, 4  ;;  %s1418_s9 = int_to_ptr.vmem [resolvable:$true] %s1417_s9 }
 0x24b   : > { %s11045_s10 = scalar_lea.hbm %s13670_s5, 16 }
 0x24c   : > { %p11046_p11 = scmp.ne.s32.totalorder %s13670_s5, %s11045_s10  ;;  %p11051_p0 = scmp.lt.u32.totalorder %s11045_s10, %s13670_s5 }
 0x24e   : > { %p11047_p12 = pnand %p11046_p11, %p10138_p10 }
 0x250   : > { %p11048_p13 = pneg %p11047_p12 }
 0x252   : > { %p11053_p1 = pnand %p11051_p0, %p11048_p13 }
 0x254   : > { %11056 = shalt.err (!%p11053_p1)
}
 0x255   : > { %s11057_s8 = scalar_lea.vmem %s1390_s1, 16  ;;  %s11063_s15 = scalar_lea.vmem %s1390_s1, 32 }
 0x256   : > { %p11058_p5 = scmp.ne.s32.totalorder %s1390_s1, %s11057_s8  ;;  %p11064_p3 = scmp.lt.s32.totalorder %s1390_s1, %s1390_s1 }
 0x257   : > { %p11065_p4 = scmp.lt.s32.totalorder %s11063_s15, %s11057_s8 }
 0x258   : > { %p11059_p6 = pnand %p11058_p5, %p10138_p10 }
 0x259   : > { %p11066_p7 = por %p11065_p4, %p11064_p3 }
 0x25a   : > { %p11060_p2 = pneg %p11059_p6 }
 0x25c   : > { %p11067_p8 = pnand %p11066_p7, %p11060_p2 }
 0x25e   : > { %11070 = shalt.err (!%p11067_p8)
}
 0x25f   : > { %s13671_s6 = sld [smem:[#allocation93_spill]] }
 0x260   : > { %9977 = dma.hbm_to_vmem [thread:$0]  (%p10138_p10), %s13670_s5, 16, %s1390_s1, [#allocation3]  }
 0x265   : > { %s11071_s10 = scalar_lea.hbm %s13671_s6, 16 }
 0x266   : > { %p11072_p11 = scmp.ne.s32.totalorder %s13671_s6, %s11071_s10  ;;  %p11077_p0 = scmp.lt.u32.totalorder %s11071_s10, %s13671_s6 }
 0x268   : > { %p11073_p12 = pnand %p11072_p11, %p10138_p10 }
 0x26a   : > { %p11074_p13 = pneg %p11073_p12 }
 0x26c   : > { %p11079_p1 = pnand %p11077_p0, %p11074_p13 }
 0x26e   : > { %11082 = shalt.err (!%p11079_p1)
}
 0x26f   : > { %s11083_s18 = scalar_lea.vmem %s1418_s9, 16  ;;  %s11089_s4 = scalar_lea.vmem %s1418_s9, 32 }
 0x270   : > { %p11084_p5 = scmp.ne.s32.totalorder %s1418_s9, %s11083_s18  ;;  %p11090_p3 = scmp.lt.s32.totalorder %s1418_s9, %s1418_s9 }
 0x271   : > { %p11091_p4 = scmp.lt.s32.totalorder %s11089_s4, %s11083_s18 }
 0x272   : > { %p11085_p6 = pnand %p11084_p5, %p10138_p10 }
 0x273   : > { %p11092_p7 = por %p11091_p4, %p11090_p3 }
 0x274   : > { %p11086_p2 = pneg %p11085_p6 }
 0x276   : > { %p11093_p8 = pnand %p11092_p7, %p11086_p2 }
 0x278   : > { %11096 = shalt.err (!%p11093_p8)
}
 0x279   : > { %s13672_s1 = sld [smem:[#allocation95_spill]]  ;;  %s11788_s15 = smov [#allocation10]  }
 0x27a   : > { %9981 = dma.hbm_to_vmem [thread:$0]  (%p10138_p10), %s13671_s6, 16, %s1418_s9, [#allocation6]  }
 0x27b   : > { %s1442_s10 = sshll.u32 %s11788_s15, 4  ;;  %s11789_s5 = smov [#allocation13]   ;;  %s1443_s10 = int_to_ptr.vmem [resolvable:$true] %s1442_s10 }
 0x27c   : > { %s1467_s13 = sshll.u32 %s11789_s5, 4  ;;  %s1468_s13 = int_to_ptr.vmem [resolvable:$true] %s1467_s13 }
 0x27f   : > { %s13673_s8 = smov %s13672_s1  ;;  %s11097_s16 = scalar_lea.hbm %s13672_s1, 16 }
 0x280   : > { %p11098_p11 = scmp.ne.s32.totalorder %s13673_s8, %s11097_s16  ;;  %p11103_p0 = scmp.lt.u32.totalorder %s11097_s16, %s13673_s8 }
 0x282   : > { %p11099_p12 = pnand %p11098_p11, %p10138_p10 }
 0x284   : > { %p11100_p13 = pneg %p11099_p12 }
 0x286   : > { %p11105_p1 = pnand %p11103_p0, %p11100_p13 }
 0x288   : > { %11108 = shalt.err (!%p11105_p1)
}
 0x289   : > { %s11109_s18 = scalar_lea.vmem %s1443_s10, 16  ;;  %s11115_s9 = scalar_lea.vmem %s1443_s10, 32 }
 0x28a   : > { %p11110_p5 = scmp.ne.s32.totalorder %s1443_s10, %s11109_s18  ;;  %p11116_p3 = scmp.lt.s32.totalorder %s1443_s10, %s1443_s10 }
 0x28b   : > { %p11117_p4 = scmp.lt.s32.totalorder %s11115_s9, %s11109_s18 }
 0x28c   : > { %p11111_p6 = pnand %p11110_p5, %p10138_p10 }
 0x28d   : > { %p11118_p7 = por %p11117_p4, %p11116_p3 }
 0x28e   : > { %p11112_p2 = pneg %p11111_p6 }
 0x290   : > { %p11119_p8 = pnand %p11118_p7, %p11112_p2 }
 0x292   : > { %11122 = shalt.err (!%p11119_p8)
}
 0x293   : > { %s13674_s5 = sld [smem:[#allocation98_spill]] }
 0x294   : > { %9985 = dma.hbm_to_vmem [thread:$0]  (%p10138_p10), %s13673_s8, 16, %s1443_s10, [#allocation9]  }
 0x299   : > { %s11123_s16 = scalar_lea.hbm %s13674_s5, 16 }
 0x29a   : > { %p11124_p11 = scmp.ne.s32.totalorder %s13674_s5, %s11123_s16  ;;  %p11129_p0 = scmp.lt.u32.totalorder %s11123_s16, %s13674_s5 }
 0x29c   : > { %p11125_p12 = pnand %p11124_p11, %p10138_p10 }
 0x29e   : > { %p11126_p13 = pneg %p11125_p12 }
 0x2a0   : > { %p11131_p1 = pnand %p11129_p0, %p11126_p13 }
 0x2a2   : > { %11134 = shalt.err (!%p11131_p1)
}
 0x2a3   : > { %s11135_s4 = scalar_lea.vmem %s1468_s13, 16  ;;  %s11141_s1 = scalar_lea.vmem %s1468_s13, 32 }
 0x2a4   : > { %p11136_p5 = scmp.ne.s32.totalorder %s1468_s13, %s11135_s4  ;;  %p11142_p3 = scmp.lt.s32.totalorder %s1468_s13, %s1468_s13 }
 0x2a5   : > { %p11143_p4 = scmp.lt.s32.totalorder %s11141_s1, %s11135_s4 }
 0x2a6   : > { %p11137_p6 = pnand %p11136_p5, %p10138_p10 }
 0x2a7   : > { %p11144_p7 = por %p11143_p4, %p11142_p3 }
 0x2a8   : > { %p11138_p2 = pneg %p11137_p6 }
 0x2aa   : > { %p11145_p8 = pnand %p11144_p7, %p11138_p2 }
 0x2ac   : > { %11148 = shalt.err (!%p11145_p8)
}
 0x2ad   : > { %s13675_s15 = sld [smem:[#allocation99_spill]]  ;;  %s11790_s10 = smov [#allocation16]  }
 0x2ae   : > { %9989 = dma.hbm_to_vmem [thread:$0]  (%p10138_p10), %s13674_s5, 16, %s1468_s13, [#allocation12]  }
 0x2af   : > { %s1491_s18 = sshll.u32 %s11790_s10, 4  ;;  %s11791_s9 = smov [#allocation19]   ;;  %s1492_s18 = int_to_ptr.vmem [resolvable:$true] %s1491_s18 }
 0x2b0   : > { %s1515_s16 = sshll.u32 %s11791_s9, 4  ;;  %s1516_s16 = int_to_ptr.vmem [resolvable:$true] %s1515_s16 }
 0x2b3   : > { %s11149_s6 = scalar_lea.hbm %s13675_s15, 16 }
 0x2b4   : > { %p11150_p11 = scmp.ne.s32.totalorder %s13675_s15, %s11149_s6  ;;  %p11155_p0 = scmp.lt.u32.totalorder %s11149_s6, %s13675_s15 }
 0x2b6   : > { %p11151_p12 = pnand %p11150_p11, %p10138_p10 }
 0x2b8   : > { %p11152_p13 = pneg %p11151_p12 }
 0x2ba   : > { %p11157_p1 = pnand %p11155_p0, %p11152_p13 }
 0x2bc   : > { %11160 = shalt.err (!%p11157_p1)
}
 0x2bd   : > { %s11161_s4 = scalar_lea.vmem %s1492_s18, 16  ;;  %s11167_s13 = scalar_lea.vmem %s1492_s18, 32 }
 0x2be   : > { %p11162_p5 = scmp.ne.s32.totalorder %s1492_s18, %s11161_s4  ;;  %p11168_p3 = scmp.lt.s32.totalorder %s1492_s18, %s1492_s18 }
 0x2bf   : > { %p11169_p4 = scmp.lt.s32.totalorder %s11167_s13, %s11161_s4 }
 0x2c0   : > { %p11163_p6 = pnand %p11162_p5, %p10138_p10 }
 0x2c1   : > { %p11170_p7 = por %p11169_p4, %p11168_p3 }
 0x2c2   : > { %p11164_p2 = pneg %p11163_p6 }
 0x2c4   : > { %p11171_p8 = pnand %p11170_p7, %p11164_p2 }
 0x2c6   : > { %11174 = shalt.err (!%p11171_p8)
}
 0x2c7   : > { %s13676_s1 = sld [smem:[#allocation102_spill]] }
 0x2c8   : > { %9993 = dma.hbm_to_vmem [thread:$0]  (%p10138_p10), %s13675_s15, 16, %s1492_s18, [#allocation15]  }
 0x2cd   : > { %s13677_s10 = smov %s13676_s1  ;;  %s11175_s6 = scalar_lea.hbm %s13676_s1, 512 }
 0x2ce   : > { %p11176_p11 = scmp.ne.s32.totalorder %s13677_s10, %s11175_s6  ;;  %p11181_p0 = scmp.lt.u32.totalorder %s11175_s6, %s13677_s10 }
 0x2d0   : > { %p11177_p12 = pnand %p11176_p11, %p10138_p10 }
 0x2d2   : > { %p11178_p13 = pneg %p11177_p12 }
 0x2d4   : > { %p11183_p1 = pnand %p11181_p0, %p11178_p13 }
 0x2d6   : > { %11186 = shalt.err (!%p11183_p1)
}
 0x2d7   : > { %s11187_s9 = scalar_lea.vmem %s1516_s16, 512  ;;  %p11194_p3 = scmp.lt.s32.totalorder %s1516_s16, %s1516_s16 }
 0x2d8   : > { %p11188_p5 = scmp.ne.s32.totalorder %s1516_s16, %s11187_s9  ;;  %p11195_p4 = scmp.lt.s32.totalorder %s11187_s9, %s11187_s9 }
 0x2da   : > { %p11189_p6 = pnand %p11188_p5, %p10138_p10  ;;  %p11196_p7 = por %p11195_p4, %p11194_p3 }
 0x2dc   : > { %p11190_p2 = pneg %p11189_p6 }
 0x2de   : > { %p11197_p8 = pnand %p11196_p7, %p11190_p2 }
 0x2e0   : > { %11200 = shalt.err (!%p11197_p8)
}
 0x2e1   : > { %s13678_s18 = sld [smem:[#allocation103_spill]]  ;;  %s11792_s4 = smov [#allocation22]  }
 0x2e2   : > { %9997 = dma.hbm_to_vmem [thread:$0]  (%p10138_p10), %s13677_s10, 512, %s1516_s16, [#allocation18], %s13664_s11, %s13664_s11, %s13669_s3  }
 0x2e3   : > { %s1540_s13 = sshll.u32 %s11792_s4, 4  ;;  %s11793_s1 = smov [#allocation25]   ;;  %s1541_s13 = int_to_ptr.vmem [resolvable:$true] %s1540_s13 }
 0x2e4   : > { %s1565_s6 = sshll.u32 %s11793_s1, 4  ;;  %s1566_s6 = int_to_ptr.vmem [resolvable:$true] %s1565_s6 }
 0x2e7   : > { %s11201_s9 = scalar_lea.hbm %s13678_s18, 16 }
 0x2e8   : > { %p11202_p11 = scmp.ne.s32.totalorder %s13678_s18, %s11201_s9  ;;  %p11207_p0 = scmp.lt.u32.totalorder %s11201_s9, %s13678_s18 }
 0x2ea   : > { %p11203_p12 = pnand %p11202_p11, %p10138_p10 }
 0x2ec   : > { %p11204_p13 = pneg %p11203_p12 }
 0x2ee   : > { %p11209_p1 = pnand %p11207_p0, %p11204_p13 }
 0x2f0   : > { %11212 = shalt.err (!%p11209_p1)
}
 0x2f1   : > { %s11213_s5 = scalar_lea.vmem %s1541_s13, 16  ;;  %s11219_s16 = scalar_lea.vmem %s1541_s13, 32 }
 0x2f2   : > { %p11214_p5 = scmp.ne.s32.totalorder %s1541_s13, %s11213_s5  ;;  %p11220_p3 = scmp.lt.s32.totalorder %s1541_s13, %s1541_s13 }
 0x2f3   : > { %p11221_p4 = scmp.lt.s32.totalorder %s11219_s16, %s11213_s5 }
 0x2f4   : > { %p11215_p6 = pnand %p11214_p5, %p10138_p10 }
 0x2f5   : > { %p11222_p7 = por %p11221_p4, %p11220_p3 }
 0x2f6   : > { %p11216_p2 = pneg %p11215_p6 }
 0x2f8   : > { %p11223_p8 = pnand %p11222_p7, %p11216_p2 }
 0x2fa   : > { %11226 = shalt.err (!%p11223_p8)
}
 0x2fb   : > { %s13679_s4 = sld [smem:[#allocation106_spill]] }
 0x2fc   : > { %10001 = dma.hbm_to_vmem [thread:$0]  (%p10138_p10), %s13678_s18, 16, %s1541_s13, [#allocation21]  }
 0x301   : > { %s11227_s1 = scalar_lea.hbm %s13679_s4, 16 }
 0x302   : > { %p11228_p11 = scmp.ne.s32.totalorder %s13679_s4, %s11227_s1  ;;  %p11233_p0 = scmp.lt.u32.totalorder %s11227_s1, %s13679_s4 }
 0x304   : > { %p11229_p12 = pnand %p11228_p11, %p10138_p10 }
 0x306   : > { %p11230_p13 = pneg %p11229_p12 }
 0x308   : > { %p11235_p1 = pnand %p11233_p0, %p11230_p13 }
 0x30a   : > { %11238 = shalt.err (!%p11235_p1)
}
 0x30b   : > { %s11239_s5 = scalar_lea.vmem %s1566_s6, 16  ;;  %s11245_s9 = scalar_lea.vmem %s1566_s6, 32 }
 0x30c   : > { %p11240_p5 = scmp.ne.s32.totalorder %s1566_s6, %s11239_s5  ;;  %p11246_p3 = scmp.lt.s32.totalorder %s1566_s6, %s1566_s6 }
 0x30d   : > { %p11247_p4 = scmp.lt.s32.totalorder %s11245_s9, %s11239_s5 }
 0x30e   : > { %p11241_p6 = pnand %p11240_p5, %p10138_p10 }
 0x30f   : > { %p11248_p7 = por %p11247_p4, %p11246_p3 }
 0x310   : > { %p11242_p2 = pneg %p11241_p6 }
 0x312   : > { %p11249_p8 = pnand %p11248_p7, %p11242_p2 }
 0x314   : > { %11252 = shalt.err (!%p11249_p8)
}
 0x315   : > { %s13680_s13 = sld [smem:[#allocation107_spill]]  ;;  %s11794_s16 = smov [#allocation28]  }
 0x316   : > { %10005 = dma.hbm_to_vmem [thread:$0]  (%p10138_p10), %s13679_s4, 16, %s1566_s6, [#allocation24]  }
 0x317   : > { %s1589_s1 = sshll.u32 %s11794_s16, 4  ;;  %s11795_s8 = smov [#allocation31]   ;;  %s1590_s1 = int_to_ptr.vmem [resolvable:$true] %s1589_s1 }
 0x318   : > { %s1611_s10 = sshll.u32 %s11795_s8, 4  ;;  %s1612_s10 = int_to_ptr.vmem [resolvable:$true] %s1611_s10 }
 0x31b   : > { %s11253_s15 = scalar_lea.hbm %s13680_s13, 16 }
 0x31c   : > { %p11254_p11 = scmp.ne.s32.totalorder %s13680_s13, %s11253_s15  ;;  %p11259_p0 = scmp.lt.u32.totalorder %s11253_s15, %s13680_s13 }
 0x31e   : > { %p11255_p12 = pnand %p11254_p11, %p10138_p10 }
 0x320   : > { %p11256_p13 = pneg %p11255_p12 }
 0x322   : > { %p11261_p1 = pnand %p11259_p0, %p11256_p13 }
 0x324   : > { %11264 = shalt.err (!%p11261_p1)
}
 0x325   : > { %s11265_s5 = scalar_lea.vmem %s1590_s1, 16  ;;  %s11271_s6 = scalar_lea.vmem %s1590_s1, 32 }
 0x326   : > { %p11266_p5 = scmp.ne.s32.totalorder %s1590_s1, %s11265_s5  ;;  %p11272_p3 = scmp.lt.s32.totalorder %s1590_s1, %s1590_s1 }
 0x327   : > { %p11273_p4 = scmp.lt.s32.totalorder %s11271_s6, %s11265_s5 }
 0x328   : > { %p11267_p6 = pnand %p11266_p5, %p10138_p10 }
 0x329   : > { %p11274_p7 = por %p11273_p4, %p11272_p3 }
 0x32a   : > { %p11268_p2 = pneg %p11267_p6 }
 0x32c   : > { %p11275_p8 = pnand %p11274_p7, %p11268_p2 }
 0x32e   : > { %11278 = shalt.err (!%p11275_p8)
}
 0x32f   : > { %s13681_s8 = sld [smem:[#allocation109_spill]] }
 0x330   : > { %10009 = dma.hbm_to_vmem [thread:$0]  (%p10138_p10), %s13680_s13, 16, %s1590_s1, [#allocation27]  }
 0x335   : > { %s11279_s15 = scalar_lea.hbm %s13681_s8, 16 }
 0x336   : > { %p11280_p11 = scmp.ne.s32.totalorder %s13681_s8, %s11279_s15  ;;  %p11285_p0 = scmp.lt.u32.totalorder %s11279_s15, %s13681_s8 }
 0x338   : > { %p11281_p12 = pnand %p11280_p11, %p10138_p10 }
 0x33a   : > { %p11282_p13 = pneg %p11281_p12 }
 0x33c   : > { %p11287_p1 = pnand %p11285_p0, %p11282_p13 }
 0x33e   : > { %11290 = shalt.err (!%p11287_p1)
}
 0x33f   : > { %s11291_s9 = scalar_lea.vmem %s1612_s10, 16  ;;  %s11297_s16 = scalar_lea.vmem %s1612_s10, 32 }
 0x340   : > { %p11292_p5 = scmp.ne.s32.totalorder %s1612_s10, %s11291_s9  ;;  %p11298_p3 = scmp.lt.s32.totalorder %s1612_s10, %s1612_s10 }
 0x341   : > { %p11299_p4 = scmp.lt.s32.totalorder %s11297_s16, %s11291_s9 }
 0x342   : > { %p11293_p6 = pnand %p11292_p5, %p10138_p10 }
 0x343   : > { %p11300_p7 = por %p11299_p4, %p11298_p3 }
 0x344   : > { %p11294_p2 = pneg %p11293_p6 }
 0x346   : > { %p11301_p8 = pnand %p11300_p7, %p11294_p2 }
 0x348   : > { %11304 = shalt.err (!%p11301_p8)
}
 0x349   : > { %s13682_s1 = sld [smem:[#allocation115_spill]]  ;;  %s11796_s6 = smov [#allocation34]  }
 0x34a   : > { %10013 = dma.hbm_to_vmem [thread:$0]  (%p10138_p10), %s13681_s8, 16, %s1612_s10, [#allocation30]  }
 0x34b   : > { %s1645_s15 = sshll.u32 %s11796_s6, 4  ;;  %s11797_s4 = smov [#allocation37]   ;;  %s1646_s15 = int_to_ptr.vmem [resolvable:$true] %s1645_s15 }
 0x34c   : > { %s1670_s13 = sshll.u32 %s11797_s4, 4  ;;  %s1671_s13 = int_to_ptr.vmem [resolvable:$true] %s1670_s13 }
 0x34f   : > { %s13683_s5 = smov %s13682_s1  ;;  %s11305_s17 = scalar_lea.hbm %s13682_s1, 16 }
 0x350   : > { %p11306_p11 = scmp.ne.s32.totalorder %s13683_s5, %s11305_s17  ;;  %p11311_p0 = scmp.lt.u32.totalorder %s11305_s17, %s13683_s5 }
 0x352   : > { %p11307_p12 = pnand %p11306_p11, %p10138_p10 }
 0x354   : > { %p11308_p13 = pneg %p11307_p12 }
 0x356   : > { %p11313_p1 = pnand %p11311_p0, %p11308_p13 }
 0x358   : > { %11316 = shalt.err (!%p11313_p1)
}
 0x359   : > { %s11317_s9 = scalar_lea.vmem %s1646_s15, 16  ;;  %s11323_s10 = scalar_lea.vmem %s1646_s15, 32 }
 0x35a   : > { %p11318_p5 = scmp.ne.s32.totalorder %s1646_s15, %s11317_s9  ;;  %p11324_p3 = scmp.lt.s32.totalorder %s1646_s15, %s1646_s15 }
 0x35b   : > { %p11325_p4 = scmp.lt.s32.totalorder %s11323_s10, %s11317_s9 }
 0x35c   : > { %p11319_p6 = pnand %p11318_p5, %p10138_p10 }
 0x35d   : > { %p11326_p7 = por %p11325_p4, %p11324_p3 }
 0x35e   : > { %p11320_p2 = pneg %p11319_p6 }
 0x360   : > { %p11327_p8 = pnand %p11326_p7, %p11320_p2 }
 0x362   : > { %11330 = shalt.err (!%p11327_p8)
}
 0x363   : > { %s13684_s4 = sld [smem:[#allocation118_spill]] }
 0x364   : > { %10017 = dma.hbm_to_vmem [thread:$0]  (%p10138_p10), %s13683_s5, 16, %s1646_s15, [#allocation33]  }
 0x369   : > { %s11331_s17 = scalar_lea.hbm %s13684_s4, 16 }
 0x36a   : > { %p11332_p11 = scmp.ne.s32.totalorder %s13684_s4, %s11331_s17  ;;  %p11337_p0 = scmp.lt.u32.totalorder %s11331_s17, %s13684_s4 }
 0x36c   : > { %p11333_p12 = pnand %p11332_p11, %p10138_p10 }
 0x36e   : > { %p11334_p13 = pneg %p11333_p12 }
 0x370   : > { %p11339_p1 = pnand %p11337_p0, %p11334_p13 }
 0x372   : > { %11342 = shalt.err (!%p11339_p1)
}
 0x373   : > { %s11343_s16 = scalar_lea.vmem %s1671_s13, 16  ;;  %s11349_s1 = scalar_lea.vmem %s1671_s13, 32 }
 0x374   : > { %p11344_p5 = scmp.ne.s32.totalorder %s1671_s13, %s11343_s16  ;;  %p11350_p3 = scmp.lt.s32.totalorder %s1671_s13, %s1671_s13 }
 0x375   : > { %p11351_p4 = scmp.lt.s32.totalorder %s11349_s1, %s11343_s16 }
 0x376   : > { %p11345_p6 = pnand %p11344_p5, %p10138_p10 }
 0x377   : > { %p11352_p7 = por %p11351_p4, %p11350_p3 }
 0x378   : > { %p11346_p2 = pneg %p11345_p6 }
 0x37a   : > { %p11353_p8 = pnand %p11352_p7, %p11346_p2 }
 0x37c   : > { %11356 = shalt.err (!%p11353_p8)
}
 0x37d   : > { %s13685_s6 = sld [smem:[#allocation119_spill]]  ;;  %s11798_s15 = smov [#allocation40]  }
 0x37e   : > { %10021 = dma.hbm_to_vmem [thread:$0]  (%p10138_p10), %s13684_s4, 16, %s1671_s13, [#allocation36]  }
 0x37f   : > { %s1691_s9 = sshll.u32 %s11798_s15, 4  ;;  %s11799_s10 = smov [#allocation43]   ;;  %s1692_s9 = int_to_ptr.vmem [resolvable:$true] %s1691_s9 }
 0x380   : > { %s1715_s17 = sshll.u32 %s11799_s10, 4  ;;  %s1716_s17 = int_to_ptr.vmem [resolvable:$true] %s1715_s17 }
 0x383   : > { %s11357_s5 = scalar_lea.hbm %s13685_s6, 512 }
 0x384   : > { %p11358_p11 = scmp.ne.s32.totalorder %s13685_s6, %s11357_s5  ;;  %p11363_p0 = scmp.lt.u32.totalorder %s11357_s5, %s13685_s6 }
 0x386   : > { %p11359_p12 = pnand %p11358_p11, %p10138_p10 }
 0x388   : > { %p11360_p13 = pneg %p11359_p12 }
 0x38a   : > { %p11365_p1 = pnand %p11363_p0, %p11360_p13 }
 0x38c   : > { %11368 = shalt.err (!%p11365_p1)
}
 0x38d   : > { %s11369_s16 = scalar_lea.vmem %s1692_s9, 512  ;;  %p11376_p3 = scmp.lt.s32.totalorder %s1692_s9, %s1692_s9 }
 0x38e   : > { %p11370_p5 = scmp.ne.s32.totalorder %s1692_s9, %s11369_s16  ;;  %p11377_p4 = scmp.lt.s32.totalorder %s11369_s16, %s11369_s16 }
 0x390   : > { %p11371_p6 = pnand %p11370_p5, %p10138_p10  ;;  %p11378_p7 = por %p11377_p4, %p11376_p3 }
 0x392   : > { %p11372_p2 = pneg %p11371_p6 }
 0x394   : > { %p11379_p8 = pnand %p11378_p7, %p11372_p2 }
 0x396   : > { %11382 = shalt.err (!%p11379_p8)
}
 0x397   : > { %s13686_s13 = sld [smem:[#allocation120_spill]] }
 0x398   : > { %10025 = dma.hbm_to_vmem [thread:$0]  (%p10138_p10), %s13685_s6, 512, %s1692_s9, [#allocation39], %s13664_s11, %s13664_s11, %s13669_s3  }
 0x39d   : > { %s11383_s5 = scalar_lea.hbm %s13686_s13, 512 }
 0x39e   : > { %p11384_p11 = scmp.ne.s32.totalorder %s13686_s13, %s11383_s5  ;;  %p11389_p0 = scmp.lt.u32.totalorder %s11383_s5, %s13686_s13 }
 0x3a0   : > { %p11385_p12 = pnand %p11384_p11, %p10138_p10 }
 0x3a2   : > { %p11386_p13 = pneg %p11385_p12 }
 0x3a4   : > { %p11391_p1 = pnand %p11389_p0, %p11386_p13 }
 0x3a6   : > { %11394 = shalt.err (!%p11391_p1)
}
 0x3a7   : > { %s11395_s1 = scalar_lea.vmem %s1716_s17, 512  ;;  %p11402_p3 = scmp.lt.s32.totalorder %s1716_s17, %s1716_s17 }
 0x3a8   : > { %p11396_p5 = scmp.ne.s32.totalorder %s1716_s17, %s11395_s1  ;;  %p11403_p4 = scmp.lt.s32.totalorder %s11395_s1, %s11395_s1 }
 0x3aa   : > { %p11397_p6 = pnand %p11396_p5, %p10138_p10  ;;  %p11404_p7 = por %p11403_p4, %p11402_p3 }
 0x3ac   : > { %p11398_p2 = pneg %p11397_p6 }
 0x3ae   : > { %p11405_p8 = pnand %p11404_p7, %p11398_p2 }
 0x3b0   : > { %11408 = shalt.err (!%p11405_p8)
}
 0x3b1   : > { %s13687_s15 = sld [smem:[#allocation121_spill]]  ;;  %s11800_s9 = smov [#allocation46]  }
 0x3b2   : > { %10029 = dma.hbm_to_vmem [thread:$0]  (%p10138_p10), %s13686_s13, 512, %s1716_s17, [#allocation42], %s13664_s11, %s13664_s11, %s13669_s3  }
 0x3b3   : > { %s1739_s10 = sshll.u32 %s11800_s9, 4  ;;  %s11801_s16 = smov [#allocation49]   ;;  %s1740_s10 = int_to_ptr.vmem [resolvable:$true] %s1739_s10 }
 0x3b4   : > { %s1763_s5 = sshll.u32 %s11801_s16, 4  ;;  %s1764_s5 = int_to_ptr.vmem [resolvable:$true] %s1763_s5 }
 0x3b7   : > { %s11409_s1 = scalar_lea.hbm %s13687_s15, 512 }
 0x3b8   : > { %p11410_p11 = scmp.ne.s32.totalorder %s13687_s15, %s11409_s1  ;;  %p11415_p0 = scmp.lt.u32.totalorder %s11409_s1, %s13687_s15 }
 0x3ba   : > { %p11411_p12 = pnand %p11410_p11, %p10138_p10 }
 0x3bc   : > { %p11412_p13 = pneg %p11411_p12 }
 0x3be   : > { %p11417_p1 = pnand %p11415_p0, %p11412_p13 }
 0x3c0   : > { %11420 = shalt.err (!%p11417_p1)
}
 0x3c1   : > { %s11421_s4 = scalar_lea.vmem %s1740_s10, 512  ;;  %p11428_p3 = scmp.lt.s32.totalorder %s1740_s10, %s1740_s10 }
 0x3c2   : > { %p11422_p5 = scmp.ne.s32.totalorder %s1740_s10, %s11421_s4  ;;  %p11429_p4 = scmp.lt.s32.totalorder %s11421_s4, %s11421_s4 }
 0x3c4   : > { %p11423_p6 = pnand %p11422_p5, %p10138_p10  ;;  %p11430_p7 = por %p11429_p4, %p11428_p3 }
 0x3c6   : > { %p11424_p2 = pneg %p11423_p6 }
 0x3c8   : > { %p11431_p8 = pnand %p11430_p7, %p11424_p2 }
 0x3ca   : > { %11434 = shalt.err (!%p11431_p8)
}
 0x3cb   : > { %s13688_s17 = sld [smem:[#allocation123_spill]] }
 0x3cc   : > { %10033 = dma.hbm_to_vmem [thread:$0]  (%p10138_p10), %s13687_s15, 512, %s1740_s10, [#allocation45], %s13664_s11, %s13664_s11, %s13669_s3  }
 0x3d1   : > { %s11435_s9 = scalar_lea.hbm %s13688_s17, 512 }
 0x3d2   : > { %p11436_p11 = scmp.ne.s32.totalorder %s13688_s17, %s11435_s9  ;;  %p11441_p0 = scmp.lt.u32.totalorder %s11435_s9, %s13688_s17 }
 0x3d4   : > { %p11437_p12 = pnand %p11436_p11, %p10138_p10 }
 0x3d6   : > { %p11438_p13 = pneg %p11437_p12 }
 0x3d8   : > { %p11443_p1 = pnand %p11441_p0, %p11438_p13 }
 0x3da   : > { %11446 = shalt.err (!%p11443_p1)
}
 0x3db   : > { %s11447_s4 = scalar_lea.vmem %s1764_s5, 512  ;;  %p11454_p3 = scmp.lt.s32.totalorder %s1764_s5, %s1764_s5 }
 0x3dc   : > { %p11448_p5 = scmp.ne.s32.totalorder %s1764_s5, %s11447_s4  ;;  %p11455_p4 = scmp.lt.s32.totalorder %s11447_s4, %s11447_s4 }
 0x3de   : > { %p11449_p6 = pnand %p11448_p5, %p10138_p10  ;;  %p11456_p7 = por %p11455_p4, %p11454_p3 }
 0x3e0   : > { %p11450_p2 = pneg %p11449_p6 }
 0x3e2   : > { %p11457_p8 = pnand %p11456_p7, %p11450_p2 }
 0x3e4   : > { %11460 = shalt.err (!%p11457_p8)
}
 0x3e5   : > { %s13689_s10 = sld [smem:[#allocation125_spill]]  ;;  %s11802_s16 = smov [#allocation52]  }
 0x3e6   : > { %10037 = dma.hbm_to_vmem [thread:$0]  (%p10138_p10), %s13688_s17, 512, %s1764_s5, [#allocation48], %s13664_s11, %s13664_s11, %s13669_s3  }
 0x3e7   : > { %s1788_s1 = sshll.u32 %s11802_s16, 4  ;;  %s11803_s9 = smov [#allocation55]   ;;  %s1789_s1 = int_to_ptr.vmem [resolvable:$true] %s1788_s1 }
 0x3e8   : > { %s1813_s6 = sshll.u32 %s11803_s9, 4  ;;  %s1814_s6 = int_to_ptr.vmem [resolvable:$true] %s1813_s6 }
 0x3eb   : > { %s11461_s4 = scalar_lea.hbm %s13689_s10, 16 }
 0x3ec   : > { %p11462_p11 = scmp.ne.s32.totalorder %s13689_s10, %s11461_s4  ;;  %p11467_p0 = scmp.lt.u32.totalorder %s11461_s4, %s13689_s10 }
 0x3ee   : > { %p11463_p12 = pnand %p11462_p11, %p10138_p10 }
 0x3f0   : > { %p11464_p13 = pneg %p11463_p12 }
 0x3f2   : > { %p11469_p1 = pnand %p11467_p0, %p11464_p13 }
 0x3f4   : > { %11472 = shalt.err (!%p11469_p1)
}
 0x3f5   : > { %s11473_s8 = scalar_lea.vmem %s1789_s1, 16  ;;  %s11479_s11 = scalar_lea.vmem %s1789_s1, 32 }
 0x3f6   : > { %p11474_p5 = scmp.ne.s32.totalorder %s1789_s1, %s11473_s8  ;;  %p11480_p3 = scmp.lt.s32.totalorder %s1789_s1, %s1789_s1 }
 0x3f7   : > { %p11481_p4 = scmp.lt.s32.totalorder %s11479_s11, %s11473_s8 }
 0x3f8   : > { %p11475_p6 = pnand %p11474_p5, %p10138_p10 }
 0x3f9   : > { %p11482_p7 = por %p11481_p4, %p11480_p3 }
 0x3fa   : > { %p11476_p2 = pneg %p11475_p6 }
 0x3fc   : > { %p11483_p8 = pnand %p11482_p7, %p11476_p2 }
 0x3fe   : > { %11486 = shalt.err (!%p11483_p8)
}
 0x3ff   : > { %s13690_s3 = sld [smem:[#allocation128_spill]] }
 0x400   : > { %10041 = dma.hbm_to_vmem [thread:$0]  (%p10138_p10), %s13689_s10, 16, %s1789_s1, [#allocation51]  }
 0x405   : > { %s11487_s5 = scalar_lea.hbm %s13690_s3, 16 }
 0x406   : > { %p11488_p11 = scmp.ne.s32.totalorder %s13690_s3, %s11487_s5  ;;  %p11493_p0 = scmp.lt.u32.totalorder %s11487_s5, %s13690_s3 }
 0x408   : > { %p11489_p12 = pnand %p11488_p11, %p10138_p10 }
 0x40a   : > { %p11490_p13 = pneg %p11489_p12 }
 0x40c   : > { %p11495_p1 = pnand %p11493_p0, %p11490_p13 }
 0x40e   : > { %11498 = shalt.err (!%p11495_p1)
}
 0x40f   : > { %s11499_s8 = scalar_lea.vmem %s1814_s6, 16  ;;  %s11505_s16 = scalar_lea.vmem %s1814_s6, 32 }
 0x410   : > { %p11500_p5 = scmp.ne.s32.totalorder %s1814_s6, %s11499_s8  ;;  %p11506_p3 = scmp.lt.s32.totalorder %s1814_s6, %s1814_s6 }
 0x411   : > { %p11507_p4 = scmp.lt.s32.totalorder %s11505_s16, %s11499_s8 }
 0x412   : > { %p11501_p6 = pnand %p11500_p5, %p10138_p10 }
 0x413   : > { %p11508_p7 = por %p11507_p4, %p11506_p3 }
 0x414   : > { %p11502_p2 = pneg %p11501_p6 }
 0x416   : > { %p11509_p8 = pnand %p11508_p7, %p11502_p2 }
 0x418   : > { %11512 = shalt.err (!%p11509_p8)
}
 0x419   : > { %10045 = dma.hbm_to_vmem [thread:$0]  (%p10138_p10), %s13690_s3, 16, %s1814_s6, [#allocation54]  }
 0x41a   : > { %s11804_s1 = smov [#allocation58]   ;;  %s11805_s4 = smov [#allocation61]  }
 0x41b   : > { %s1837_s9 = sshll.u32 %s11804_s1, 4  ;;  %s1859_s11 = sshll.u32 %s11805_s4, 4  ;;  %s1838_s9 = int_to_ptr.vmem [resolvable:$true] %s1837_s9  ;;  %s1860_s11 = int_to_ptr.vmem [resolvable:$true] %s1859_s11 }
 0x41c   : > { %s11513_s5 = scalar_lea.hbm %s12086_s14, 16 }
 0x41d   : > { %p11514_p11 = scmp.ne.s32.totalorder %s12086_s14, %s11513_s5  ;;  %p11519_p0 = scmp.lt.u32.totalorder %s11513_s5, %s12086_s14 }
 0x41f   : > { %p11515_p12 = pnand %p11514_p11, %p10138_p10 }
 0x421   : > { %p11516_p13 = pneg %p11515_p12 }
 0x423   : > { %p11521_p1 = pnand %p11519_p0, %p11516_p13 }
 0x425   : > { %11524 = shalt.err (!%p11521_p1)
}
 0x426   : > { %s11525_s8 = scalar_lea.vmem %s1838_s9, 16  ;;  %s11531_s6 = scalar_lea.vmem %s1838_s9, 32 }
 0x427   : > { %p11526_p5 = scmp.ne.s32.totalorder %s1838_s9, %s11525_s8  ;;  %p11532_p3 = scmp.lt.s32.totalorder %s1838_s9, %s1838_s9 }
 0x428   : > { %p11533_p4 = scmp.lt.s32.totalorder %s11531_s6, %s11525_s8 }
 0x429   : > { %p11527_p6 = pnand %p11526_p5, %p10138_p10 }
 0x42a   : > { %p11534_p7 = por %p11533_p4, %p11532_p3 }
 0x42b   : > { %p11528_p2 = pneg %p11527_p6 }
 0x42d   : > { %p11535_p8 = pnand %p11534_p7, %p11528_p2 }
 0x42f   : > { %11538 = shalt.err (!%p11535_p8)
}
 0x430   : > { %10049 = dma.hbm_to_vmem [thread:$0]  (%p10138_p10), %s12086_s14, 16, %s1838_s9, [#allocation57]  }
 0x431   : > { %s11539_s16 = scalar_lea.hbm %s12096_s25, 16 }
 0x432   : > { %p11540_p11 = scmp.ne.s32.totalorder %s12096_s25, %s11539_s16  ;;  %p11545_p0 = scmp.lt.u32.totalorder %s11539_s16, %s12096_s25 }
 0x434   : > { %p11541_p12 = pnand %p11540_p11, %p10138_p10 }
 0x436   : > { %p11542_p13 = pneg %p11541_p12 }
 0x438   : > { %p11547_p1 = pnand %p11545_p0, %p11542_p13 }
 0x43a   : > { %11550 = shalt.err (!%p11547_p1)
}
 0x43b   : > { %s11551_s1 = scalar_lea.vmem %s1860_s11, 16  ;;  %s11557_s4 = scalar_lea.vmem %s1860_s11, 32 }
 0x43c   : > { %p11552_p5 = scmp.ne.s32.totalorder %s1860_s11, %s11551_s1  ;;  %p11558_p3 = scmp.lt.s32.totalorder %s1860_s11, %s1860_s11 }
 0x43d   : > { %p11559_p4 = scmp.lt.s32.totalorder %s11557_s4, %s11551_s1 }
 0x43e   : > { %p11553_p6 = pnand %p11552_p5, %p10138_p10 }
 0x43f   : > { %p11560_p7 = por %p11559_p4, %p11558_p3 }
 0x440   : > { %p11554_p2 = pneg %p11553_p6 }
 0x442   : > { %p11561_p8 = pnand %p11560_p7, %p11554_p2 }
 0x444   : > { %11564 = shalt.err (!%p11561_p8)
}
 0x445   : > { %10053 = dma.hbm_to_vmem [thread:$0]  (%p10138_p10), %s12096_s25, 16, %s1860_s11, [#allocation60]  }
 0x446 PF: > { %1900 = sbr.rel (%p12151_p9) target bundleno = 14844 (0x39fc), region = 244  ;;  %p10177_p11 = scmp.eq.s32.totalorder (!%p12151_p9), %s12124_s7, 0 }
 0x44d   : > { %11610 = dma.done.wait (%p10177_p11), [#allocation3], 16  }
 0x44e   : > { %11612 = vsyncadd (%p10177_p11), [#allocation3], 4294967280 }
 0x44f   : > { %11614 = dma.done.wait (%p10177_p11), [#allocation6], 32  }
 0x450   : > { %11616 = vsyncadd (%p10177_p11), [#allocation6], 4294967264 }
 0x451   : > { %11618 = dma.done.wait (%p10177_p11), [#allocation9], 32  }
 0x452   : > { %11620 = vsyncadd (%p10177_p11), [#allocation9], 4294967264 }
 0x453   : > { %11622 = dma.done.wait (%p10177_p11), [#allocation12], 32  }
 0x454   : > { %11624 = vsyncadd (%p10177_p11), [#allocation12], 4294967264 }
 0x455   : > { %11626 = dma.done.wait (%p10177_p11), [#allocation15], 528  }
 0x456   : > { %11628 = vsyncadd (%p10177_p11), [#allocation15], 4294966768 }
 0x457   : > { %11630 = dma.done.wait (%p10177_p11), [#allocation18], 528  }
 0x458   : > { %11632 = vsyncadd (%p10177_p11), [#allocation18], 4294966768 }
 0x459   : > { %11634 = dma.done.wait (%p10177_p11), [#allocation21], 32  }
 0x45a   : > { %11636 = vsyncadd (%p10177_p11), [#allocation21], 4294967264 }
 0x45b   : > { %11638 = dma.done.wait (%p10177_p11), [#allocation24], 32  }
 0x45c   : > { %11640 = vsyncadd (%p10177_p11), [#allocation24], 4294967264 }
 0x45d   : > { %11642 = dma.done.wait (%p10177_p11), [#allocation27], 528  }
 0x45e   : > { %11644 = vsyncadd (%p10177_p11), [#allocation27], 4294966768 }
 0x45f   : > { %11646 = dma.done.wait (%p10177_p11), [#allocation30], 32  }
 0x460   : > { %11648 = vsyncadd (%p10177_p11), [#allocation30], 4294967264 }
 0x461   : > { %11650 = dma.done.wait (%p10177_p11), [#allocation33], 32  }
 0x462   : > { %11652 = vsyncadd (%p10177_p11), [#allocation33], 4294967264 }
 0x463   : > { %11654 = dma.done.wait (%p10177_p11), [#allocation36], 32  }
 0x464   : > { %11656 = vsyncadd (%p10177_p11), [#allocation36], 4294967264 }
 0x465   : > { %11658 = dma.done.wait (%p10177_p11), [#allocation39], 528  }
 0x466   : > { %11660 = vsyncadd (%p10177_p11), [#allocation39], 4294966768 }
 0x467   : > { %11662 = dma.done.wait (%p10177_p11), [#allocation42], 528  }
 0x468   : > { %11664 = vsyncadd (%p10177_p11), [#allocation42], 4294966768 }
 0x469   : > { %11666 = dma.done.wait (%p10177_p11), [#allocation45], 528  }
 0x46a   : > { %11668 = vsyncadd (%p10177_p11), [#allocation45], 4294966768 }
 0x46b   : > { %11670 = dma.done.wait (%p10177_p11), [#allocation48], 528  }
 0x46c   : > { %11672 = vsyncadd (%p10177_p11), [#allocation48], 4294966768 }
 0x46d   : > { %11674 = dma.done.wait (%p10177_p11), [#allocation51], 32  }
 0x46e   : > { %11676 = vsyncadd (%p10177_p11), [#allocation51], 4294967264 }
 0x46f   : > { %11678 = dma.done.wait (%p10177_p11), [#allocation54], 32  }
 0x470   : > { %11680 = vsyncadd (%p10177_p11), [#allocation54], 4294967264 }
 0x471   : > { %11682 = dma.done.wait (%p10177_p11), [#allocation57], 528  }
 0x472   : > { %11684 = vsyncadd (%p10177_p11), [#allocation57], 4294966768 }
 0x473   : > { %11686 = dma.done.wait (%p10177_p11), [#allocation60], 32  }
 0x474   : > { %11688 = vsyncadd (%p10177_p11), [#allocation60], 4294967264  ;;  %s13691_s26 = sld [smem:[#allocation90_spill]]  ;;  %s13692_s9 = sld [smem:[#allocation88_spill]]  ;;  %v11806_v0 = vmov 0.0|0.0   ;;  %vm11807_vm0 = vmmov 0  }
 0x475   : > { %9712 = vmatprep.subr.bf16.mxu1 %v11806_v0  ;;  %9704 = vmatprep.subr.bf16.mxu0 %v11806_v0  ;;  %v11808_v1 = vmov 0.0   ;;  %vm2279_vm1 = vcmask 261120   ;;  %p2193_p9 = scmp.lt.s32.totalorder %s12124_s7, 1  ;;  %s13695_s11 = sld [smem:[#allocation84_spill]]  ;;  %v8698_v16 = vld [vmem:[#allocation5] ss:$0 sm:$0xff] }
 0x476   : > { %9195 = vmatprep.mubr.msk.f32.mxu1 %vm11807_vm0, %v11808_v1  ;;  %9184 = vmatprep.mubr.msk.f32.mxu0 %vm11807_vm0, %v11808_v1  ;;  %vm12663_vm2 = vmpackc.low %vm2279_vm1, %vm2279_vm1  ;;  %s13696_s16 = sld [smem:[#allocation92_spill]]  ;;  %v8692_v17 = vld [vmem:[#allocation2] ss:$0 sm:$0xff]  ;;  %vm2541_vm3 = vcmask 64512   ;;  %s13588_s1 = smov 120   ;;  %vm5029_vm5 = vcmask 523264  }
 0x477   : > { %s2194_s5 = scalar_select %p2193_p9, %s12124_s7, 1  ;;  %v8704_v41 = vld [vmem:[#allocation7] ss:$0 sm:$0xff]  ;;  %vm12778_vm4 = vmpackc.low %vm2541_vm3, %vm2541_vm3 }
 0x478   : > { %s13697_s4 = sld [smem:[#allocation86_spill]]  ;;  %s13703_s3 = sld [smem:[#allocation100_spill]]  ;;  %vm13073_vm6 = vmpackc.low %vm5029_vm5, %vm5029_vm5 }
 0x479   : > { %s12683_s8 = sshll.u32 %s2194_s5, 3  ;;  %s13586_s5 = smov 112  }
 0x47a   : > { %v2218_v3 = vld [vmem:[%s13691_s26] sm:$0xff]  ;;  %v2219_v4 = vld [vmem:[%s13691_s26 + $0x8] sm:$0xff]  ;;  %v2220_v9 = vld [vmem:[%s13691_s26 + $0x10] sm:$0xff]  ;;  %s13713_s10 = sld [smem:[#allocation114_spill]]  ;;  %p13717_p12 = scmp.ne.s32.totalorder %s13660_s22, 0 }
 0x47b   : > { %v2213_v5 = vld [vmem:[%s13692_s9] sm:$0xff]  ;;  %v9713_v6 = vpack.c.bf16 %v2219_v4, %v2218_v3  ;;  %v2214_v7 = vld [vmem:[%s13692_s9 + $0x8] sm:$0xff]  ;;  %v2221_v10 = vld [vmem:[%s13691_s26 + $0x18] sm:$0xff]  ;;  %s2196_s6 = scalar_lea.vmem %s13695_s11, %s12683_s8 }
 0x47c   : > { %v9705_v8 = vpack.c.bf16 %v2214_v7, %v2213_v5  ;;  %v2215_v11 = vld [vmem:[%s13692_s9 + $0x10] sm:$0xff]  ;;  %v2216_v12 = vld [vmem:[%s13692_s9 + $0x18] sm:$0xff]  ;;  %v9717_v13 = vpack.c.bf16 %v2221_v10, %v2220_v9  ;;  %v12693_v15 = vld [vmem:[%s2196_s6] sm:$0xff]  ;;  %s13698_s6 = sld [smem:[#allocation94_spill]]  ;;  %s13712_s9 = sld [smem:[#allocation112_spill]] }
 0x47d   : > { %9715 = vmatpush3.bf16.xpose.msk.msra.mxu1 %vm12663_vm2, %v9713_v6  ;;  %v9709_v14 = vpack.c.bf16 %v2216_v12, %v2215_v11  ;;  %v2223_v24 = vld [vmem:[%s13696_s16] sm:$0xff]  ;;  %v2224_v25 = vld [vmem:[%s13696_s16 + $0x8] sm:$0xff]  ;;  %v2225_v27 = vld [vmem:[%s13696_s16 + $0x10] sm:$0xff] }
 0x47e   : > { %9707 = vmatpush3.bf16.xpose.msk.msra.mxu0 %vm12663_vm2, %v9705_v8  ;;  %9716 = vmatprep.subr.bf16.mxu1 %v11806_v0  ;;  %v9721_v26 = vpack.c.bf16 %v2224_v25, %v2223_v24  ;;  %v2226_v28 = vld [vmem:[%s13696_s16 + $0x18] sm:$0xff]  ;;  %s12734_s11 = scalar_lea.vmem %s13697_s4, %s12683_s8  ;;  %s13584_s4 = smov 104  }
 0x47f   : > { %9708 = vmatprep.subr.bf16.mxu0 %v11806_v0  ;;  %v9725_v29 = vpack.c.bf16 %v2226_v28, %v2225_v27  ;;  %v12737_v30 = vld [vmem:[%s12734_s11] sm:$0xff] }
 0x482   : > { %v12769_v3 = vld [vmem:[%s13698_s6] sm:$0xff]  ;;  %v12772_v4 = vld [vmem:[%s13698_s6 + $0x8] sm:$0xff]  ;;  %v2230_v9 = vld [vmem:[%s13698_s6 + $0x10] sm:$0xff] }
 0x483   : > { %v9737_v6 = vpack.c.bf16 %v12772_v4, %v12769_v3  ;;  %v2231_v10 = vld [vmem:[%s13698_s6 + $0x18] sm:$0xff]  ;;  %s13708_s6 = sld [smem:[#allocation105_spill]] }
 0x484   : > { %v9741_v11 = vpack.c.bf16 %v2231_v10, %v2230_v9 }
 0x485   : > { %9719 = vmatpush3.bf16.xpose.msk.msra.mxu1 %vm12663_vm2, %v9717_v13 }
 0x486   : > { %9711 = vmatpush3.bf16.xpose.msk.msra.mxu0 %vm12663_vm2, %v9709_v14  ;;  %9209 = vmatprep.subr.mxu1 %v11808_v1 }
 0x487   : > { %9720 = vmatprep.subr.bf16.mxu0 %v11806_v0 }
 0x48c   : > { %9196 = vmatmul.mubr.msk.f32.vlgmr.msra.gmra.mrb[0].mxu1 %vm2279_vm1, %v12693_v15 }
 0x48d   : > { %9185 = vmatmul.mubr.msk.f32.vlgmr.msra.gmra.mrb[0].mxu0 %vm2279_vm1, %v12693_v15  ;;  %9211 = vmatprep.mubr.msk.f32.mxu1 %vm11807_vm0, %v11808_v1 }
 0x48e   : > { %9206 = vmatprep.mubr.msk.f32.mxu0 %vm11807_vm0, %v11808_v1  ;;  %9723 = vmatpush3.bf16.xpose.msk.msra.mxu0 %vm12663_vm2, %v9721_v26 }
 0x48f   : > { %9724 = vmatprep.subr.bf16.mxu0 %v11806_v0 }
 0x496   : > { %9727 = vmatpush3.bf16.xpose.msk.msra.mxu0 %vm12663_vm2, %v9725_v29 }
 0x497   : > { %9728 = vmatprep.subr.bf16.mxu0 %v11806_v0 }
 0x49d   : > { %9207 = vmatmul.mubr.msk.f32.vlgmr.msra.gmra.mrb[2].mxu0 %vm2279_vm1, %v12693_v15 }
 0x49e   : > { %9237 = vmatprep.mubr.msk.f32.mxu0 %vm11807_vm0, %v11808_v1 }
 0x55f   : > { %v2449_v18 = vpop.f32.mrb[0].mxu1 }
 0x560   : > { %v12703_v19 = vadd.f32 %v8698_v16, %v2449_v18  ;;  %v9197_v20 = vpop.f32.mrb[1].mxu1  ;;  %v2361_v21 = vpop.f32.mrb[0].mxu0 }
 0x561   : > { %v12705_v22 = vadd.f32 %v8692_v17, %v2361_v21  ;;  %v9186_v23 = vpop.f32.mrb[1].mxu0 }
 0x562   : > { %2706 = vrot.lane.b32.xlu1 %v12703_v19, %s13588_s1  ;;  %9210 = vmatpush3.xpose.msk.msra.mxu1 %vm2541_vm3, %v12703_v19 }
 0x563   : > { %9214 = vmatprep.subr.mxu1 %v11808_v1 }
 0x565   : > { %9212 = vmatmul.mubr.msk.f32.vlgmr.msra.gmra.mrb[2].mxu1 %vm2541_vm3, %v12705_v22 }
 0x566   : > { %2704 = vrot.lane.b32.xlu1 %v12705_v22, %s13588_s1  ;;  %9216 = vmatprep.mubr.msk.f32.mxu1 %vm11807_vm0, %v11808_v1 }
 0x570   : > { %v2537_v42 = vpop.f32.mrb[2].mxu0 }
 0x571   : > { %v12742_v43 = vadd.f32 %v8704_v41, %v2537_v42  ;;  %v9208_v44 = vpop.f32.mrb[3].mxu0 }
 0x572   : > { %v10352_v44 = vpack.i.bf16 %v12772_v4, %v12769_v3 }
 0x573   : > { %9215 = vmatpush3.msra.mxu1 %v12742_v43 }
 0x574   : > { %9219 = vmatprep.subr.mxu1 %v11808_v1 }
 0x5d4   : > { %v2707_v47 = vpop.permute.xlu1 %2706 }
 0x5d8   : > { %v2705_v49 = vpop.permute.xlu1 %2704 }
 0x638   : > { %v2614_v31 = vpop.f32.mrb[2].mxu1 }
 0x639   : > { %v2618_v32 = vmul.f32 0.35355338, %v2614_v31  ;;  %v9213_v33 = vpop.f32.mrb[3].mxu1 }
 0x63b   : > { %v2619_v34 = vadd.f32 %v2618_v32, %v12737_v30 }
 0x63d   : > { %v2620_v35 = vsel %vm2541_vm3, %v2619_v34, -inf }
 0x63e   : > { %2621 = vmax.xlane.f32.xlu0 %v2620_v35 }
 0x6cb   : > { %v2622_v36 = vpop.xlane.xlu0 %2621 }
 0x6cc   : > { %v2623_v37 = vsub.f32 %v2619_v34, %v2622_v36 }
 0x6ce   : > { %v2624_v38 = vmul.f32 1.442695, %v2623_v37 }
 0x6d0   : > { %10472 = vpow2.f32 %v2624_v38 }
 0x6da   : > { %v10473_v39 = vpop.eup %10472 }
 0x6db   : > { %v2626_v40 = vsel %vm2541_vm3, %v10473_v39, 0.0 }
 0x6dc   : > { %2627 = vadd.xlane.f32.xlu0 %v2626_v40 }
 0x769   : > { %v2628_v45 = vpop.xlane.xlu0 %2627 }
 0x76a   : > { %10474 = vrcp.f32 %v2628_v45  ;;  %v10357_v45 = vpack.i.bf16 %v2231_v10, %v2230_v9 }
 0x774   : > { %v10475_v46 = vpop.eup %10474 }
 0x775   : > { %v2630_v48 = vmul.f32 %v10475_v46, %v10473_v39 }
 0x777   : > { %9217 = vmatmul.mubr.msk.f32.vlgmr.msra.gmra.mrb[4].mxu1 %vm2541_vm3, %v2630_v48 }
 0x778   : > { %9220 = vmatpush3.xpose.msk.msra.mxu1 %vm2541_vm3, %v2707_v47  ;;  %9221 = vmatprep.mubr.msk.f32.mxu1 %vm11807_vm0, %v11808_v1 }
 0x779   : > { %9224 = vmatprep.subr.mxu1 %v11808_v1 }
 0x77b   : > { %9222 = vmatmul.mubr.msk.f32.vlgmr.msra.gmra.mrb[6].mxu1 %vm2541_vm3, %v2705_v49 }
 0x77c   : > { %9226 = vmatprep.mubr.msk.f32.mxu1 %vm11807_vm0, %v11808_v1 }
 0x84a   : > { %v2700_v50 = vpop.f32.mrb[4].mxu1 }
 0x84b   : > { %v9218_v51 = vpop.f32.mrb[5].mxu1 }
 0x84e   : > { %v2778_v52 = vpop.f32.mrb[6].mxu1 }
 0x84f   : > { %v2782_v53 = vmul.f32 0.35355338, %v2778_v52  ;;  %v9223_v54 = vpop.f32.mrb[7].mxu1 }
 0x851   : > { %v2783_v55 = vadd.f32 %v2782_v53, %v12737_v30 }
 0x853   : > { %v2784_v56 = vsel %vm2541_vm3, %v2783_v55, -inf }
 0x854   : > { %2785 = vmax.xlane.f32.xlu0 %v2784_v56 }
 0x86a   : > { %2796 = vrot.lane.b32.xlu0 %v12742_v43, %s13588_s1 }
 0x86e   : > { %3048 = vrot.lane.b32.xlu0 %v12703_v19, %s13586_s5 }
 0x872   : > { %3046 = vrot.lane.b32.xlu0 %v12705_v22, %s13586_s5 }
 0x8e1   : > { %v2786_v57 = vpop.xlane.xlu0 %2785 }
 0x8e2   : > { %v2787_v58 = vsub.f32 %v2783_v55, %v2786_v57 }
 0x8e4   : > { %v2788_v59 = vmul.f32 1.442695, %v2787_v58 }
 0x8e5   : > { %v2797_v60 = vpop.permute.xlu0 %2796 }
 0x8e6   : > { %10476 = vpow2.f32 %v2788_v59  ;;  %9225 = vmatpush3.msra.mxu1 %v2797_v60 }
 0x8e7   : > { %9736 = vmatprep.subr.bf16.mxu1 %v11806_v0 }
 0x8e9   : > { %v3049_v12 = vpop.permute.xlu0 %3048 }
 0x8ed   : > { %v3047_v13 = vpop.permute.xlu0 %3046 }
 0x8f0   : > { %v10477_v61 = vpop.eup %10476 }
 0x8f1   : > { %v2790_v62 = vsel %vm2541_vm3, %v10477_v61, 0.0 }
 0x8f2   : > { %2791 = vadd.xlane.f32.xlu1 %v2790_v62 }
 0x903   : > { %3137 = vrot.lane.b32.xlu1 %v12742_v43, %s13586_s5 }
 0x907   : > { %3305 = vrot.lane.b32.xlu1 %v12703_v19, %s13584_s4 }
 0x97f   : > { %v2792_v63 = vpop.xlane.xlu1 %2791 }
 0x980   : > { %10478 = vrcp.f32 %v2792_v63 }
 0x983   : > { %v3138_v14 = vpop.permute.xlu1 %3137 }
 0x987   : > { %v3306_v32 = vpop.permute.xlu1 %3305 }
 0x98a   : > { %v10479_v5 = vpop.eup %10478 }
 0x98b   : > { %v2794_v7 = vmul.f32 %v10479_v5, %v10477_v61 }
 0x98d   : > { %9227 = vmatmul.mubr.msk.f32.vlgmr.msra.gmra.mrb[8].mxu1 %vm2541_vm3, %v2794_v7 }
 0x98e   : > { %9739 = vmatpush3.bf16.xpose.msk.msra.mxu1 %vm12778_vm4, %v9737_v6  ;;  %9248 = vmatprep.mubr.msk.f32.mxu1 %vm11807_vm0, %v11808_v1 }
 0x98f   : > { %9740 = vmatprep.subr.bf16.mxu1 %v11806_v0 }
 0x996   : > { %9743 = vmatpush3.bf16.xpose.msk.msra.mxu1 %vm12778_vm4, %v9741_v11 }
 0x997   : > { %9251 = vmatprep.subr.mxu1 %v11808_v1 }
 0x99d   : > { %9249 = vmatmul.mubr.msk.f32.vlgmr.msra.gmra.mrb[10].mxu1 %vm2541_vm3, %v2700_v50 }
 0x99e   : > { %9252 = vmatpush3.xpose.msk.msra.mxu1 %vm2541_vm3, %v3049_v12  ;;  %9253 = vmatprep.mubr.msk.f32.mxu1 %vm11807_vm0, %v11808_v1 }
 0x99f   : > { %9256 = vmatprep.subr.mxu1 %v11808_v1 }
 0x9a1   : > { %9254 = vmatmul.mubr.msk.f32.vlgmr.msra.gmra.mrb[12].mxu1 %vm2541_vm3, %v3047_v13 }
 0x9a2   : > { %9257 = vmatpush3.msra.mxu1 %v3138_v14  ;;  %9258 = vmatprep.mubr.msk.f32.mxu1 %vm11807_vm0, %v11808_v1 }
 0x9a3   : > { %9272 = vmatprep.subr.mxu1 %v11808_v1 }
 0xa60   : > { %v12802_v16 = vpop.f32.mrb[8].mxu1 }
 0xa61   : > { %v9228_v17 = vpop.f32.mrb[9].mxu1 }
 0xa70   : > { %v12804_v18 = vpop.f32.mrb[10].mxu1 }
 0xa71   : > { %v9250_v19 = vpop.f32.mrb[11].mxu1 }
 0xa74   : > { %v3120_v20 = vpop.f32.mrb[12].mxu1 }
 0xa75   : > { %v3124_v21 = vmul.f32 0.35355338, %v3120_v20  ;;  %v9255_v23 = vpop.f32.mrb[13].mxu1 }
 0xa77   : > { %v3125_v24 = vadd.f32 %v3124_v21, %v12737_v30 }
 0xa79   : > { %v3126_v25 = vsel %vm2541_vm3, %v3125_v24, -inf }
 0xa7a   : > { %3127 = vmax.xlane.f32.xlu0 %v3126_v25 }
 0xb07   : > { %v3128_v26 = vpop.xlane.xlu0 %3127 }
 0xb08   : > { %v3129_v27 = vsub.f32 %v3125_v24, %v3128_v26 }
 0xb0a   : > { %v3130_v28 = vmul.f32 1.442695, %v3129_v27 }
 0xb0c   : > { %10480 = vpow2.f32 %v3130_v28 }
 0xb16   : > { %v10481_v29 = vpop.eup %10480 }
 0xb17   : > { %v3132_v31 = vsel %vm2541_vm3, %v10481_v29, 0.0 }
 0xb18   : > { %3133 = vadd.xlane.f32.xlu1 %v3132_v31 }
 0xb29   : > { %3303 = vrot.lane.b32.xlu1 %v12705_v22, %s13584_s4 }
 0xba5   : > { %v3134_v33 = vpop.xlane.xlu1 %3133 }
 0xba6   : > { %10482 = vrcp.f32 %v3134_v33 }
 0xba9   : > { %v3304_v36 = vpop.permute.xlu1 %3303 }
 0xbb0   : > { %v10483_v34 = vpop.eup %10482 }
 0xbb1   : > { %v3136_v35 = vmul.f32 %v10483_v34, %v10481_v29 }
 0xbb3   : > { %9259 = vmatmul.mubr.msk.f32.vlgmr.msra.gmra.mrb[14].mxu1 %vm2541_vm3, %v3136_v35 }
 0xbb4   : > { %9273 = vmatpush3.xpose.msk.msra.mxu1 %vm2541_vm3, %v3306_v32  ;;  %9274 = vmatprep.mubr.msk.f32.mxu1 %vm11807_vm0, %v11808_v1 }
 0xbb5   : > { %9277 = vmatprep.subr.mxu1 %v11808_v1 }
 0xbb7   : > { %9275 = vmatmul.mubr.msk.f32.vlgmr.msra.gmra.mrb[16].mxu1 %vm2541_vm3, %v3304_v36 }
 0xbb8   : > { %9279 = vmatprep.mubr.msk.f32.mxu1 %vm11807_vm0, %v11808_v1 }
 0xc86   : > { %v3209_v22 = vpop.f32.mrb[14].mxu1 }
 0xc87   : > { %v9260_v37 = vpop.f32.mrb[15].mxu1 }
 0xc8a   : > { %v3377_v38 = vpop.f32.mrb[16].mxu1 }
 0xc8b   : > { %v3381_v39 = vmul.f32 0.35355338, %v3377_v38  ;;  %v9276_v40 = vpop.f32.mrb[17].mxu1 }
 0xc8c   : > { %v2241_v40 = vld [vmem:[#allocation14 + $0x8] sm:$0xff] }
 0xc8d   : > { %v3382_v41 = vadd.f32 %v3381_v39, %v12737_v30  ;;  %v2240_v39 = vld [vmem:[#allocation14] sm:$0xff] }
 0xc8f   : > { %v3383_v42 = vsel %vm2541_vm3, %v3382_v41, -inf }
 0xc90   : > { %3384 = vmax.xlane.f32.xlu0 %v3383_v42 }
 0xca6   : > { %3394 = vrot.lane.b32.xlu0 %v12742_v43, %s13584_s4 }
 0xcaa   : > { %10353 = vrot.lane.b32.xlu0 %v10352_v44, %s13588_s1 }
 0xcae   : > { %10358 = vrot.lane.b32.xlu0 %v10357_v45, %s13588_s1 }
 0xcb2   : > { %10363 = vrot.lane.b32.xlu0 %v10352_v44, %s13586_s5 }
 0xcb6   : > { %10373 = vrot.lane.b32.xlu0 %v10357_v45, %s13586_s5  ;;  %s13702_s5 = sld [smem:[#allocation85_spill]] }
 0xcba   : > { %10378 = vrot.lane.b32.xlu0 %v10357_v45, %s13584_s4  ;;  %v2242_v45 = vld [vmem:[#allocation14 + $0x10] sm:$0xff] }
 0xcbc   : > { %s12885_s1 = scalar_lea.vmem %s13702_s5, %s12683_s8  ;;  %s13704_s5 = smov 120  }
 0xd1d   : > { %v3385_v46 = vpop.xlane.xlu0 %3384 }
 0xd1e   : > { %v3386_v30 = vsub.f32 %v3382_v41, %v3385_v46  ;;  %v9769_v41 = vpack.c.bf16 %v2241_v40, %v2240_v39  ;;  %v2243_v46 = vld [vmem:[#allocation14 + $0x18] sm:$0xff] }
 0xd20   : > { %v3387_v47 = vmul.f32 1.442695, %v3386_v30  ;;  %v9773_v30 = vpack.c.bf16 %v2243_v46, %v2242_v45 }
 0xd21   : > { %v3395_v48 = vpop.permute.xlu0 %3394 }
 0xd22   : > { %10484 = vpow2.f32 %v3387_v47  ;;  %9278 = vmatpush3.msra.mxu1 %v3395_v48 }
 0xd23   : > { %9752 = vmatprep.subr.bf16.mxu1 %v11806_v0 }
 0xd25   : > { %v10354_v43 = vpop.permute.xlu0 %10353 }
 0xd26   : > { %v10356_v49 = vunpack.i.h.bf16 %v10354_v43  ;;  %v10355_v50 = vunpack.i.l.bf16 %v10354_v43 }
 0xd28   : > { %v9729_v51 = vpack.c.bf16 %v10356_v49, %v10355_v50  ;;  %v2210_v49 = vld [vmem:[%s12885_s1] sm:$0xff] }
 0xd29   : > { %v10359_v52 = vpop.permute.xlu0 %10358 }
 0xd2a   : > { %9731 = vmatpush3.bf16.xpose.msk.msra.mxu0 %vm12778_vm4, %v9729_v51  ;;  %v10361_v53 = vunpack.i.h.bf16 %v10359_v52  ;;  %v10360_v54 = vunpack.i.l.bf16 %v10359_v52 }
 0xd2b   : > { %9732 = vmatprep.subr.bf16.mxu0 %v11806_v0 }
 0xd2c   : > { %v10485_v55 = vpop.eup %10484  ;;  %v9733_v57 = vpack.c.bf16 %v10361_v53, %v10360_v54  ;;  %v8743_v54 = vld [vmem:[#allocation10] ss:$0 sm:$0xff] }
 0xd2d   : > { %v3389_v56 = vsel %vm2541_vm3, %v10485_v55, 0.0  ;;  %v10364_v58 = vpop.permute.xlu0 %10363 }
 0xd2e   : > { %3390 = vadd.xlane.f32.xlu1 %v3389_v56  ;;  %v10366_v59 = vunpack.i.h.bf16 %v10364_v58  ;;  %v10365_v60 = vunpack.i.l.bf16 %v10364_v58  ;;  %v8744_v56 = vld [vmem:[#allocation11] ss:$0 sm:$0xff] }
 0xd30   : > { %v9745_v61 = vpack.c.bf16 %v10366_v59, %v10365_v60  ;;  %v8751_v59 = vld [vmem:[#allocation16] ss:$0 sm:$0xff] }
 0xd31   : > { %v10374_v62 = vpop.permute.xlu0 %10373 }
 0xd32   : > { %9735 = vmatpush3.bf16.xpose.msk.msra.mxu0 %vm12778_vm4, %v9733_v57  ;;  %v10376_v63 = vunpack.i.h.bf16 %v10374_v62  ;;  %v10375_v3 = vunpack.i.l.bf16 %v10374_v62 }
 0xd33   : > { %9744 = vmatprep.subr.bf16.mxu0 %v11806_v0 }
 0xd34   : > { %v9749_v4 = vpack.c.bf16 %v10376_v63, %v10375_v3  ;;  %v2245_v63 = vld [vmem:[%s13703_s3] sm:$0xff]  ;;  %v2246_v3 = vld [vmem:[%s13703_s3 + $0x8] sm:$0xff] }
 0xd35   : > { %v10379_v17 = vpop.permute.xlu0 %10378 }
 0xd36   : > { %v10381_v19 = vunpack.i.h.bf16 %v10379_v17  ;;  %v10380_v20 = vunpack.i.l.bf16 %v10379_v17 }
 0xd38   : > { %v9757_v21 = vpack.c.bf16 %v10381_v19, %v10380_v20 }
 0xd39   : > { %9238 = vmatmul.mubr.msk.f32.vlgmr.msra.gmra.mrb[4].mxu0 %vm2541_vm3, %v12802_v16 }
 0xd3a   : > { %9747 = vmatpush3.bf16.xpose.msk.msra.mxu0 %vm12778_vm4, %v9745_v61  ;;  %9269 = vmatprep.mubr.msk.f32.mxu0 %vm11807_vm0, %v11808_v1 }
 0xd3b   : > { %9748 = vmatprep.subr.bf16.mxu0 %v11806_v0 }
 0xd3f   : > { %10368 = vrot.lane.b32.xlu1 %v10352_v44, %s13584_s4  ;;  %s13701_s4 = sld [smem:[#allocation97_spill]] }
 0xd42   : > { %9751 = vmatpush3.bf16.xpose.msk.msra.mxu0 %vm12778_vm4, %v9749_v4  ;;  %v9777_v4 = vpack.c.bf16 %v2246_v3, %v2245_v63 }
 0xd43   : > { %9760 = vmatprep.subr.bf16.mxu0 %v11806_v0 }
 0xd45   : > { %v2236_v42 = vld [vmem:[%s13701_s4 + $0x8] sm:$0xff]  ;;  %v2237_v47 = vld [vmem:[%s13701_s4 + $0x10] sm:$0xff]  ;;  %v2238_v48 = vld [vmem:[%s13701_s4 + $0x18] sm:$0xff] }
 0xd46   : > { %v9765_v43 = vpack.c.bf16 %v2238_v48, %v2237_v47 }
 0xd49   : > { %9270 = vmatmul.mubr.msk.f32.vlgmr.msra.gmra.mrb[6].mxu0 %vm2541_vm3, %v3209_v22 }
 0xd4a   : > { %9301 = vmatprep.mubr.msk.f32.mxu0 %vm11807_vm0, %v11808_v1 }
 0xdbb   : > { %v3391_v5 = vpop.xlane.xlu1 %3390 }
 0xdbc   : > { %10486 = vrcp.f32 %v3391_v5  ;;  %v2247_v5 = vld [vmem:[%s13703_s3 + $0x10] sm:$0xff] }
 0xdbf   : > { %v10369_v9 = vpop.permute.xlu1 %10368 }
 0xdc0   : > { %v10371_v10 = vunpack.i.h.bf16 %v10369_v9  ;;  %v10370_v11 = vunpack.i.l.bf16 %v10369_v9 }
 0xdc2   : > { %v9753_v12 = vpack.c.bf16 %v10371_v10, %v10370_v11  ;;  %v8745_v10 = vld [vmem:[#allocation13] ss:$0 sm:$0xff] }
 0xdc6   : > { %v10487_v6 = vpop.eup %10486 }
 0xdc7   : > { %v3393_v7 = vmul.f32 %v10487_v6, %v10485_v55  ;;  %v2248_v6 = vld [vmem:[%s13703_s3 + $0x18] sm:$0xff] }
 0xdc9   : > { %9280 = vmatmul.mubr.msk.f32.vlgmr.msra.gmra.mrb[18].mxu1 %vm2541_vm3, %v3393_v7  ;;  %v9781_v7 = vpack.c.bf16 %v2248_v6, %v2247_v5 }
 0xdca   : > { %9290 = vmatprep.mubr.msk.f32.mxu1 %vm11807_vm0, %v11808_v1  ;;  %9755 = vmatpush3.bf16.xpose.msk.msra.mxu1 %vm12778_vm4, %v9753_v12 }
 0xdcb   : > { %9756 = vmatprep.subr.bf16.mxu1 %v11806_v0 }
 0xdd2   : > { %9759 = vmatpush3.bf16.xpose.msk.msra.mxu1 %vm12778_vm4, %v9757_v21 }
 0xdd3   : > { %9768 = vmatprep.subr.bf16.mxu1 %v11806_v0 }
 0xe0c   : > { %v2961_v13 = vpop.f32.mrb[4].mxu0 }
 0xe0d   : > { %v3043_v14 = vadd.f32 %v12804_v18, %v2961_v13  ;;  %v9239_v16 = vpop.f32.mrb[5].mxu0  ;;  %v8742_v18 = vld [vmem:[#allocation8] ss:$0 sm:$0xff] }
 0xe1c   : > { %v3298_v23 = vpop.f32.mrb[6].mxu0 }
 0xe1d   : > { %v3302_v24 = vadd.f32 %v3298_v23, %v3043_v14  ;;  %v9271_v25 = vpop.f32.mrb[7].mxu0  ;;  %v8757_v14 = vld [vmem:[#allocation17] ss:$0 sm:$0xff] }
 0xe9c   : > { %v3466_v26 = vpop.f32.mrb[18].mxu1 }
 0xe9d   : > { %v9281_v27 = vpop.f32.mrb[19].mxu1  ;;  %9291 = vmatmul.mubr.msk.f32.vlgmr.msra.gmra.mrb[20].mxu1 %vm2541_vm3, %v3466_v26 }
 0xe9e   : > { %9312 = vmatprep.mubr.msk.f32.mxu1 %vm11807_vm0, %v11808_v1  ;;  %9771 = vmatpush3.bf16.xpose.msk.msra.mxu1 %vm12663_vm2, %v9769_v41 }
 0xe9f   : > { %9772 = vmatprep.subr.bf16.mxu1 %v11806_v0 }
 0xea6   : > { %9775 = vmatpush3.bf16.xpose.msk.msra.mxu1 %vm12663_vm2, %v9773_v30 }
 0xea7   : > { %9326 = vmatprep.subr.mxu1 %v11808_v1 }
 0xead   : > { %9313 = vmatmul.mubr.msk.f32.vlgmr.msra.gmra.mrb[22].mxu1 %vm2279_vm1, %v2210_v49 }
 0xeae   : > { %9328 = vmatprep.mubr.msk.f32.mxu1 %vm11807_vm0, %v11808_v1 }
 0xf70   : > { %v3555_v28 = vpop.f32.mrb[20].mxu1 }
 0xf71   : > { %v3559_v29 = vadd.f32 %v3555_v28, %v3302_v24  ;;  %v9292_v31 = vpop.f32.mrb[21].mxu1 }
 0xf73   : > { %v3566_v32 = vadd.f32 %v8742_v18, %v3559_v29 }
 0xf75   : > { %v3567_v33 = vadd.f32 %v3566_v32, %v12693_v15  ;;  %v2235_v15 = vld [vmem:[%s13701_s4] sm:$0xff]  ;;  %s13705_s4 = sld [smem:[#allocation87_spill]] }
 0xf76   : > { %v9761_v44 = vpack.c.bf16 %v2236_v42, %v2235_v15 }
 0xf77   : > { %v3568_v34 = vsel %vm2279_vm1, %v3567_v33, 0.0 }
 0xf78   : > { %3569 = vadd.xlane.f32.xlu0 %v3568_v34  ;;  %9763 = vmatpush3.bf16.xpose.msk.msra.mxu0 %vm12663_vm2, %v9761_v44  ;;  %v2251_v34 = vld [vmem:[#allocation19 + $0x8] sm:$0xff] }
 0xf79   : > { %9764 = vmatprep.subr.bf16.mxu0 %v11806_v0 }
 0xf7b   : > { %s12937_s3 = scalar_lea.vmem %s13705_s4, %s12683_s8  ;;  %s13706_s8 = smov 112  }
 0xf7c   : > { %v12940_v21 = vld [vmem:[%s12937_s3] sm:$0xff]  ;;  %s13707_s4 = smov 104  }
 0xf80   : > { %9767 = vmatpush3.bf16.xpose.msk.msra.mxu0 %vm12663_vm2, %v9765_v43  ;;  %v3774_v60 = vpop.f32.mrb[22].mxu1 }
 0xf81   : > { %9776 = vmatprep.subr.bf16.mxu0 %v11806_v0  ;;  %v12898_v61 = vadd.f32 %v8751_v59, %v3774_v60  ;;  %v9314_v62 = vpop.f32.mrb[23].mxu1 }
 0xf83   : > { %9327 = vmatpush3.xpose.msk.msra.mxu1 %vm2541_vm3, %v12898_v61 }
 0xf84   : > { %9331 = vmatprep.subr.mxu1 %v11808_v1 }
 0xf8e   : > { %4030 = vrot.lane.b32.xlu0 %v12898_v61, %s13704_s5 }
0x1005   : > { %v3570_v35 = vpop.xlane.xlu0 %3569 }
0x1006   : > { %v3572_v36 = vmul.f32 0.03125, %v3570_v35 }
0x1008   : > { %v3573_v22 = vsub.f32 %v3567_v33, %v3572_v36  ;;  %v2250_v33 = vld [vmem:[#allocation19] sm:$0xff]  ;;  %v2252_v36 = vld [vmem:[#allocation19 + $0x10] sm:$0xff] }
0x1009   : > { %v4031_v9 = vpop.permute.xlu0 %4030  ;;  %v12946_v35 = vpack.i.bf16 %v2251_v34, %v2250_v33  ;;  %v9793_v62 = vpack.c.bf16 %v2251_v34, %v2250_v33 }
0x100a   : > { %v3574_v37 = vmul.f32 %v3573_v22, %v3573_v22 }
0x100c   : > { %v3575_v38 = vsel %vm2279_vm1, %v3574_v37, 0.0 }
0x100d   : > { %3576 = vadd.xlane.f32.xlu1 %v3575_v38 }
0x109a   : > { %v3577_v50 = vpop.xlane.xlu1 %3576 }
0x109b   : > { %v3578_v51 = vmul.f32 0.03125, %v3577_v50 }
0x109d   : > { %v3579_v52 = vadd.f32 1e-05, %v3578_v51 }
0x109f   : > { %10488 = vrsqrt.f32 %v3579_v52 }
0x10a9   : > { %v10489_v53 = vpop.eup %10488 }
0x10aa   : > { %v3581_v55 = vmul.f32 %v10489_v53, %v3573_v22  ;;  %v2253_v22 = vld [vmem:[#allocation19 + $0x18] sm:$0xff] }
0x10ab   : > { %v12950_v37 = vpack.i.bf16 %v2253_v22, %v2252_v36  ;;  %v9797_v3 = vpack.c.bf16 %v2253_v22, %v2252_v36 }
0x10ac   : > { %v3588_v57 = vmul.f32 %v8743_v54, %v3581_v55 }
0x10ae   : > { %v12892_v58 = vadd.f32 %v8744_v56, %v3588_v57 }
0x10b0   : > { %9302 = vmatmul.mubr.msk.f32.vlgmr.msra.gmra.mrb[8].mxu0 %vm2279_vm1, %v12892_v58 }
0x10b1   : > { %9323 = vmatprep.mubr.msk.f32.mxu0 %vm11807_vm0, %v11808_v1  ;;  %9779 = vmatpush3.bf16.xpose.msk.msra.mxu0 %vm12663_vm2, %v9777_v4 }
0x10b2   : > { %9780 = vmatprep.subr.bf16.mxu0 %v11806_v0 }
0x10b9   : > { %9783 = vmatpush3.bf16.xpose.msk.msra.mxu0 %vm12663_vm2, %v9781_v7 }
0x10ba   : > { %9336 = vmatprep.subr.mxu0 %v11808_v1 }
0x10c0   : > { %9324 = vmatmul.mubr.msk.f32.vlgmr.msra.gmra.mrb[10].mxu0 %vm2279_vm1, %v2210_v49 }
0x10c1   : > { %9338 = vmatprep.mubr.msk.f32.mxu0 %vm11807_vm0, %v11808_v1  ;;  %9337 = vmatpush3.xpose.msk.msra.mxu0 %vm2541_vm3, %v4031_v9 }
0x10c2   : > { %9784 = vmatprep.subr.bf16.mxu0 %v11806_v0 }
0x1183   : > { %v3683_v11 = vpop.f32.mrb[8].mxu0 }
0x1184   : > { %v12920_v12 = vadd.f32 %v8745_v10, %v3683_v11  ;;  %v9303_v13 = vpop.f32.mrb[9].mxu0 }
0x1186   : > { %4028 = vrot.lane.b32.xlu1 %v12920_v12, %s13704_s5  ;;  %9329 = vmatmul.mubr.msk.f32.vlgmr.msra.gmra.mrb[24].mxu1 %vm2541_vm3, %v12920_v12 }
0x1187   : > { %9333 = vmatprep.mubr.msk.f32.mxu1 %vm11807_vm0, %v11808_v1 }
0x1193   : > { %v3862_v16 = vpop.f32.mrb[10].mxu0 }
0x1194   : > { %v12928_v17 = vadd.f32 %v8757_v14, %v3862_v16  ;;  %v9325_v19 = vpop.f32.mrb[11].mxu0 }
0x1196   : > { %9332 = vmatpush3.msra.mxu1 %v12928_v17 }
0x1197   : > { %9341 = vmatprep.subr.mxu1 %v11808_v1 }
0x11f8   : > { %v4029_v20 = vpop.permute.xlu1 %4028 }
0x11f9   : > { %9339 = vmatmul.mubr.msk.f32.vlgmr.msra.gmra.mrb[12].mxu0 %vm2541_vm3, %v4029_v20 }
0x11fa   : > { %9354 = vmatprep.mubr.msk.f32.mxu0 %vm11807_vm0, %v11808_v1 }
0x1259   : > { %v3938_v23 = vpop.f32.mrb[24].mxu1 }
0x125a   : > { %v3942_v24 = vmul.f32 0.35355338, %v3938_v23  ;;  %v9330_v25 = vpop.f32.mrb[25].mxu1 }
0x125c   : > { %v3943_v26 = vadd.f32 %v3942_v24, %v12940_v21 }
0x125e   : > { %v3944_v27 = vsel %vm2541_vm3, %v3943_v26, -inf }
0x125f   : > { %3945 = vmax.xlane.f32.xlu0 %v3944_v27 }
0x12cc   : > { %v4102_v18 = vpop.f32.mrb[12].mxu0 }
0x12cd   : > { %v4106_v28 = vmul.f32 0.35355338, %v4102_v18  ;;  %v9340_v29 = vpop.f32.mrb[13].mxu0 }
0x12cf   : > { %v4107_v31 = vadd.f32 %v4106_v28, %v12940_v21 }
0x12d1   : > { %v4108_v32 = vsel %vm2541_vm3, %v4107_v31, -inf }
0x12d2   : > { %4109 = vmax.xlane.f32.xlu1 %v4108_v32 }
0x12e3   : > { %10383 = vrot.lane.b32.xlu1 %v12946_v35, %s13704_s5 }
0x12e7   : > { %10388 = vrot.lane.b32.xlu1 %v12950_v37, %s13704_s5 }
0x12eb   : > { %4370 = vrot.lane.b32.xlu1 %v12920_v12, %s13706_s8 }
0x12ec   : > { %v3946_v38 = vpop.xlane.xlu0 %3945 }
0x12ed   : > { %v3947_v39 = vsub.f32 %v3943_v26, %v3946_v38 }
0x12ef   : > { %v3948_v40 = vmul.f32 1.442695, %v3947_v39 }
0x12f1   : > { %10490 = vpow2.f32 %v3948_v40 }
0x12fb   : > { %v10491_v41 = vpop.eup %10490 }
0x12fc   : > { %v3950_v15 = vsel %vm2541_vm3, %v10491_v41, 0.0 }
0x12fd   : > { %3951 = vadd.xlane.f32.xlu0 %v3950_v15 }
0x135f   : > { %v4110_v42 = vpop.xlane.xlu1 %4109 }
0x1360   : > { %v4111_v44 = vsub.f32 %v4107_v31, %v4110_v42 }
0x1362   : > { %v4112_v45 = vmul.f32 1.442695, %v4111_v44 }
0x1363   : > { %v10384_v46 = vpop.permute.xlu1 %10383 }
0x1364   : > { %10492 = vpow2.f32 %v4112_v45  ;;  %v10386_v30 = vunpack.i.h.bf16 %v10384_v46  ;;  %v10385_v47 = vunpack.i.l.bf16 %v10384_v46 }
0x1366   : > { %v9785_v48 = vpack.c.bf16 %v10386_v30, %v10385_v47 }
0x1367   : > { %v10389_v43 = vpop.permute.xlu1 %10388 }
0x1368   : > { %v10391_v49 = vunpack.i.h.bf16 %v10389_v43  ;;  %v10390_v50 = vunpack.i.l.bf16 %v10389_v43  ;;  %9787 = vmatpush3.bf16.xpose.msk.msra.mxu0 %vm12778_vm4, %v9785_v48 }
0x1369   : > { %9788 = vmatprep.subr.bf16.mxu0 %v11806_v0 }
0x136a   : > { %v9789_v51 = vpack.c.bf16 %v10391_v49, %v10390_v50 }
0x136b   : > { %v4371_v10 = vpop.permute.xlu1 %4370 }
0x136e   : > { %v10493_v52 = vpop.eup %10492 }
0x136f   : > { %v4114_v53 = vsel %vm2541_vm3, %v10493_v52, 0.0 }
0x1370   : > { %4115 = vadd.xlane.f32.xlu0 %v4114_v53  ;;  %9791 = vmatpush3.bf16.xpose.msk.msra.mxu0 %vm12778_vm4, %v9789_v51 }
0x1371   : > { %9368 = vmatprep.subr.mxu0 %v11808_v1 }
0x1386   : > { %4120 = vrot.lane.b32.xlu0 %v12928_v17, %s13704_s5 }
0x138a   : > { %v3952_v54 = vpop.xlane.xlu0 %3951  ;;  %4372 = vrot.lane.b32.xlu0 %v12898_v61, %s13706_s8 }
0x138b   : > { %10494 = vrcp.f32 %v3952_v54 }
0x1395   : > { %v10495_v55 = vpop.eup %10494 }
0x1396   : > { %v3954_v56 = vmul.f32 %v10495_v55, %v10491_v41 }
0x1398   : > { %9334 = vmatmul.mubr.msk.f32.vlgmr.msra.gmra.mrb[26].mxu1 %vm2541_vm3, %v3954_v56 }
0x1399   : > { %9343 = vmatprep.mubr.msk.f32.mxu1 %vm11807_vm0, %v11808_v1 }
0x13fd   : > { %v4116_v57 = vpop.xlane.xlu0 %4115 }
0x13fe   : > { %10496 = vrcp.f32 %v4116_v57 }
0x1401   : > { %v4121_v59 = vpop.permute.xlu0 %4120 }
0x1402   : > { %9342 = vmatpush3.msra.mxu1 %v4121_v59 }
0x1403   : > { %9792 = vmatprep.subr.bf16.mxu1 %v11806_v0 }
0x1405   : > { %v4373_v7 = vpop.permute.xlu0 %4372 }
0x1408   : > { %v10497_v60 = vpop.eup %10496 }
0x1409   : > { %v4118_v63 = vmul.f32 %v10497_v60, %v10493_v52 }
0x140b   : > { %9344 = vmatmul.mubr.msk.f32.vlgmr.msra.gmra.mrb[28].mxu1 %vm2541_vm3, %v4118_v63 }
0x140c   : > { %9795 = vmatpush3.bf16.xpose.msk.msra.mxu1 %vm12778_vm4, %v9793_v62  ;;  %9365 = vmatprep.mubr.msk.f32.mxu1 %vm11807_vm0, %v11808_v1 }
0x140d   : > { %9796 = vmatprep.subr.bf16.mxu1 %v11806_v0 }
0x1414   : > { %9799 = vmatpush3.bf16.xpose.msk.msra.mxu1 %vm12778_vm4, %v9797_v3 }
0x1415   : > { %9373 = vmatprep.subr.mxu1 %v11808_v1 }
0x146b   : > { %v4024_v4 = vpop.f32.mrb[26].mxu1 }
0x146c   : > { %v9335_v5 = vpop.f32.mrb[27].mxu1  ;;  %9366 = vmatmul.mubr.msk.f32.vlgmr.msra.gmra.mrb[30].mxu1 %vm2541_vm3, %v4024_v4 }
0x146d   : > { %9375 = vmatprep.mubr.msk.f32.mxu1 %vm11807_vm0, %v11808_v1 }
0x14de   : > { %v4192_v6 = vpop.f32.mrb[28].mxu1 }
0x14df   : > { %v9345_v9 = vpop.f32.mrb[29].mxu1  ;;  %9355 = vmatmul.mubr.msk.f32.vlgmr.msra.gmra.mrb[14].mxu0 %vm2541_vm3, %v4192_v6 }
0x14e0   : > { %9369 = vmatpush3.xpose.msk.msra.mxu0 %vm2541_vm3, %v4373_v7  ;;  %9370 = vmatprep.mubr.msk.f32.mxu0 %vm11807_vm0, %v11808_v1 }
0x14e1   : > { %9800 = vmatprep.subr.bf16.mxu0 %v11806_v0 }
0x14e3   : > { %9371 = vmatmul.mubr.msk.f32.vlgmr.msra.gmra.mrb[16].mxu0 %vm2541_vm3, %v4371_v10  ;;  %v8795_v10 = vld [vmem:[#allocation20] ss:$0 sm:$0xff] }
0x14e4   : > { %9386 = vmatprep.mubr.msk.f32.mxu0 %vm11807_vm0, %v11808_v1 }
0x153f   : > { %v4366_v11 = vpop.f32.mrb[30].mxu1 }
0x1540   : > { %v9367_v13 = vpop.f32.mrb[31].mxu1 }
0x15b2   : > { %v4285_v14 = vpop.f32.mrb[14].mxu0 }
0x15b3   : > { %v12992_v16 = vadd.f32 %v4366_v11, %v4285_v14  ;;  %v9356_v19 = vpop.f32.mrb[15].mxu0 }
0x15b6   : > { %v4444_v20 = vpop.f32.mrb[16].mxu0 }
0x15b7   : > { %v4448_v23 = vmul.f32 0.35355338, %v4444_v20  ;;  %v9372_v24 = vpop.f32.mrb[17].mxu0 }
0x15b8   : > { %v2257_v24 = vld [vmem:[%s13708_s6] sm:$0xff] }
0x15b9   : > { %v4449_v25 = vadd.f32 %v4448_v23, %v12940_v21 }
0x15bb   : > { %v4450_v26 = vsel %vm2541_vm3, %v4449_v25, -inf }
0x15bc   : > { %4451 = vmax.xlane.f32.xlu0 %v4450_v26 }
0x15d2   : > { %4461 = vrot.lane.b32.xlu0 %v12928_v17, %s13706_s8 }
0x15d6   : > { %4627 = vrot.lane.b32.xlu0 %v12920_v12, %s13707_s4 }
0x1649   : > { %v4452_v27 = vpop.xlane.xlu0 %4451 }
0x164a   : > { %v4453_v18 = vsub.f32 %v4449_v25, %v4452_v27  ;;  %v2258_v25 = vld [vmem:[%s13708_s6 + $0x8] sm:$0xff]  ;;  %v2260_v27 = vld [vmem:[%s13708_s6 + $0x18] sm:$0xff] }
0x164b   : > { %v9817_v26 = vpack.c.bf16 %v2258_v25, %v2257_v24 }
0x164c   : > { %v4454_v28 = vmul.f32 1.442695, %v4453_v18 }
0x164d   : > { %v4462_v29 = vpop.permute.xlu0 %4461 }
0x164e   : > { %10498 = vpow2.f32 %v4454_v28  ;;  %9374 = vmatpush3.msra.mxu1 %v4462_v29 }
0x164f   : > { %9389 = vmatprep.subr.mxu1 %v11808_v1 }
0x1651   : > { %v4628_v22 = vpop.permute.xlu0 %4627 }
0x1658   : > { %v10499_v31 = vpop.eup %10498 }
0x1659   : > { %v4456_v32 = vsel %vm2541_vm3, %v10499_v31, 0.0 }
0x165a   : > { %4457 = vadd.xlane.f32.xlu1 %v4456_v32 }
0x166b   : > { %4629 = vrot.lane.b32.xlu1 %v12898_v61, %s13707_s4 }
0x16e7   : > { %v4458_v33 = vpop.xlane.xlu1 %4457 }
0x16e8   : > { %10500 = vrcp.f32 %v4458_v33  ;;  %v2261_v33 = vld [vmem:[%s13708_s6 + $0x20] sm:$0xff] }
0x16eb   : > { %v4630_v12 = vpop.permute.xlu1 %4629 }
0x16f2   : > { %v10501_v34 = vpop.eup %10500 }
0x16f3   : > { %v4460_v36 = vmul.f32 %v10501_v34, %v10499_v31  ;;  %v2262_v34 = vld [vmem:[%s13708_s6 + $0x28] sm:$0xff] }
0x16f5   : > { %9376 = vmatmul.mubr.msk.f32.vlgmr.msra.gmra.mrb[32].mxu1 %vm2541_vm3, %v4460_v36  ;;  %v9825_v36 = vpack.c.bf16 %v2262_v34, %v2261_v33 }
0x16f6   : > { %9390 = vmatpush3.xpose.msk.msra.mxu1 %vm2541_vm3, %v4630_v12  ;;  %9391 = vmatprep.mubr.msk.f32.mxu1 %vm11807_vm0, %v11808_v1  ;;  %v2263_v12 = vld [vmem:[%s13708_s6 + $0x30] sm:$0xff] }
0x16f7   : > { %9394 = vmatprep.subr.mxu1 %v11808_v1 }
0x16f9   : > { %9392 = vmatmul.mubr.msk.f32.vlgmr.msra.gmra.mrb[34].mxu1 %vm2541_vm3, %v4628_v22  ;;  %v2264_v22 = vld [vmem:[%s13708_s6 + $0x38] sm:$0xff] }
0x16fa   : > { %9396 = vmatprep.mubr.msk.f32.mxu1 %vm11807_vm0, %v11808_v1 }
0x17c8   : > { %v4533_v61 = vpop.f32.mrb[32].mxu1 }
0x17c9   : > { %v9377_v38 = vpop.f32.mrb[33].mxu1 }
0x17ca   : > { %v2266_v38 = vld [vmem:[#allocation26] sm:$0xff] }
0x17cc   : > { %v4701_v39 = vpop.f32.mrb[34].mxu1 }
0x17cd   : > { %v4705_v40 = vmul.f32 0.35355338, %v4701_v39  ;;  %v9393_v41 = vpop.f32.mrb[35].mxu1  ;;  %v2267_v39 = vld [vmem:[#allocation26 + $0x8] sm:$0xff] }
0x17ce   : > { %v8932_v41 = vld [vmem:[#allocation58] ss:$0 sm:$0xff] }
0x17cf   : > { %v4706_v15 = vadd.f32 %v4705_v40, %v12940_v21  ;;  %v9833_v40 = vpack.c.bf16 %v2267_v39, %v2266_v38 }
0x17d1   : > { %v4707_v42 = vsel %vm2541_vm3, %v4706_v15, -inf }
0x17d2   : > { %4708 = vmax.xlane.f32.xlu1 %v4707_v42  ;;  %v2269_v42 = vld [vmem:[#allocation26 + $0x18] sm:$0xff] }
0x17e3   : > { %10393 = vrot.lane.b32.xlu1 %v12946_v35, %s13706_s8 }
0x17e7   : > { %10398 = vrot.lane.b32.xlu1 %v12946_v35, %s13707_s4 }
0x17eb   : > { %10408 = vrot.lane.b32.xlu1 %v12950_v37, %s13707_s4 }
0x185f   : > { %v4709_v44 = vpop.xlane.xlu1 %4708 }
0x1860   : > { %v4710_v45 = vsub.f32 %v4706_v15, %v4709_v44  ;;  %v2268_v15 = vld [vmem:[#allocation26 + $0x10] sm:$0xff] }
0x1861   : > { %v9837_v44 = vpack.c.bf16 %v2269_v42, %v2268_v15 }
0x1862   : > { %v4711_v46 = vmul.f32 1.442695, %v4710_v45 }
0x1863   : > { %v10394_v48 = vpop.permute.xlu1 %10393 }
0x1864   : > { %10502 = vpow2.f32 %v4711_v46  ;;  %v10396_v43 = vunpack.i.h.bf16 %v10394_v48  ;;  %v10395_v49 = vunpack.i.l.bf16 %v10394_v48  ;;  %v8796_v48 = vld [vmem:[#allocation22] ss:$0 sm:$0xff] }
0x1866   : > { %v9801_v50 = vpack.c.bf16 %v10396_v43, %v10395_v49  ;;  %v8797_v49 = vld [vmem:[#allocation23] ss:$0 sm:$0xff] }
0x1867   : > { %v10399_v53 = vpop.permute.xlu1 %10398 }
0x1868   : > { %9803 = vmatpush3.bf16.xpose.msk.msra.mxu0 %vm12778_vm4, %v9801_v50  ;;  %v10400_v56 = vunpack.i.l.bf16 %v10399_v53 }
0x1869   : > { %9804 = vmatprep.subr.bf16.mxu0 %v11806_v0 }
0x186b   : > { %v10409_v35 = vpop.permute.xlu1 %10408 }
0x186c   : > { %v10410_v63 = vunpack.i.l.bf16 %v10409_v35 }
0x186e   : > { %v10503_v30 = vpop.eup %10502 }
0x186f   : > { %v4713_v47 = vsel %vm2541_vm3, %v10503_v30, 0.0 }
0x1870   : > { %4714 = vadd.xlane.f32.xlu0 %v4713_v47 }
0x1886   : > { %4718 = vrot.lane.b32.xlu0 %v12928_v17, %s13707_s4  ;;  %v10401_v17 = vunpack.i.h.bf16 %v10399_v53 }
0x1888   : > { %v9809_v60 = vpack.c.bf16 %v10401_v17, %v10400_v56  ;;  %v8808_v17 = vld [vmem:[#allocation28] ss:$0 sm:$0xff] }
0x188a   : > { %10403 = vrot.lane.b32.xlu0 %v12950_v37, %s13706_s8  ;;  %v10411_v37 = vunpack.i.h.bf16 %v10409_v35 }
0x188c   : > { %v9813_v3 = vpack.c.bf16 %v10411_v37, %v10410_v63 }
0x18fd   : > { %v4715_v21 = vpop.xlane.xlu0 %4714 }
0x18fe   : > { %10504 = vrcp.f32 %v4715_v21 }
0x1901   : > { %v4719_v51 = vpop.permute.xlu0 %4718 }
0x1902   : > { %9395 = vmatpush3.msra.mxu1 %v4719_v51  ;;  %v8798_v51 = vld [vmem:[#allocation25] ss:$0 sm:$0xff] }
0x1903   : > { %9808 = vmatprep.subr.bf16.mxu1 %v11806_v0 }
0x1905   : > { %v10404_v52 = vpop.permute.xlu0 %10403 }
0x1906   : > { %v10406_v54 = vunpack.i.h.bf16 %v10404_v52  ;;  %v10405_v55 = vunpack.i.l.bf16 %v10404_v52 }
0x1908   : > { %v10505_v57 = vpop.eup %10504  ;;  %v9805_v59 = vpack.c.bf16 %v10406_v54, %v10405_v55 }
0x1909   : > { %v4717_v62 = vmul.f32 %v10505_v57, %v10503_v30 }
0x190a   : > { %9807 = vmatpush3.bf16.xpose.msk.msra.mxu0 %vm12778_vm4, %v9805_v59 }
0x190b   : > { %9397 = vmatmul.mubr.msk.f32.vlgmr.msra.gmra.mrb[36].mxu1 %vm2541_vm3, %v4717_v62  ;;  %9816 = vmatprep.subr.bf16.mxu0 %v11806_v0 }
0x190c   : > { %9811 = vmatpush3.bf16.xpose.msk.msra.mxu1 %vm12778_vm4, %v9809_v60  ;;  %9407 = vmatprep.mubr.msk.f32.mxu1 %vm11807_vm0, %v11808_v1 }
0x190d   : > { %9812 = vmatprep.subr.bf16.mxu1 %v11806_v0 }
0x1911   : > { %9387 = vmatmul.mubr.msk.f32.vlgmr.msra.gmra.mrb[18].mxu0 %vm2541_vm3, %v4533_v61  ;;  %v9829_v61 = vpack.c.bf16 %v2264_v22, %v2263_v12  ;;  %v5156_v12 = vld [vmem:[%s13713_s10 + $0x18] sm:$0xff] }
0x1912   : > { %9426 = vmatprep.mubr.msk.f32.mxu0 %vm11807_vm0, %v11808_v1  ;;  %9819 = vmatpush3.bf16.xpose.msk.msra.mxu0 %vm12663_vm2, %v9817_v26 }
0x1913   : > { %9820 = vmatprep.subr.bf16.mxu0 %v11806_v0 }
0x1914   : > { %9815 = vmatpush3.bf16.xpose.msk.msra.mxu1 %vm12778_vm4, %v9813_v3 }
0x1915   : > { %9832 = vmatprep.subr.bf16.mxu1 %v11806_v0 }
0x19de   : > { %v4790_v4 = vpop.f32.mrb[36].mxu1 }
0x19df   : > { %v9398_v5 = vpop.f32.mrb[37].mxu1  ;;  %9408 = vmatmul.mubr.msk.f32.vlgmr.msra.gmra.mrb[38].mxu1 %vm2541_vm3, %v4790_v4 }
0x19e0   : > { %9437 = vmatprep.mubr.msk.f32.mxu1 %vm11807_vm0, %v11808_v1  ;;  %9835 = vmatpush3.bf16.xpose.msk.msra.mxu1 %vm13073_vm6, %v9833_v40 }
0x19e1   : > { %9836 = vmatprep.subr.bf16.mxu1 %v11806_v0 }
0x19e4   : > { %v4622_v6 = vpop.f32.mrb[18].mxu0 }
0x19e5   : > { %v4626_v7 = vadd.f32 %v4622_v6, %v12992_v16  ;;  %v9388_v9 = vpop.f32.mrb[19].mxu0  ;;  %v2259_v16 = vld [vmem:[%s13708_s6 + $0x10] sm:$0xff]  ;;  %s13711_s6 = sld [smem:[#allocation110_spill]] }
0x19e6   : > { %v9821_v18 = vpack.c.bf16 %v2260_v27, %v2259_v16  ;;  %v5148_v9 = vld [vmem:[%s13712_s9] sm:$0xff] }
0x19e8   : > { %9823 = vmatpush3.bf16.xpose.msk.msra.mxu0 %vm12663_vm2, %v9821_v18  ;;  %9839 = vmatpush3.bf16.xpose.msk.msra.mxu1 %vm13073_vm6, %v9837_v44  ;;  %v8814_v18 = vld [vmem:[#allocation29] ss:$0 sm:$0xff] }
0x19e9   : > { %9824 = vmatprep.subr.bf16.mxu0 %v11806_v0  ;;  %9840 = vmatprep.subr.bf16.mxu1 %v11806_v0 }
0x19eb   : > { %v5143_v5 = vld [vmem:[%s13711_s6] sm:$0xff]  ;;  %v5144_v6 = vld [vmem:[%s13711_s6 + $0x8] sm:$0xff] }
0x19f0   : > { %9827 = vmatpush3.bf16.xpose.msk.msra.mxu0 %vm12663_vm2, %v9825_v36  ;;  %v5155_v36 = vld [vmem:[%s13713_s10 + $0x10] sm:$0xff] }
0x19f1   : > { %9828 = vmatprep.subr.bf16.mxu0 %v11806_v0  ;;  %v9861_v22 = vpack.c.bf16 %v5156_v12, %v5155_v36 }
0x19f8   : > { %9831 = vmatpush3.bf16.xpose.msk.msra.mxu0 %vm12663_vm2, %v9829_v61  ;;  %v8822_v61 = vld [vmem:[#allocation32] ss:$0 sm:$0xff] }
0x19f9   : > { %9848 = vmatprep.subr.bf16.mxu0 %v11806_v0 }
0x1ab2   : > { %v4879_v11 = vpop.f32.mrb[38].mxu1 }
0x1ab3   : > { %v4883_v13 = vadd.f32 %v4879_v11, %v4626_v7  ;;  %v9409_v14 = vpop.f32.mrb[39].mxu1  ;;  %v9841_v7 = vpack.c.bf16 %v5144_v6, %v5143_v5 }
0x1ab4   : > { %v5146_v14 = vld [vmem:[%s13711_s6 + $0x18] sm:$0xff] }
0x1ab5   : > { %v4890_v19 = vadd.f32 %v8795_v10, %v4883_v13  ;;  %v5149_v10 = vld [vmem:[%s13712_s9 + $0x8] sm:$0xff]  ;;  %v5145_v13 = vld [vmem:[%s13711_s6 + $0x10] sm:$0xff]  ;;  %s13714_s6 = sld [smem:[#allocation111_spill]] }
0x1ab6   : > { %v9849_v11 = vpack.c.bf16 %v5149_v10, %v5148_v9 }
0x1ab7   : > { %v4891_v20 = vadd.f32 %v4890_v19, %v12892_v58  ;;  %v9845_v19 = vpack.c.bf16 %v5146_v14, %v5145_v13 }
0x1ab9   : > { %v4892_v23 = vsel %vm2279_vm1, %v4891_v20, 0.0 }
0x1aba   : > { %4893 = vadd.xlane.f32.xlu0 %v4892_v23  ;;  %v5151_v23 = vld [vmem:[%s13712_s9 + $0x18] sm:$0xff] }
0x1abb   : > { %v8816_v40 = vld [vmem:[%s13714_s6] ss:$0 sm:$0xff] }
0x1b47   : > { %v4894_v58 = vpop.xlane.xlu0 %4893 }
0x1b48   : > { %v4895_v28 = vmul.f32 0.03125, %v4894_v58 }
0x1b4a   : > { %v4896_v29 = vsub.f32 %v4891_v20, %v4895_v28  ;;  %v5150_v20 = vld [vmem:[%s13712_s9 + $0x10] sm:$0xff]  ;;  %v5153_v28 = vld [vmem:[%s13713_s10] sm:$0xff] }
0x1b4b   : > { %v9853_v24 = vpack.c.bf16 %v5151_v23, %v5150_v20 }
0x1b4c   : > { %v4897_v31 = vmul.f32 %v4896_v29, %v4896_v29 }
0x1b4e   : > { %v4898_v32 = vsel %vm2279_vm1, %v4897_v31, 0.0  ;;  %v8815_v31 = vld [vmem:[#allocation31] ss:$0 sm:$0xff] }
0x1b4f   : > { %4899 = vadd.xlane.f32.xlu1 %v4898_v32 }
0x1bdc   : > { %v4900_v45 = vpop.xlane.xlu1 %4899 }
0x1bdd   : > { %v4901_v46 = vmul.f32 0.03125, %v4900_v45 }
0x1bdf   : > { %v4902_v30 = vadd.f32 1e-05, %v4901_v46  ;;  %v8828_v46 = vld [vmem:[#allocation34] ss:$0 sm:$0xff] }
0x1be1   : > { %10506 = vrsqrt.f32 %v4902_v30 }
0x1beb   : > { %v10507_v47 = vpop.eup %10506 }
0x1bec   : > { %v4904_v43 = vmul.f32 %v10507_v47, %v4896_v29  ;;  %v5154_v29 = vld [vmem:[%s13713_s10 + $0x8] sm:$0xff] }
0x1bed   : > { %v9857_v33 = vpack.c.bf16 %v5154_v29, %v5153_v28 }
0x1bee   : > { %v4911_v50 = vmul.f32 %v8796_v48, %v4904_v43 }
0x1bf0   : > { %v4918_v21 = vadd.f32 %v8797_v49, %v4911_v50 }
0x1bf2   : > { %9427 = vmatmul.mubr.msk.f32.vlgmr.msra.gmra.mrb[20].mxu0 %vm2279_vm1, %v4918_v21 }
0x1bf3   : > { %9459 = vmatprep.mubr.msk.f32.mxu0 %vm11807_vm0, %v11808_v1  ;;  %9851 = vmatpush3.bf16.xpose.msk.msra.mxu0 %vm12663_vm2, %v9849_v11 }
0x1bf4   : > { %9852 = vmatprep.subr.bf16.mxu0 %v11806_v0 }
0x1bfb   : > { %9855 = vmatpush3.bf16.xpose.msk.msra.mxu0 %vm12663_vm2, %v9853_v24 }
0x1bfc   : > { %9473 = vmatprep.subr.mxu0 %v11808_v1 }
0x1cc5   : > { %v5018_v52 = vpop.f32.mrb[20].mxu0 }
0x1cc6   : > { %v5019_v53 = vadd.f32 %v8798_v51, %v5018_v52  ;;  %v9428_v54 = vpop.f32.mrb[21].mxu0 }
0x1cc8   : > { %v5022_v55 = vmax.f32 %v5019_v53, 0.0 }
0x1cca   : > { %9438 = vmatmul.mubr.msk.f32.vlgmr.msra.gmra.mrb[40].mxu1 %vm5029_vm5, %v5022_v55 }
0x1ccb   : > { %9448 = vmatprep.mubr.msk.f32.mxu1 %vm11807_vm0, %v11808_v1  ;;  %9843 = vmatpush3.bf16.xpose.msk.msra.mxu1 %vm12663_vm2, %v9841_v7 }
0x1ccc   : > { %9844 = vmatprep.subr.bf16.mxu1 %v11806_v0 }
0x1cd3   : > { %9847 = vmatpush3.bf16.xpose.msk.msra.mxu1 %vm12663_vm2, %v9845_v19 }
0x1cd4   : > { %9856 = vmatprep.subr.bf16.mxu1 %v11806_v0 }
0x1d9d   : > { %v5111_v56 = vpop.f32.mrb[40].mxu1 }
0x1d9e   : > { %v5112_v57 = vadd.f32 %v8808_v17, %v5111_v56  ;;  %v9439_v59 = vpop.f32.mrb[41].mxu1 }
0x1da0   : > { %v5115_v60 = vadd.f32 %v5112_v57, %v4918_v21  ;;  %v13152_v21 = vld [vmem:[%s12734_s11] sm:$0xff]  ;;  %s13715_s11 = sld [smem:[#allocation116_spill]] }
0x1da2   : > { %v5116_v62 = vsel %vm2279_vm1, %v5115_v60, 0.0 }
0x1da3   : > { %5117 = vadd.xlane.f32.xlu0 %v5116_v62 }
0x1da6   : > { %v5158_v9 = vld [vmem:[%s13715_s11] sm:$0xff]  ;;  %v5159_v10 = vld [vmem:[%s13715_s11 + $0x8] sm:$0xff]  ;;  %v5160_v13 = vld [vmem:[%s13715_s11 + $0x10] sm:$0xff] }
0x1da7   : > { %v13173_v11 = vpack.i.bf16 %v5159_v10, %v5158_v9  ;;  %v5161_v14 = vld [vmem:[%s13715_s11 + $0x18] sm:$0xff] }
0x1da8   : > { %v13179_v19 = vpack.i.bf16 %v5161_v14, %v5160_v13 }
0x1e30   : > { %v5118_v35 = vpop.xlane.xlu0 %5117 }
0x1e31   : > { %v5119_v37 = vmul.f32 0.03125, %v5118_v35 }
0x1e33   : > { %v5120_v63 = vsub.f32 %v5115_v60, %v5119_v37 }
0x1e35   : > { %v5121_v3 = vmul.f32 %v5120_v63, %v5120_v63 }
0x1e37   : > { %v5122_v4 = vsel %vm2279_vm1, %v5121_v3, 0.0 }
0x1e38   : > { %5123 = vadd.xlane.f32.xlu0 %v5122_v4 }
0x1ec5   : > { %v5124_v25 = vpop.xlane.xlu0 %5123 }
0x1ec6   : > { %v5125_v26 = vmul.f32 0.03125, %v5124_v25 }
0x1ec8   : > { %v5126_v16 = vadd.f32 1e-05, %v5125_v26 }
0x1eca   : > { %10508 = vrsqrt.f32 %v5126_v16 }
0x1ed4   : > { %v10509_v27 = vpop.eup %10508 }
0x1ed5   : > { %v5128_v58 = vmul.f32 %v10509_v27, %v5120_v63 }
0x1ed7   : > { %v5135_v32 = vmul.f32 %v8814_v18, %v5128_v58 }
0x1ed9   : > { %v13113_v34 = vadd.f32 %v8815_v31, %v5135_v32 }
0x1edb   : > { %9449 = vmatmul.mubr.msk.f32.vlgmr.msra.gmra.mrb[42].mxu1 %vm2279_vm1, %v13113_v34  ;;  %9460 = vmatmul.mubr.msk.f32.vlgmr.msra.gmra.mrb[22].mxu0 %vm2279_vm1, %v13113_v34 }
0x1edc   : > { %9859 = vmatpush3.bf16.xpose.msk.msra.mxu1 %vm12663_vm2, %v9857_v33  ;;  %9470 = vmatprep.mubr.msk.f32.mxu1 %vm11807_vm0, %v11808_v1 }
0x1edd   : > { %9860 = vmatprep.subr.bf16.mxu1 %v11806_v0  ;;  %9475 = vmatprep.mubr.msk.f32.mxu0 %vm11807_vm0, %v11808_v1 }
0x1ee4   : > { %9863 = vmatpush3.bf16.xpose.msk.msra.mxu1 %vm12663_vm2, %v9861_v22  ;;  %v9873_v22 = vpack.c.bf16 %v5159_v10, %v5158_v9 }
0x1ee5   : > { %9488 = vmatprep.subr.mxu1 %v11808_v1 }
0x1eeb   : > { %9471 = vmatmul.mubr.msk.f32.vlgmr.msra.gmra.mrb[44].mxu1 %vm2279_vm1, %v13113_v34 }
0x1eec   : > { %9490 = vmatprep.mubr.msk.f32.mxu1 %vm11807_vm0, %v11808_v1 }
0x1fae   : > { %v5290_v38 = vpop.f32.mrb[42].mxu1  ;;  %v5378_v39 = vpop.f32.mrb[22].mxu0 }
0x1faf   : > { %v13136_v15 = vadd.f32 %v8822_v61, %v5378_v39  ;;  %v9450_v42 = vpop.f32.mrb[43].mxu1  ;;  %v9461_v44 = vpop.f32.mrb[23].mxu0  ;;  %v13140_v45 = vadd.f32 %v8816_v40, %v5290_v38  ;;  %v9877_v38 = vpack.c.bf16 %v5161_v14, %v5160_v13 }
0x1fb1   : > { %9474 = vmatpush3.xpose.msk.msra.mxu0 %vm2541_vm3, %v13136_v15 }
0x1fb2   : > { %9478 = vmatprep.subr.mxu0 %v11808_v1 }
0x1fb4   : > { %9476 = vmatmul.mubr.msk.f32.vlgmr.msra.gmra.mrb[24].mxu0 %vm2541_vm3, %v13140_v45 }
0x1fb5   : > { %9480 = vmatprep.mubr.msk.f32.mxu0 %vm11807_vm0, %v11808_v1 }
0x1fbe   : > { %v5466_v30 = vpop.f32.mrb[44].mxu1 }
0x1fbf   : > { %v13147_v47 = vadd.f32 %v8828_v46, %v5466_v30  ;;  %v9472_v48 = vpop.f32.mrb[45].mxu1 }
0x1fc1   : > { %9479 = vmatpush3.msra.mxu0 %v13147_v47 }
0x1fc2   : > { %9483 = vmatprep.subr.mxu0 %v11808_v1 }
0x2087   : > { %v5542_v43 = vpop.f32.mrb[24].mxu0 }
0x2088   : > { %v5546_v49 = vmul.f32 0.35355338, %v5542_v43  ;;  %v9477_v50 = vpop.f32.mrb[25].mxu0 }
0x208a   : > { %v5547_v51 = vadd.f32 %v13152_v21, %v5546_v49 }
0x208c   : > { %v5548_v52 = vsel %vm2541_vm3, %v5547_v51, -inf }
0x208d   : > { %5549 = vmax.xlane.f32.xlu0 %v5548_v52 }
0x20a3   : > { %5634 = vrot.lane.b32.xlu0 %v13136_v15, %s13704_s5 }
0x211a   : > { %v5550_v53 = vpop.xlane.xlu0 %5549 }
0x211b   : > { %v5551_v54 = vsub.f32 %v5547_v51, %v5550_v53 }
0x211d   : > { %v5552_v55 = vmul.f32 1.442695, %v5551_v54 }
0x211e   : > { %v5635_v62 = vpop.permute.xlu0 %5634 }
0x211f   : > { %10510 = vpow2.f32 %v5552_v55 }
0x2129   : > { %v10511_v17 = vpop.eup %10510 }
0x212a   : > { %v5554_v56 = vsel %vm2541_vm3, %v10511_v17, 0.0 }
0x212b   : > { %5555 = vadd.xlane.f32.xlu1 %v5554_v56 }
0x213c   : > { %5632 = vrot.lane.b32.xlu1 %v13140_v45, %s13704_s5 }
0x21b8   : > { %v5556_v57 = vpop.xlane.xlu1 %5555 }
0x21b9   : > { %10512 = vrcp.f32 %v5556_v57 }
0x21bc   : > { %v5633_v35 = vpop.permute.xlu1 %5632 }
0x21c3   : > { %v10513_v59 = vpop.eup %10512 }
0x21c4   : > { %v5558_v60 = vmul.f32 %v10513_v59, %v10511_v17 }
0x21c6   : > { %9481 = vmatmul.mubr.msk.f32.vlgmr.msra.gmra.mrb[26].mxu0 %vm2541_vm3, %v5558_v60 }
0x21c7   : > { %9484 = vmatpush3.xpose.msk.msra.mxu0 %vm2541_vm3, %v5635_v62  ;;  %9485 = vmatprep.mubr.msk.f32.mxu0 %vm11807_vm0, %v11808_v1 }
0x21c8   : > { %9864 = vmatprep.subr.bf16.mxu0 %v11806_v0 }
0x21ca   : > { %9486 = vmatmul.mubr.msk.f32.vlgmr.msra.gmra.mrb[28].mxu0 %vm2541_vm3, %v5633_v35 }
0x21cb   : > { %9501 = vmatprep.mubr.msk.f32.mxu0 %vm11807_vm0, %v11808_v1 }
0x2299   : > { %v5628_v37 = vpop.f32.mrb[26].mxu0 }
0x229a   : > { %v9482_v63 = vpop.f32.mrb[27].mxu0 }
0x229d   : > { %v5706_v3 = vpop.f32.mrb[28].mxu0 }
0x229e   : > { %v5710_v4 = vmul.f32 0.35355338, %v5706_v3  ;;  %v9487_v5 = vpop.f32.mrb[29].mxu0 }
0x22a0   : > { %v5711_v6 = vadd.f32 %v13152_v21, %v5710_v4 }
0x22a2   : > { %v5712_v7 = vsel %vm2541_vm3, %v5711_v6, -inf }
0x22a3   : > { %5713 = vmax.xlane.f32.xlu1 %v5712_v7 }
0x22b4   : > { %10413 = vrot.lane.b32.xlu1 %v13173_v11, %s13704_s5 }
0x22b8   : > { %10418 = vrot.lane.b32.xlu1 %v13179_v19, %s13704_s5 }
0x22bc   : > { %5976 = vrot.lane.b32.xlu1 %v13136_v15, %s13706_s8 }
0x2330   : > { %v5714_v20 = vpop.xlane.xlu1 %5713 }
0x2331   : > { %v5715_v23 = vsub.f32 %v5711_v6, %v5714_v20 }
0x2333   : > { %v5716_v24 = vmul.f32 1.442695, %v5715_v23 }
0x2334   : > { %v10414_v25 = vpop.permute.xlu1 %10413 }
0x2335   : > { %10514 = vpow2.f32 %v5716_v24  ;;  %v10416_v26 = vunpack.i.h.bf16 %v10414_v25  ;;  %v10415_v16 = vunpack.i.l.bf16 %v10414_v25 }
0x2337   : > { %v9865_v27 = vpack.c.bf16 %v10416_v26, %v10415_v16 }
0x2338   : > { %v10419_v18 = vpop.permute.xlu1 %10418 }
0x2339   : > { %v10421_v58 = vunpack.i.h.bf16 %v10419_v18  ;;  %v10420_v28 = vunpack.i.l.bf16 %v10419_v18  ;;  %9867 = vmatpush3.bf16.xpose.msk.msra.mxu0 %vm12778_vm4, %v9865_v27 }
0x233a   : > { %9868 = vmatprep.subr.bf16.mxu0 %v11806_v0 }
0x233b   : > { %v9869_v29 = vpack.c.bf16 %v10421_v58, %v10420_v28 }
0x233c   : > { %v5977_v40 = vpop.permute.xlu1 %5976 }
0x233f   : > { %v10515_v31 = vpop.eup %10514 }
0x2340   : > { %v5718_v32 = vsel %vm2541_vm3, %v10515_v31, 0.0 }
0x2341   : > { %5719 = vadd.xlane.f32.xlu0 %v5718_v32  ;;  %9871 = vmatpush3.bf16.xpose.msk.msra.mxu0 %vm12778_vm4, %v9869_v29 }
0x2342   : > { %9515 = vmatprep.subr.mxu0 %v11808_v1 }
0x2357   : > { %5724 = vrot.lane.b32.xlu0 %v13147_v47, %s13704_s5 }
0x235b   : > { %5974 = vrot.lane.b32.xlu0 %v13140_v45, %s13706_s8 }
0x23ce   : > { %v5720_v33 = vpop.xlane.xlu0 %5719 }
0x23cf   : > { %10516 = vrcp.f32 %v5720_v33 }
0x23d2   : > { %v5725_v36 = vpop.permute.xlu0 %5724 }
0x23d3   : > { %9489 = vmatpush3.msra.mxu1 %v5725_v36 }
0x23d4   : > { %9872 = vmatprep.subr.bf16.mxu1 %v11806_v0 }
0x23d6   : > { %v5975_v44 = vpop.permute.xlu0 %5974 }
0x23d9   : > { %v10517_v12 = vpop.eup %10516 }
0x23da   : > { %v5722_v61 = vmul.f32 %v10517_v12, %v10515_v31 }
0x23dc   : > { %9491 = vmatmul.mubr.msk.f32.vlgmr.msra.gmra.mrb[46].mxu1 %vm2541_vm3, %v5722_v61 }
0x23dd   : > { %9875 = vmatpush3.bf16.xpose.msk.msra.mxu1 %vm12778_vm4, %v9873_v22  ;;  %9512 = vmatprep.mubr.msk.f32.mxu1 %vm11807_vm0, %v11808_v1 }
0x23de   : > { %9876 = vmatprep.subr.bf16.mxu1 %v11806_v0 }
0x23e5   : > { %9879 = vmatpush3.bf16.xpose.msk.msra.mxu1 %vm12778_vm4, %v9877_v38 }
0x23e6   : > { %9520 = vmatprep.subr.mxu1 %v11808_v1 }
0x23ec   : > { %9513 = vmatmul.mubr.msk.f32.vlgmr.msra.gmra.mrb[48].mxu1 %vm2541_vm3, %v5628_v37 }
0x23ed   : > { %9522 = vmatprep.mubr.msk.f32.mxu1 %vm11807_vm0, %v11808_v1 }
0x24af   : > { %v5796_v39 = vpop.f32.mrb[46].mxu1 }
0x24b0   : > { %v9492_v42 = vpop.f32.mrb[47].mxu1  ;;  %9502 = vmatmul.mubr.msk.f32.vlgmr.msra.gmra.mrb[30].mxu0 %vm2541_vm3, %v5796_v39 }
0x24b1   : > { %9516 = vmatpush3.xpose.msk.msra.mxu0 %vm2541_vm3, %v5977_v40  ;;  %9517 = vmatprep.mubr.msk.f32.mxu0 %vm11807_vm0, %v11808_v1 }
0x24b2   : > { %9880 = vmatprep.subr.bf16.mxu0 %v11806_v0 }
0x24b4   : > { %9518 = vmatmul.mubr.msk.f32.vlgmr.msra.gmra.mrb[32].mxu0 %vm2541_vm3, %v5975_v44 }
0x24b5   : > { %9533 = vmatprep.mubr.msk.f32.mxu0 %vm11807_vm0, %v11808_v1 }
0x24bf   : > { %v5970_v46 = vpop.f32.mrb[48].mxu1 }
0x24c0   : > { %v9514_v30 = vpop.f32.mrb[49].mxu1 }
0x2583   : > { %v5889_v48 = vpop.f32.mrb[30].mxu0 }
0x2584   : > { %v13217_v43 = vadd.f32 %v5970_v46, %v5889_v48  ;;  %v9503_v49 = vpop.f32.mrb[31].mxu0  ;;  %v8866_v46 = vld [vmem:[#allocation35] ss:$0 sm:$0xff] }
0x2587   : > { %v6048_v50 = vpop.f32.mrb[32].mxu0 }
0x2588   : > { %v6052_v51 = vmul.f32 0.35355338, %v6048_v50  ;;  %v9519_v52 = vpop.f32.mrb[33].mxu0 }
0x258a   : > { %v6053_v53 = vadd.f32 %v13152_v21, %v6052_v51 }
0x258c   : > { %v6054_v54 = vsel %vm2541_vm3, %v6053_v53, -inf }
0x258d   : > { %6055 = vmax.xlane.f32.xlu1 %v6054_v54 }
0x259e   : > { %6233 = vrot.lane.b32.xlu1 %v13136_v15, %s13707_s4 }
0x25a2   : > { %6231 = vrot.lane.b32.xlu1 %v13140_v45, %s13707_s4 }
0x261a   : > { %v6056_v55 = vpop.xlane.xlu1 %6055 }
0x261b   : > { %v6057_v17 = vsub.f32 %v6053_v53, %v6056_v55 }
0x261d   : > { %v6058_v56 = vmul.f32 1.442695, %v6057_v17 }
0x261e   : > { %v6234_v35 = vpop.permute.xlu1 %6233 }
0x261f   : > { %10518 = vpow2.f32 %v6058_v56 }
0x2622   : > { %v6232_v37 = vpop.permute.xlu1 %6231 }
0x2629   : > { %v10519_v57 = vpop.eup %10518 }
0x262a   : > { %v6060_v59 = vsel %vm2541_vm3, %v10519_v57, 0.0 }
0x262b   : > { %6061 = vadd.xlane.f32.xlu0 %v6060_v59 }
0x2641   : > { %6065 = vrot.lane.b32.xlu0 %v13147_v47, %s13706_s8 }
0x26b8   : > { %v6062_v60 = vpop.xlane.xlu0 %6061 }
0x26b9   : > { %10520 = vrcp.f32 %v6062_v60  ;;  %v5165_v60 = vld [vmem:[#allocation40] sm:$0xff] }
0x26bc   : > { %v6066_v62 = vpop.permute.xlu0 %6065 }
0x26bd   : > { %9521 = vmatpush3.msra.mxu1 %v6066_v62  ;;  %v5166_v62 = vld [vmem:[#allocation40 + $0x8] sm:$0xff] }
0x26be   : > { %9536 = vmatprep.subr.mxu1 %v11808_v1 }
0x26c3   : > { %v10521_v15 = vpop.eup %10520 }
0x26c4   : > { %v6064_v45 = vmul.f32 %v10521_v15, %v10519_v57  ;;  %v5170_v57 = vld [vmem:[#allocation43] sm:$0xff]  ;;  %v5172_v15 = vld [vmem:[#allocation43 + $0x10] sm:$0xff] }
0x26c6   : > { %9523 = vmatmul.mubr.msk.f32.vlgmr.msra.gmra.mrb[50].mxu1 %vm2541_vm3, %v6064_v45 }
0x26c7   : > { %9537 = vmatpush3.xpose.msk.msra.mxu1 %vm2541_vm3, %v6234_v35  ;;  %9538 = vmatprep.mubr.msk.f32.mxu1 %vm11807_vm0, %v11808_v1  ;;  %v5173_v35 = vld [vmem:[#allocation43 + $0x18] sm:$0xff] }
0x26c8   : > { %9541 = vmatprep.subr.mxu1 %v11808_v1  ;;  %v9909_v45 = vpack.c.bf16 %v5173_v35, %v5172_v15 }
0x26ca   : > { %9539 = vmatmul.mubr.msk.f32.vlgmr.msra.gmra.mrb[52].mxu1 %vm2541_vm3, %v6232_v37  ;;  %v5167_v37 = vld [vmem:[#allocation40 + $0x10] sm:$0xff] }
0x26cb   : > { %9543 = vmatprep.mubr.msk.f32.mxu1 %vm11807_vm0, %v11808_v1 }
0x2799   : > { %v6137_v63 = vpop.f32.mrb[50].mxu1 }
0x279a   : > { %v9524_v3 = vpop.f32.mrb[51].mxu1 }
0x279d   : > { %v6305_v4 = vpop.f32.mrb[52].mxu1 }
0x279e   : > { %v6309_v5 = vmul.f32 0.35355338, %v6305_v4  ;;  %v9540_v6 = vpop.f32.mrb[53].mxu1  ;;  %v10549_v4 = vld [vmem:[%s12885_s1] sm:$0xff]  ;;  %s2190_s1 = sand.u32 1, %s11699_s28  }
0x279f   : > { %s8687_s6 = sshll.u32 %s2190_s1, 3  ;;  %s8068_s9 = scalar_lea.sflag [#allocation4], %s2190_s1 }
0x27a0   : > { %v6310_v7 = vadd.f32 %v13152_v21, %v6309_v5 }
0x27a2   : > { %v6311_v9 = vsel %vm2541_vm3, %v6310_v7, -inf }
0x27a3   : > { %6312 = vmax.xlane.f32.xlu0 %v6311_v9 }
0x27b9   : > { %6322 = vrot.lane.b32.xlu0 %v13147_v47, %s13707_s4 }
0x27bd   : > { %10428 = vrot.lane.b32.xlu0 %v13173_v11, %s13707_s4 }
0x27c1   : > { %10438 = vrot.lane.b32.xlu0 %v13179_v19, %s13707_s4 }
0x2830   : > { %v6313_v10 = vpop.xlane.xlu0 %6312 }
0x2831   : > { %v6314_v13 = vsub.f32 %v6310_v7, %v6313_v10  ;;  %v8867_v10 = vld [vmem:[#allocation37] ss:$0 sm:$0xff] }
0x2833   : > { %v6315_v14 = vmul.f32 1.442695, %v6314_v13 }
0x2834   : > { %v6323_v20 = vpop.permute.xlu0 %6322 }
0x2835   : > { %10522 = vpow2.f32 %v6315_v14  ;;  %9542 = vmatpush3.msra.mxu1 %v6323_v20  ;;  %v8868_v14 = vld [vmem:[#allocation38] ss:$0 sm:$0xff] }
0x2836   : > { %9888 = vmatprep.subr.bf16.mxu1 %v11806_v0 }
0x283f   : > { %v10523_v23 = vpop.eup %10522 }
0x2840   : > { %v6317_v24 = vsel %vm2541_vm3, %v10523_v23, 0.0 }
0x2841   : > { %6318 = vadd.xlane.f32.xlu1 %v6317_v24  ;;  %v8875_v24 = vld [vmem:[#allocation44] ss:$0 sm:$0xff] }
0x2852   : > { %10423 = vrot.lane.b32.xlu1 %v13173_v11, %s13706_s8  ;;  %v10429_v11 = vpop.permute.xlu0 %10428 }
0x2853   : > { %v10431_v32 = vunpack.i.h.bf16 %v10429_v11 }
0x2856   : > { %10433 = vrot.lane.b32.xlu1 %v13179_v19, %s13706_s8  ;;  %v10430_v19 = vunpack.i.l.bf16 %v10429_v11  ;;  %v10439_v36 = vpop.permute.xlu0 %10438  ;;  %v8869_v11 = vld [vmem:[#allocation41] ss:$0 sm:$0xff] }
0x2857   : > { %v10441_v12 = vunpack.i.h.bf16 %v10439_v36  ;;  %v10440_v22 = vunpack.i.l.bf16 %v10439_v36 }
0x2858   : > { %v9889_v33 = vpack.c.bf16 %v10431_v32, %v10430_v19 }
0x2859   : > { %v9893_v61 = vpack.c.bf16 %v10441_v12, %v10440_v22 }
0x28ce   : > { %v6319_v47 = vpop.xlane.xlu1 %6318 }
0x28cf   : > { %10524 = vrcp.f32 %v6319_v47 }
0x28d2   : > { %v10424_v21 = vpop.permute.xlu1 %10423 }
0x28d3   : > { %v10426_v25 = vunpack.i.h.bf16 %v10424_v21  ;;  %v10425_v26 = vunpack.i.l.bf16 %v10424_v21 }
0x28d5   : > { %v9881_v16 = vpack.c.bf16 %v10426_v25, %v10425_v26  ;;  %v5175_v26 = vld [vmem:[#allocation46] sm:$0xff] }
0x28d6   : > { %v10434_v27 = vpop.permute.xlu1 %10433 }
0x28d7   : > { %9883 = vmatpush3.bf16.xpose.msk.msra.mxu0 %vm12778_vm4, %v9881_v16  ;;  %v10436_v18 = vunpack.i.h.bf16 %v10434_v27  ;;  %v10435_v58 = vunpack.i.l.bf16 %v10434_v27  ;;  %v5176_v16 = vld [vmem:[#allocation46 + $0x8] sm:$0xff] }
0x28d8   : > { %9884 = vmatprep.subr.bf16.mxu0 %v11806_v0  ;;  %v9913_v27 = vpack.c.bf16 %v5176_v16, %v5175_v26 }
0x28d9   : > { %v10525_v28 = vpop.eup %10524  ;;  %v9885_v31 = vpack.c.bf16 %v10436_v18, %v10435_v58  ;;  %v5177_v18 = vld [vmem:[#allocation46 + $0x10] sm:$0xff]  ;;  %v5178_v58 = vld [vmem:[#allocation46 + $0x18] sm:$0xff] }
0x28da   : > { %v6321_v29 = vmul.f32 %v10525_v28, %v10523_v23  ;;  %v9917_v28 = vpack.c.bf16 %v5178_v58, %v5177_v18 }
0x28dc   : > { %9544 = vmatmul.mubr.msk.f32.vlgmr.msra.gmra.mrb[54].mxu1 %vm2541_vm3, %v6321_v29 }
0x28dd   : > { %9554 = vmatprep.mubr.msk.f32.mxu1 %vm11807_vm0, %v11808_v1  ;;  %9891 = vmatpush3.bf16.xpose.msk.msra.mxu1 %vm12778_vm4, %v9889_v33  ;;  %v8881_v33 = vld [vmem:[#allocation47] ss:$0 sm:$0xff] }
0x28de   : > { %9892 = vmatprep.subr.bf16.mxu1 %v11806_v0 }
0x28df   : > { %9887 = vmatpush3.bf16.xpose.msk.msra.mxu0 %vm12778_vm4, %v9885_v31 }
0x28e0   : > { %9896 = vmatprep.subr.bf16.mxu0 %v11806_v0 }
0x28e5   : > { %9895 = vmatpush3.bf16.xpose.msk.msra.mxu1 %vm12778_vm4, %v9893_v61 }
0x28e6   : > { %9534 = vmatmul.mubr.msk.f32.vlgmr.msra.gmra.mrb[34].mxu0 %vm2541_vm3, %v6137_v63  ;;  %9904 = vmatprep.subr.bf16.mxu1 %v11806_v0  ;;  %v5168_v63 = vld [vmem:[#allocation40 + $0x18] sm:$0xff] }
0x28e7   : > { %9565 = vmatprep.mubr.msk.f32.mxu0 %vm11807_vm0, %v11808_v1  ;;  %v9901_v3 = vpack.c.bf16 %v5168_v63, %v5167_v37  ;;  %v5181_v37 = vld [vmem:[#allocation49 + $0x8] sm:$0xff] }
0x29af   : > { %v6394_v38 = vpop.f32.mrb[54].mxu1 }
0x29b0   : > { %v9545_v39 = vpop.f32.mrb[55].mxu1  ;;  %9555 = vmatmul.mubr.msk.f32.vlgmr.msra.gmra.mrb[56].mxu1 %vm2541_vm3, %v6394_v38 }
0x29b1   : > { %9576 = vmatprep.mubr.msk.f32.mxu1 %vm11807_vm0, %v11808_v1 }
0x29b9   : > { %v6226_v40 = vpop.f32.mrb[34].mxu0 }
0x29ba   : > { %v6230_v42 = vadd.f32 %v6226_v40, %v13217_v43  ;;  %v9535_v44 = vpop.f32.mrb[35].mxu0  ;;  %v5171_v43 = vld [vmem:[#allocation43 + $0x8] sm:$0xff] }
0x29bb   : > { %v9905_v59 = vpack.c.bf16 %v5171_v43, %v5170_v57 }
0x29bd   : > { %9907 = vmatpush3.bf16.xpose.msk.msra.mxu1 %vm12663_vm2, %v9905_v59 }
0x29be   : > { %9908 = vmatprep.subr.bf16.mxu1 %v11806_v0 }
0x29c5   : > { %9911 = vmatpush3.bf16.xpose.msk.msra.mxu1 %vm12663_vm2, %v9909_v45  ;;  %v5180_v45 = vld [vmem:[#allocation49] sm:$0xff] }
0x29c6   : > { %9590 = vmatprep.subr.mxu1 %v11808_v1  ;;  %v13353_v63 = vpack.i.bf16 %v5181_v37, %v5180_v45 }
0x29cc   : > { %9577 = vmatmul.mubr.msk.f32.vlgmr.msra.gmra.mrb[58].mxu1 %vm2279_vm1, %v10549_v4 }
0x29cd   : > { %9592 = vmatprep.mubr.msk.f32.mxu1 %vm11807_vm0, %v11808_v1 }
0x2a83   : > { %v6483_v30 = vpop.f32.mrb[56].mxu1 }
0x2a84   : > { %v6487_v48 = vadd.f32 %v6483_v30, %v6230_v42  ;;  %v9556_v49 = vpop.f32.mrb[57].mxu1  ;;  %v13332_v42 = vld [vmem:[%s12937_s3] sm:$0xff]  ;;  %s13716_s3 = sld [smem:[#allocation127_spill]] }
0x2a85   : > { %v13336_v30 = vld [vmem:[#allocation49 + $0x10] sm:$0xff] }
0x2a86   : > { %v6494_v50 = vadd.f32 %v8866_v46, %v6487_v48  ;;  %v5183_v48 = vld [vmem:[#allocation49 + $0x18] sm:$0xff] }
0x2a87   : > { %v13341_v49 = vpack.i.bf16 %v5183_v48, %v13336_v30 }
0x2a88   : > { %v6495_v51 = vadd.f32 %v6494_v50, %v13113_v34  ;;  %v9897_v34 = vpack.c.bf16 %v5166_v62, %v5165_v60 }
0x2a8a   : > { %v6496_v52 = vsel %vm2279_vm1, %v6495_v51, 0.0  ;;  %9899 = vmatpush3.bf16.xpose.msk.msra.mxu0 %vm12663_vm2, %v9897_v34 }
0x2a8b   : > { %6497 = vadd.xlane.f32.xlu1 %v6496_v52  ;;  %9900 = vmatprep.subr.bf16.mxu0 %v11806_v0 }
0x2a92   : > { %9903 = vmatpush3.bf16.xpose.msk.msra.mxu0 %vm12663_vm2, %v9901_v3 }
0x2a93   : > { %9912 = vmatprep.subr.bf16.mxu0 %v11806_v0 }
0x2a9f   : > { %v6698_v47 = vpop.f32.mrb[58].mxu1 }
0x2aa0   : > { %v13298_v21 = vadd.f32 %v8875_v24, %v6698_v47  ;;  %v9578_v25 = vpop.f32.mrb[59].mxu1 }
0x2aa1   : > { %v9929_v25 = vpack.c.bf16 %v5181_v37, %v5180_v45 }
0x2aa2   : > { %9591 = vmatpush3.xpose.msk.msra.mxu1 %vm2541_vm3, %v13298_v21 }
0x2aa3   : > { %9595 = vmatprep.subr.mxu1 %v11808_v1 }
0x2b18   : > { %v6498_v53 = vpop.xlane.xlu1 %6497 }
0x2b19   : > { %v6499_v54 = vmul.f32 0.03125, %v6498_v53 }
0x2b1b   : > { %v6500_v55 = vsub.f32 %v6495_v51, %v6499_v54 }
0x2b1d   : > { %v6501_v17 = vmul.f32 %v6500_v55, %v6500_v55 }
0x2b1f   : > { %v6502_v56 = vsel %vm2279_vm1, %v6501_v17, 0.0 }
0x2b20   : > { %6503 = vadd.xlane.f32.xlu0 %v6502_v56 }
0x2b36   : > { %6954 = vrot.lane.b32.xlu0 %v13298_v21, %s13704_s5 }
0x2bad   : > { %v6504_v5 = vpop.xlane.xlu0 %6503 }
0x2bae   : > { %v6505_v6 = vmul.f32 0.03125, %v6504_v5 }
0x2bb0   : > { %v6506_v7 = vadd.f32 1e-05, %v6505_v6 }
0x2bb1   : > { %v6955_v29 = vpop.permute.xlu0 %6954 }
0x2bb2   : > { %10526 = vrsqrt.f32 %v6506_v7 }
0x2bbc   : > { %v10527_v9 = vpop.eup %10526 }
0x2bbd   : > { %v6508_v13 = vmul.f32 %v10527_v9, %v6500_v55 }
0x2bbf   : > { %v6515_v20 = vmul.f32 %v8867_v10, %v6508_v13 }
0x2bc1   : > { %v13292_v23 = vadd.f32 %v8868_v14, %v6515_v20 }
0x2bc3   : > { %9566 = vmatmul.mubr.msk.f32.vlgmr.msra.gmra.mrb[36].mxu0 %vm2279_vm1, %v13292_v23 }
0x2bc4   : > { %9587 = vmatprep.mubr.msk.f32.mxu0 %vm11807_vm0, %v11808_v1  ;;  %9915 = vmatpush3.bf16.xpose.msk.msra.mxu0 %vm12663_vm2, %v9913_v27  ;;  %v9933_v27 = vpack.c.bf16 %v5183_v48, %v13336_v30 }
0x2bc5   : > { %9916 = vmatprep.subr.bf16.mxu0 %v11806_v0 }
0x2bcc   : > { %9919 = vmatpush3.bf16.xpose.msk.msra.mxu0 %vm12663_vm2, %v9917_v28 }
0x2bcd   : > { %9600 = vmatprep.subr.mxu0 %v11808_v1 }
0x2bd3   : > { %9588 = vmatmul.mubr.msk.f32.vlgmr.msra.gmra.mrb[38].mxu0 %vm2279_vm1, %v10549_v4 }
0x2bd4   : > { %9602 = vmatprep.mubr.msk.f32.mxu0 %vm11807_vm0, %v11808_v1  ;;  %9601 = vmatpush3.xpose.msk.msra.mxu0 %vm2541_vm3, %v6955_v29 }
0x2bd5   : > { %9920 = vmatprep.subr.bf16.mxu0 %v11806_v0 }
0x2c96   : > { %v6610_v31 = vpop.f32.mrb[36].mxu0 }
0x2c97   : > { %v13316_v32 = vadd.f32 %v8869_v11, %v6610_v31  ;;  %v9567_v19 = vpop.f32.mrb[37].mxu0 }
0x2c99   : > { %6952 = vrot.lane.b32.xlu1 %v13316_v32, %s13704_s5  ;;  %9593 = vmatmul.mubr.msk.f32.vlgmr.msra.gmra.mrb[60].mxu1 %vm2541_vm3, %v13316_v32 }
0x2c9a   : > { %9597 = vmatprep.mubr.msk.f32.mxu1 %vm11807_vm0, %v11808_v1 }
0x2ca6   : > { %v6786_v36 = vpop.f32.mrb[38].mxu0 }
0x2ca7   : > { %v13324_v12 = vadd.f32 %v8881_v33, %v6786_v36  ;;  %v9589_v22 = vpop.f32.mrb[39].mxu0 }
0x2ca9   : > { %9596 = vmatpush3.msra.mxu1 %v13324_v12 }
0x2caa   : > { %9605 = vmatprep.subr.mxu1 %v11808_v1 }
0x2d0b   : > { %v6953_v61 = vpop.permute.xlu1 %6952 }
0x2d0c   : > { %9603 = vmatmul.mubr.msk.f32.vlgmr.msra.gmra.mrb[40].mxu0 %vm2541_vm3, %v6953_v61 }
0x2d0d   : > { %9618 = vmatprep.mubr.msk.f32.mxu0 %vm11807_vm0, %v11808_v1 }
0x2d6c   : > { %v6862_v38 = vpop.f32.mrb[60].mxu1 }
0x2d6d   : > { %v6866_v39 = vmul.f32 0.35355338, %v6862_v38  ;;  %v9594_v40 = vpop.f32.mrb[61].mxu1 }
0x2d6f   : > { %v6867_v44 = vadd.f32 %v13332_v42, %v6866_v39 }
0x2d71   : > { %v6868_v46 = vsel %vm2541_vm3, %v6867_v44, -inf }
0x2d72   : > { %6869 = vmax.xlane.f32.xlu1 %v6868_v46 }
0x2d83   : > { %7044 = vrot.lane.b32.xlu1 %v13324_v12, %s13704_s5 }
0x2d87   : > { %10448 = vrot.lane.b32.xlu1 %v13341_v49, %s13704_s5 }
0x2d8b   : > { %7296 = vrot.lane.b32.xlu1 %v13298_v21, %s13706_s8 }
0x2d8f   : > { %7294 = vrot.lane.b32.xlu1 %v13316_v32, %s13706_s8 }
0x2ddf   : > { %v7026_v50 = vpop.f32.mrb[40].mxu0 }
0x2de0   : > { %v7030_v51 = vmul.f32 0.35355338, %v7026_v50  ;;  %v9604_v52 = vpop.f32.mrb[41].mxu0 }
0x2de2   : > { %v7031_v53 = vadd.f32 %v13332_v42, %v7030_v51 }
0x2de4   : > { %v7032_v54 = vsel %vm2541_vm3, %v7031_v53, -inf }
0x2de5   : > { %7033 = vmax.xlane.f32.xlu0 %v7032_v54 }
0x2dff   : > { %v6870_v55 = vpop.xlane.xlu1 %6869 }
0x2e00   : > { %v6871_v17 = vsub.f32 %v6867_v44, %v6870_v55 }
0x2e02   : > { %v6872_v56 = vmul.f32 1.442695, %v6871_v17 }
0x2e03   : > { %v7045_v5 = vpop.permute.xlu1 %7044 }
0x2e04   : > { %10528 = vpow2.f32 %v6872_v56 }
0x2e07   : > { %v10449_v14 = vpop.permute.xlu1 %10448 }
0x2e08   : > { %v10451_v20 = vunpack.i.h.bf16 %v10449_v14  ;;  %v10450_v24 = vunpack.i.l.bf16 %v10449_v14 }
0x2e0a   : > { %v9925_v16 = vpack.c.bf16 %v10451_v20, %v10450_v24 }
0x2e0b   : > { %v7297_v28 = vpop.permute.xlu1 %7296 }
0x2e0e   : > { %v10529_v57 = vpop.eup %10528 }
0x2e0f   : > { %v6874_v43 = vsel %vm2541_vm3, %v10529_v57, 0.0  ;;  %v7295_v31 = vpop.permute.xlu1 %7294 }
0x2e10   : > { %6875 = vadd.xlane.f32.xlu0 %v6874_v43 }
0x2e72   : > { %v7034_v59 = vpop.xlane.xlu0 %7033 }
0x2e73   : > { %v7035_v60 = vsub.f32 %v7031_v53, %v7034_v59 }
0x2e75   : > { %v7036_v62 = vmul.f32 1.442695, %v7035_v60 }
0x2e77   : > { %10530 = vpow2.f32 %v7036_v62 }
0x2e81   : > { %v10531_v34 = vpop.eup %10530 }
0x2e82   : > { %v7038_v15 = vsel %vm2541_vm3, %v10531_v34, 0.0 }
0x2e83   : > { %7039 = vadd.xlane.f32.xlu0 %v7038_v15 }
0x2e99   : > { %10443 = vrot.lane.b32.xlu0 %v13353_v63, %s13704_s5  ;;  %s8941_s5 = sshll.u32 %s12124_s7, 7  ;;  %s11812_s7 = smov [#allocation62]  }
0x2e9d   : > { %v6876_v35 = vpop.xlane.xlu0 %6875 }
0x2e9e   : > { %10532 = vrcp.f32 %v6876_v35 }
0x2ea8   : > { %v10533_v3 = vpop.eup %10532 }
0x2ea9   : > { %v6878_v4 = vmul.f32 %v10533_v3, %v10529_v57 }
0x2eab   : > { %9598 = vmatmul.mubr.msk.f32.vlgmr.msra.gmra.mrb[62].mxu1 %vm2541_vm3, %v6878_v4 }
0x2eac   : > { %9606 = vmatpush3.msra.mxu1 %v7045_v5  ;;  %9607 = vmatprep.mubr.msk.f32.mxu1 %vm11807_vm0, %v11808_v1 }
0x2ead   : > { %9928 = vmatprep.subr.bf16.mxu1 %v11806_v0 }
0x2f10   : > { %v7040_v6 = vpop.xlane.xlu0 %7039 }
0x2f11   : > { %10534 = vrcp.f32 %v7040_v6 }
0x2f14   : > { %v10444_v7 = vpop.permute.xlu0 %10443 }
0x2f15   : > { %v10446_v9 = vunpack.i.h.bf16 %v10444_v7  ;;  %v10445_v10 = vunpack.i.l.bf16 %v10444_v7 }
0x2f17   : > { %v9921_v13 = vpack.c.bf16 %v10446_v9, %v10445_v10 }
0x2f19   : > { %9923 = vmatpush3.bf16.xpose.msk.msra.mxu0 %vm12778_vm4, %v9921_v13 }
0x2f1a   : > { %9924 = vmatprep.subr.bf16.mxu0 %v11806_v0 }
0x2f1b   : > { %v10535_v47 = vpop.eup %10534 }
0x2f1c   : > { %v7042_v26 = vmul.f32 %v10535_v47, %v10531_v34 }
0x2f1e   : > { %9608 = vmatmul.mubr.msk.f32.vlgmr.msra.gmra.mrb[64].mxu1 %vm2541_vm3, %v7042_v26 }
0x2f1f   : > { %9931 = vmatpush3.bf16.xpose.msk.msra.mxu1 %vm12778_vm4, %v9929_v25  ;;  %9629 = vmatprep.mubr.msk.f32.mxu1 %vm11807_vm0, %v11808_v1 }
0x2f20   : > { %9932 = vmatprep.subr.bf16.mxu1 %v11806_v0 }
0x2f21   : > { %9927 = vmatpush3.bf16.xpose.msk.msra.mxu0 %vm12778_vm4, %v9925_v16 }
0x2f22   : > { %9632 = vmatprep.subr.mxu0 %v11808_v1 }
0x2f27   : > { %9935 = vmatpush3.bf16.xpose.msk.msra.mxu1 %vm12778_vm4, %v9933_v27 }
0x2f28   : > { %9637 = vmatprep.subr.mxu1 %v11808_v1 }
0x2f7e   : > { %v6948_v18 = vpop.f32.mrb[62].mxu1 }
0x2f7f   : > { %v9599_v58 = vpop.f32.mrb[63].mxu1  ;;  %9630 = vmatmul.mubr.msk.f32.vlgmr.msra.gmra.mrb[66].mxu1 %vm2541_vm3, %v6948_v18 }
0x2f80   : > { %9639 = vmatprep.mubr.msk.f32.mxu1 %vm11807_vm0, %v11808_v1 }
0x2ff1   : > { %v7116_v29 = vpop.f32.mrb[64].mxu1 }
0x2ff2   : > { %v9609_v11 = vpop.f32.mrb[65].mxu1  ;;  %9619 = vmatmul.mubr.msk.f32.vlgmr.msra.gmra.mrb[42].mxu0 %vm2541_vm3, %v7116_v29 }
0x2ff3   : > { %9633 = vmatpush3.xpose.msk.msra.mxu0 %vm2541_vm3, %v7297_v28  ;;  %9634 = vmatprep.mubr.msk.f32.mxu0 %vm11807_vm0, %v11808_v1 }
0x2ff4   : > { %9936 = vmatprep.subr.bf16.mxu0 %v11806_v0 }
0x2ff6   : > { %9635 = vmatmul.mubr.msk.f32.vlgmr.msra.gmra.mrb[44].mxu0 %vm2541_vm3, %v7295_v31 }
0x2ff7   : > { %9650 = vmatprep.mubr.msk.f32.mxu0 %vm11807_vm0, %v11808_v1 }
0x3052   : > { %v7290_v19 = vpop.f32.mrb[66].mxu1 }
0x3053   : > { %v9631_v33 = vpop.f32.mrb[67].mxu1 }
0x30c5   : > { %v7209_v36 = vpop.f32.mrb[42].mxu0 }
0x30c6   : > { %v13388_v22 = vadd.f32 %v7290_v19, %v7209_v36  ;;  %v9620_v61 = vpop.f32.mrb[43].mxu0  ;;  %v8919_v19 = vld [vmem:[#allocation50] ss:$0 sm:$0xff] }
0x30c9   : > { %v7368_v38 = vpop.f32.mrb[44].mxu0 }
0x30ca   : > { %v7372_v39 = vmul.f32 0.35355338, %v7368_v38  ;;  %v9636_v40 = vpop.f32.mrb[45].mxu0 }
0x30cb   : > { %v5187_v40 = vld [vmem:[%s13716_s3] sm:$0xff] }
0x30cc   : > { %v7373_v44 = vadd.f32 %v13332_v42, %v7372_v39 }
0x30ce   : > { %v7374_v46 = vsel %vm2541_vm3, %v7373_v44, -inf }
0x30cf   : > { %7375 = vmax.xlane.f32.xlu0 %v7374_v46  ;;  %v5190_v46 = vld [vmem:[%s13716_s3 + $0x18] sm:$0xff] }
0x30e5   : > { %7385 = vrot.lane.b32.xlu0 %v13324_v12, %s13706_s8 }
0x30e9   : > { %7551 = vrot.lane.b32.xlu0 %v13316_v32, %s13707_s4 }
0x315c   : > { %v7376_v30 = vpop.xlane.xlu0 %7375 }
0x315d   : > { %v7377_v48 = vsub.f32 %v7373_v44, %v7376_v30  ;;  %v5188_v44 = vld [vmem:[%s13716_s3 + $0x8] sm:$0xff] }
0x315f   : > { %v7378_v50 = vmul.f32 1.442695, %v7377_v48 }
0x3160   : > { %v7386_v51 = vpop.permute.xlu0 %7385 }
0x3161   : > { %10536 = vpow2.f32 %v7378_v50  ;;  %9638 = vmatpush3.msra.mxu1 %v7386_v51 }
0x3162   : > { %9653 = vmatprep.subr.mxu1 %v11808_v1 }
0x3164   : > { %v7552_v56 = vpop.permute.xlu0 %7551 }
0x316b   : > { %v10537_v52 = vpop.eup %10536 }
0x316c   : > { %v7380_v53 = vsel %vm2541_vm3, %v10537_v52, 0.0 }
0x316d   : > { %7381 = vadd.xlane.f32.xlu1 %v7380_v53  ;;  %v5191_v53 = vld [vmem:[%s13716_s3 + $0x20] sm:$0xff] }
0x317e   : > { %7553 = vrot.lane.b32.xlu1 %v13298_v21, %s13707_s4 }
0x31fa   : > { %v7382_v54 = vpop.xlane.xlu1 %7381 }
0x31fb   : > { %10538 = vrcp.f32 %v7382_v54  ;;  %v5192_v54 = vld [vmem:[%s13716_s3 + $0x28] sm:$0xff] }
0x31fe   : > { %v7554_v32 = vpop.permute.xlu1 %7553 }
0x3205   : > { %v10539_v55 = vpop.eup %10538 }
0x3206   : > { %v7384_v17 = vmul.f32 %v10539_v55, %v10537_v52  ;;  %v9961_v55 = vpack.c.bf16 %v5192_v54, %v5191_v53 }
0x3208   : > { %9640 = vmatmul.mubr.msk.f32.vlgmr.msra.gmra.mrb[68].mxu1 %vm2541_vm3, %v7384_v17  ;;  %v5193_v17 = vld [vmem:[%s13716_s3 + $0x30] sm:$0xff] }
0x3209   : > { %9654 = vmatpush3.xpose.msk.msra.mxu1 %vm2541_vm3, %v7554_v32  ;;  %9655 = vmatprep.mubr.msk.f32.mxu1 %vm11807_vm0, %v11808_v1  ;;  %v5194_v32 = vld [vmem:[%s13716_s3 + $0x38] sm:$0xff] }
0x320a   : > { %9658 = vmatprep.subr.mxu1 %v11808_v1 }
0x320c   : > { %9656 = vmatmul.mubr.msk.f32.vlgmr.msra.gmra.mrb[70].mxu1 %vm2541_vm3, %v7552_v56  ;;  %v9965_v56 = vpack.c.bf16 %v5194_v32, %v5193_v17 }
0x320d   : > { %9660 = vmatprep.mubr.msk.f32.mxu1 %vm11807_vm0, %v11808_v1 }
0x32db   : > { %v7457_v21 = vpop.f32.mrb[68].mxu1 }
0x32dc   : > { %v9641_v57 = vpop.f32.mrb[69].mxu1 }
0x32dd   : > { %v5197_v57 = vld [vmem:[#allocation56 + $0x8] sm:$0xff] }
0x32df   : > { %v7625_v43 = vpop.f32.mrb[70].mxu1 }
0x32e0   : > { %v7629_v59 = vmul.f32 0.35355338, %v7625_v43  ;;  %v9657_v60 = vpop.f32.mrb[71].mxu1 }
0x32e1   : > { %v5199_v60 = vld [vmem:[#allocation56 + $0x18] sm:$0xff] }
0x32e2   : > { %v7630_v62 = vadd.f32 %v13332_v42, %v7629_v59  ;;  %v5198_v59 = vld [vmem:[#allocation56 + $0x10] sm:$0xff] }
0x32e4   : > { %v7631_v34 = vsel %vm2541_vm3, %v7630_v62, -inf }
0x32e5   : > { %7632 = vmax.xlane.f32.xlu1 %v7631_v34 }
0x32f6   : > { %10453 = vrot.lane.b32.xlu1 %v13353_v63, %s13706_s8 }
0x32fa   : > { %10458 = vrot.lane.b32.xlu1 %v13353_v63, %s13707_s4 }
0x32fe   : > { %10468 = vrot.lane.b32.xlu1 %v13341_v49, %s13707_s4 }
0x3372   : > { %v7633_v15 = vpop.xlane.xlu1 %7632 }
0x3373   : > { %v7634_v35 = vsub.f32 %v7630_v62, %v7633_v15  ;;  %v9973_v62 = vpack.c.bf16 %v5199_v60, %v5198_v59 }
0x3375   : > { %v7635_v45 = vmul.f32 1.442695, %v7634_v35 }
0x3376   : > { %v10454_v4 = vpop.permute.xlu1 %10453 }
0x3377   : > { %10540 = vpow2.f32 %v7635_v45  ;;  %v10456_v5 = vunpack.i.h.bf16 %v10454_v4  ;;  %v10455_v6 = vunpack.i.l.bf16 %v10454_v4  ;;  %v8920_v45 = vld [vmem:[#allocation52] ss:$0 sm:$0xff] }
0x3379   : > { %v9937_v7 = vpack.c.bf16 %v10456_v5, %v10455_v6  ;;  %v8922_v6 = vld [vmem:[#allocation55] ss:$0 sm:$0xff] }
0x337a   : > { %v10459_v13 = vpop.permute.xlu1 %10458 }
0x337b   : > { %9939 = vmatpush3.bf16.xpose.msk.msra.mxu0 %vm12778_vm4, %v9937_v7  ;;  %v10460_v24 = vunpack.i.l.bf16 %v10459_v13 }
0x337c   : > { %9940 = vmatprep.subr.bf16.mxu0 %v11806_v0 }
0x337e   : > { %v10469_v63 = vpop.permute.xlu1 %10468 }
0x337f   : > { %v10470_v27 = vunpack.i.l.bf16 %v10469_v63 }
0x3381   : > { %v10541_v37 = vpop.eup %10540 }
0x3382   : > { %v7637_v3 = vsel %vm2541_vm3, %v10541_v37, 0.0 }
0x3383   : > { %7638 = vadd.xlane.f32.xlu0 %v7637_v3  ;;  %v8921_v3 = vld [vmem:[#allocation53] ss:$0 sm:$0xff] }
0x3399   : > { %7642 = vrot.lane.b32.xlu0 %v13324_v12, %s13707_s4  ;;  %v10461_v12 = vunpack.i.h.bf16 %v10459_v13 }
0x339b   : > { %v9945_v26 = vpack.c.bf16 %v10461_v12, %v10460_v24 }
0x339d   : > { %10463 = vrot.lane.b32.xlu0 %v13341_v49, %s13706_s8  ;;  %v10471_v49 = vunpack.i.h.bf16 %v10469_v63  ;;  %s2192_s8 = scalar_lea.vmem [#allocation62], %s8687_s6  ;;  %s11569_s6 = sshll.u32 %s11812_s7, 4  ;;  %s11570_s6 = int_to_ptr.vmem [resolvable:$false] %s11569_s6 }
0x339e   : > { %s8081_s4 = sshll.u32 %s2192_s8, 4  ;;  %s11571_s11 = scalar_lea.vmem %s11570_s6, 256  ;;  %s13480_s4 = int_to_ptr.vmem [resolvable:$true] %s8081_s4 }
0x339f   : > { %v9949_v18 = vpack.c.bf16 %v10471_v49, %v10470_v27  ;;  %s11565_s10 = scalar_lea.vmem %s13480_s4, 128  ;;  %p11572_p1 = scmp.lt.s32.totalorder %s13480_s4, %s11570_s6 }
0x33a0   : > { %p11566_p10 = scmp.ne.s32.totalorder %s13480_s4, %s11565_s10  ;;  %p11573_p5 = scmp.lt.s32.totalorder %s11571_s11, %s11565_s10 }
0x33a2   : > { %p11567_p13 = pnand %p11566_p10, %p13717_p12  ;;  %p11574_p6 = por %p11573_p5, %p11572_p1 }
0x33a4   : > { %p11568_p0 = pneg %p11567_p13 }
0x33a6   : > { %p11575_p2 = pnand %p11574_p6, %p11568_p0 }
0x3410   : > { %v7639_v42 = vpop.xlane.xlu0 %7638 }
0x3411   : > { %10542 = vrcp.f32 %v7639_v42 }
0x3414   : > { %v7643_v9 = vpop.permute.xlu0 %7642 }
0x3415   : > { %9659 = vmatpush3.msra.mxu1 %v7643_v9 }
0x3416   : > { %9944 = vmatprep.subr.bf16.mxu1 %v11806_v0 }
0x3418   : > { %v10464_v10 = vpop.permute.xlu0 %10463 }
0x3419   : > { %v10466_v14 = vunpack.i.h.bf16 %v10464_v10  ;;  %v10465_v20 = vunpack.i.l.bf16 %v10464_v10 }
0x341b   : > { %v10543_v47 = vpop.eup %10542  ;;  %v9941_v25 = vpack.c.bf16 %v10466_v14, %v10465_v20 }
0x341c   : > { %v7641_v16 = vmul.f32 %v10543_v47, %v10541_v37 }
0x341d   : > { %9943 = vmatpush3.bf16.xpose.msk.msra.mxu0 %vm12778_vm4, %v9941_v25 }
0x341e   : > { %9661 = vmatmul.mubr.msk.f32.vlgmr.msra.gmra.mrb[72].mxu1 %vm2541_vm3, %v7641_v16  ;;  %9952 = vmatprep.subr.bf16.mxu0 %v11806_v0 }
0x341f   : > { %9947 = vmatpush3.bf16.xpose.msk.msra.mxu1 %vm12778_vm4, %v9945_v26  ;;  %9671 = vmatprep.mubr.msk.f32.mxu1 %vm11807_vm0, %v11808_v1 }
0x3420   : > { %9948 = vmatprep.subr.bf16.mxu1 %v11806_v0 }
0x3424   : > { %9651 = vmatmul.mubr.msk.f32.vlgmr.msra.gmra.mrb[46].mxu0 %vm2541_vm3, %v7457_v21  ;;  %v5196_v21 = vld [vmem:[#allocation56] sm:$0xff] }
0x3425   : > { %9690 = vmatprep.mubr.msk.f32.mxu0 %vm11807_vm0, %v11808_v1  ;;  %v9969_v43 = vpack.c.bf16 %v5197_v57, %v5196_v21 }
0x3427   : > { %9951 = vmatpush3.bf16.xpose.msk.msra.mxu1 %vm12778_vm4, %v9949_v18 }
0x3428   : > { %9968 = vmatprep.subr.bf16.mxu1 %v11806_v0 }
0x34f1   : > { %v7714_v58 = vpop.f32.mrb[72].mxu1 }
0x34f2   : > { %v9662_v28 = vpop.f32.mrb[73].mxu1  ;;  %9672 = vmatmul.mubr.msk.f32.vlgmr.msra.gmra.mrb[74].mxu1 %vm2541_vm3, %v7714_v58  ;;  %v8938_v58 = vld [vmem:[#allocation59] ss:$0 sm:$0xff] }
0x34f3   : > { %9701 = vmatprep.mubr.msk.f32.mxu1 %vm11807_vm0, %v11808_v1  ;;  %v9953_v1 = vpack.c.bf16 %v5188_v44, %v5187_v40  ;;  %9971 = vmatpush3.bf16.xpose.msk.msra.mxu1 %vm13073_vm6, %v9969_v43 }
0x34f4   : > { %9972 = vmatprep.subr.bf16.mxu1 %v11806_v0 }
0x34f5   : > { %9955 = vmatpush3.bf16.xpose.msk.msra.mxu0 %vm12663_vm2, %v9953_v1 }
0x34f6   : > { %9956 = vmatprep.subr.bf16.mxu0 %v11806_v0 }
0x34f7   : > { %v7546_v29 = vpop.f32.mrb[46].mxu0 }
0x34f8   : > { %v7550_v11 = vadd.f32 %v7546_v29, %v13388_v22  ;;  %v9652_v31 = vpop.f32.mrb[47].mxu0  ;;  %v5189_v22 = vld [vmem:[%s13716_s3 + $0x10] sm:$0xff]  ;;  %v8939_v29 = vld [vmem:[#allocation61] ss:$0 sm:$0xff]  ;;  %s13478_s3 = scalar_lea.hbm %s12101_s12, %s8941_s5 }
0x34f9   : > { %v9957_v30 = vpack.c.bf16 %v5190_v46, %v5189_v22 }
0x34fb   : > { %9975 = vmatpush3.bf16.xpose.msk.msra.mxu1 %vm13073_vm6, %v9973_v62 }
0x34fd   : > { %9959 = vmatpush3.bf16.xpose.msk.msra.mxu0 %vm12663_vm2, %v9957_v30 }
0x34fe   : > { %9960 = vmatprep.subr.bf16.mxu0 %v11806_v0 }
0x3505   : > { %9963 = vmatpush3.bf16.xpose.msk.msra.mxu0 %vm12663_vm2, %v9961_v55 }
0x3506   : > { %9964 = vmatprep.subr.bf16.mxu0 %v11806_v0 }
0x350d   : > { %9967 = vmatpush3.bf16.xpose.msk.msra.mxu0 %vm12663_vm2, %v9965_v56 }
0x35c5   : > { %v7803_v8 = vpop.f32.mrb[74].mxu1 }
0x35c6   : > { %v7807_v33 = vadd.f32 %v7803_v8, %v7550_v11  ;;  %v9673_v36 = vpop.f32.mrb[75].mxu1 }
0x35c8   : > { %v7814_v61 = vadd.f32 %v8919_v19, %v7807_v33 }
0x35ca   : > { %v7815_v38 = vadd.f32 %v7814_v61, %v13292_v23 }
0x35cc   : > { %v7816_v39 = vsel %vm2279_vm1, %v7815_v38, 0.0 }
0x35cd   : > { %7817 = vadd.xlane.f32.xlu0 %v7816_v39 }
0x365a   : > { %v7818_v23 = vpop.xlane.xlu0 %7817 }
0x365b   : > { %v7819_v48 = vmul.f32 0.03125, %v7818_v23 }
0x365d   : > { %v7820_v50 = vsub.f32 %v7815_v38, %v7819_v48 }
0x365f   : > { %v7821_v51 = vmul.f32 %v7820_v50, %v7820_v50 }
0x3661   : > { %v7822_v52 = vsel %vm2279_vm1, %v7821_v51, 0.0 }
0x3662   : > { %7823 = vadd.xlane.f32.xlu1 %v7822_v52 }
0x36ef   : > { %v7824_v34 = vpop.xlane.xlu1 %7823 }
0x36f0   : > { %v7825_v15 = vmul.f32 0.03125, %v7824_v34 }
0x36f2   : > { %v7826_v35 = vadd.f32 1e-05, %v7825_v15 }
0x36f4   : > { %10544 = vrsqrt.f32 %v7826_v35 }
0x36fe   : > { %v10545_v2 = vpop.eup %10544 }
0x36ff   : > { %v7828_v37 = vmul.f32 %v10545_v2, %v7820_v50 }
0x3701   : > { %v7835_v4 = vmul.f32 %v8920_v45, %v7828_v37 }
0x3703   : > { %v7842_v5 = vadd.f32 %v8921_v3, %v7835_v4 }
0x3705   : > { %9691 = vmatmul.mubr.msk.f32.vlgmr.msra.gmra.mrb[48].mxu0 %vm2279_vm1, %v7842_v5 }
0x37d8   : > { %v7942_v0 = vpop.f32.mrb[48].mxu0 }
0x37d9   : > { %v7943_v7 = vadd.f32 %v8922_v6, %v7942_v0  ;;  %v9692_v42 = vpop.f32.mrb[49].mxu0 }
0x37db   : > { %v7946_v9 = vmax.f32 %v7943_v7, 0.0 }
0x37dd   : > { %9702 = vmatmul.mubr.msk.f32.vlgmr.msra.gmra.mrb[76].mxu1 %vm5029_vm5, %v7946_v9 }
0x38b0   : > { %v8034_v10 = vpop.f32.mrb[76].mxu1 }
0x38b1   : > { %v8035_v13 = vadd.f32 %v8932_v41, %v8034_v10  ;;  %v9703_v14 = vpop.f32.mrb[77].mxu1 }
0x38b3   : > { %v8038_v20 = vadd.f32 %v8035_v13, %v7842_v5 }
0x38b5   : > { %v8039_v12 = vsel %vm2279_vm1, %v8038_v20, 0.0 }
0x38b6   : > { %8040 = vadd.xlane.f32.xlu0 %v8039_v12 }
0x3943   : > { %v8041_v24 = vpop.xlane.xlu0 %8040 }
0x3944   : > { %v8042_v47 = vmul.f32 0.03125, %v8041_v24 }
0x3946   : > { %v8043_v25 = vsub.f32 %v8038_v20, %v8042_v47 }
0x3948   : > { %v8044_v26 = vmul.f32 %v8043_v25, %v8043_v25 }
0x394a   : > { %v8045_v16 = vsel %vm2279_vm1, %v8044_v26, 0.0 }
0x394b   : > { %8046 = vadd.xlane.f32.xlu0 %v8045_v16 }
0x39d8   : > { %v8047_v63 = vpop.xlane.xlu0 %8046 }
0x39d9   : > { %v8048_v49 = vmul.f32 0.03125, %v8047_v63 }
0x39db   : > { %v8049_v27 = vadd.f32 1e-05, %v8048_v49 }
0x39dd   : > { %10546 = vrsqrt.f32 %v8049_v27 }
0x39e7   : > { %v10547_v18 = vpop.eup %10546 }
0x39e8   : > { %v8051_v28 = vmul.f32 %v10547_v18, %v8043_v25 }
0x39ea   : > { %v8058_v11 = vmul.f32 %v8938_v58, %v8051_v28 }
0x39ec   : > { %v8065_v31 = vadd.f32 %v8939_v29, %v8058_v11 }
0x39ee   : > { %8066 = vst.msk [vmem:[%s2192_s8] sm:$0xff] %vm2279_vm1, %v8065_v31 }
0x39ef   : > { %11578 = shalt.err (!%p11575_p2)
}
0x39f0   : > { %s11579_s1 = scalar_lea.hbm %s13478_s3, 128  ;;  %s11583_s5 = scalar_lea.hbm %s12101_s12, 256 }
0x39f1   : > { %p11580_p3 = scmp.ne.s32.totalorder %s13478_s3, %s11579_s1  ;;  %p11584_p8 = scmp.lt.u32.totalorder %s13478_s3, %s12101_s12 }
0x39f2   : > { %p11585_p11 = scmp.lt.u32.totalorder %s11583_s5, %s11579_s1  ;;  %p11587_p10 = scmp.lt.u32.totalorder %s11579_s1, %s13478_s3 }
0x39f3   : > { %p11581_p4 = pnand %p11580_p3, %p13717_p12 }
0x39f4   : > { %p11586_p9 = por %p11585_p11, %p11584_p8 }
0x39f5   : > { %p11582_p7 = pneg %p11581_p4 }
0x39f6   : > { %p11588_p13 = por %p11587_p10, %p11586_p9 }
0x39f8   : > { %p11589_p0 = pnand %p11588_p13, %p11582_p7 }
0x39fa   : > { %11592 = shalt.err (!%p11589_p0)
}
0x39fb   : > { %10132 = dma.vmem_to_hbm [thread:$0]  (%p13717_p12), %s13480_s4, 128, %s13478_s3, %s8068_s9  }
0x39fc PF: > { %s13718_s10 = sld [smem:[#allocation134_spill]]  ;;  %p10216_p1 = scmp.ge.s32.totalorder %s11707_s2, 2 }
0x39fd   : > { %s8093_s11 = sand.u32 1, %s11695_s0  }
0x39fe   : > { %s8094_s8 = scalar_lea.sflag [#allocation4], %s8093_s11 }
0x3a02   : > { %p13719_p5 = scmp.ne.s32.totalorder %s13718_s10, 0 }
0x3a04   : > { %p10135_p6 = pnand %p10216_p1, %p13719_p5 }
0x3a06   : > { %11690 = dma.done.wait (!%p10135_p6), %s8094_s8, 128  }
0x3a07   : > { %11692 = vsyncadd (!%p10135_p6), %s8094_s8, 4294967168  ;;  %s13720_s2 = sld [smem:[#allocation132_spill]]  ;;  %s13721_s7 = sld [smem:[#allocation131_spill]] }
0x3a08   : > { %s13722_s1 = sld [smem:[#allocation133_spill]]  ;;  %s13723_s0 = smov %s11699_s28 }
0x3a0d   : > { %p143_p2 = scmp.ge.s32.totalorder %s13720_s2, 4   ;;  %s13724_s28 = smov %s13721_s7 }
0x3a0f   :  { %145 = sbr.rel (!%p143_p2) target bundleno = 129 (0x81), region = 501 }
0x3a16   :  { %8099 = vsyncpa [#allocation3], 1 }
0x3a17   :  { %8101 = vsyncpa [#allocation3 + $0x1], 1 }
0x3a18   :  { %8102 = vsyncpa [#allocation6], 1 }
0x3a19   :  { %8103 = vsyncpa [#allocation9], 1 }
0x3a1a   :  { %8104 = vsyncpa [#allocation12], 1 }
0x3a1b   :  { %8105 = vsyncpa [#allocation15], 1 }
0x3a1c   :  { %8106 = vsyncpa [#allocation18], 1 }
0x3a1d   :  { %8107 = vsyncpa [#allocation21], 1 }
0x3a1e   :  { %8108 = vsyncpa [#allocation24], 1 }
0x3a1f   :  { %8109 = vsyncpa [#allocation27], 1 }
0x3a20   :  { %8110 = vsyncpa [#allocation30], 1 }
0x3a21   :  { %8111 = vsyncpa [#allocation33], 1 }
0x3a22   :  { %8112 = vsyncpa [#allocation36], 1 }
0x3a23   :  { %8113 = vsyncpa [#allocation39], 1 }
0x3a24   :  { %8114 = vsyncpa [#allocation42], 1 }
0x3a25   :  { %8115 = vsyncpa [#allocation45], 1 }
0x3a26   :  { %8116 = vsyncpa [#allocation48], 1 }
0x3a27   :  { %8117 = vsyncpa [#allocation51], 1 }
0x3a28   :  { %8118 = vsyncpa [#allocation54], 1 }
0x3a29   :  { %8119 = vsyncpa [#allocation57], 1 }
0x3a2a   :  { %8120 = vsyncpa [#allocation60], 1 }
0x3a2b   :  { %8121 = vsyncpa [#allocation4], 1 }
0x3a2c   :  { %8123 = vsyncpa [#allocation4 + $0x1], 1 }

</bundles_post_ra>
